<compile_context>
chip_gen: v5e
topology: v5e:2x2
jax: 0.10.0
libtpu: 0.0.40
codegen_flags: <defaults>
</compile_context>

<pallas_src>
import functools

import jax
import jax.numpy as jnp
from jax.experimental import pallas as pl
from jax.experimental.pallas import tpu as pltpu

K = 3  # kernel_size


# --------------------------------------------------------------------------
# Pallas kernel: full fusion1 (two CPAB blocks) for B_blk images folded into
# the lane axis.  Activations are (C, N) with N = B_blk*HW; params are
# stacked (2, ...) for block 0 / block 1.
# --------------------------------------------------------------------------
def _fusion1_kernel(x_ref, masks_ref, ind_ref,
                    w1_ref, b1_ref, w2_ref, b2_ref,
                    caw1t_ref, cab1_ref, caw2_ref, cab2_ref,
                    paw1_ref, pab1_ref, paw2_ref, pab2_ref,
                    o_ref, *, W, HW, B_blk):
    f32 = jnp.float32
    bf16 = jnp.bfloat16
    C, N = x_ref.shape
    inv_hw = 1.0 / HW

    # Static spatial offsets of the 9 taps (dh-major, matching weight layout).
    offs = [(dh - 1) * W + (dw - 1) for dh in range(K) for dw in range(K)]

    def conv3x3(act, w_taps, bias):
        # act: (C, N) f32;  w_taps: (9, C, C) bf16;  bias: (C, 1) f32.
        acc = None
        for t, off in enumerate(offs):
            if off == 0:
                tap = act                                   # centre: no roll/mask
            else:
                shifted = pltpu.roll(act, shift=(-off) % N, axis=1)
                tap = shifted * masks_ref[t]                # zero edge/cross-image taps
            d = jnp.dot(w_taps[t], tap.astype(bf16), preferred_element_type=f32)
            acc = d if acc is None else acc + d
        return acc + bias

    def ca_mlp(gap, caw1t, cab1, caw2, cab2):
        # Tiny channel-attention MLP kept off the MXU (VPU mul + XLU reduce).
        h = jnp.sum(caw1t * gap, axis=0, keepdims=True) + cab1       # (1, Cr)
        h = jnp.maximum(h, 0.0)
        s = jnp.sum(caw2 * h, axis=1, keepdims=True) + cab2          # (C, 1)
        return jax.nn.sigmoid(s)

    def cpab(x, i):
        # conv3x3 -> ReLU -> conv3x3
        h = jnp.maximum(conv3x3(x, w1_ref[i], b1_ref[i]), 0.0)
        r = conv3x3(h, w2_ref[i], b2_ref[i])

        # channel attention: per-image GAP even with the batch folded in lanes
        caw1t, cab1 = caw1t_ref[i], cab1_ref[i]
        caw2, cab2 = caw2_ref[i], cab2_ref[i]
        if B_blk == 1:
            gap = jnp.sum(r, axis=1, keepdims=True) * inv_hw          # (C, 1)
            r = r * ca_mlp(gap, caw1t, cab1, caw2, cab2)
        else:
            scale = jnp.zeros_like(r)
            for b in range(B_blk):                                    # static loop
                ind_b = ind_ref[b]                                    # (N,)
                gap = jnp.sum(r * ind_b, axis=1, keepdims=True) * inv_hw
                scale = scale + ca_mlp(gap, caw1t, cab1, caw2, cab2) * ind_b
            r = r * scale

        # pixel attention: 1x1 -> ReLU -> 1x1 (-> 1 channel) -> sigmoid
        pa = jnp.maximum(
            jnp.dot(paw1_ref[i], r, preferred_element_type=f32) + pab1_ref[i],
            0.0)                                                      # (Cr, N)
        pa = jax.nn.sigmoid(
            jnp.dot(paw2_ref[i], pa, preferred_element_type=f32) + pab2_ref[i])
        return r * pa + x                                             # (C, N)

    x = x_ref[...].astype(f32)
    o_ref[...] = cpab(cpab(x, 0), 1).astype(o_ref.dtype)


# --------------------------------------------------------------------------
# Wrapper: param re-layout + fused pallas_call over batch blocks.
# --------------------------------------------------------------------------
def _kernel_params(p, C):
    """Torch-layout CPAB params -> kernel layout."""
    def tapw(w):  # (C_out, C_in, K, K) -> (K*K, C_out, C_in), bf16 for the MXU
        return jnp.transpose(w, (2, 3, 0, 1)).reshape(K * K, C, C).astype(jnp.bfloat16)

    col = lambda v: v.reshape(-1, 1)
    row = lambda v: v.reshape(1, -1)
    return [
        tapw(p["w1"]), col(p["b1"]), tapw(p["w2"]), col(p["b2"]),
        p["caw1"].T, row(p["cab1"]),      # caw1^T: (C, Cr), bias as (1, Cr)
        p["caw2"], col(p["cab2"]),        # (C, Cr), (C, 1)
        p["paw1"], col(p["pab1"]),        # (Cr, C), (Cr, 1)
        p["paw2"], col(p["pab2"]),        # (1, Cr), (1, 1)
    ]


def _pick_batch_block(B):
    """Whole batch in one step on v5e/v6e (1 TC); 2 parallel steps on v7x (2 TCs)."""
    try:
        kind = jax.devices()[0].device_kind.lower()
    except Exception:
        kind = ""
    two_tc = ("v7" in kind) or ("7x" in kind)
    if two_tc and B >= 2 and B % 2 == 0:
        return B // 2
    return B


def fusion1_forward(x_nchw, y_nchw, params1, params2, *, batch_block=None):
    """res = conv_2(conv_1(x)); `y` is unused (matches the PyTorch module)."""
    del y_nchw
    B, C, H, W = x_nchw.shape
    HW = H * W
    B_blk = _pick_batch_block(B) if batch_block is None else batch_block
    assert B % B_blk == 0
    n_steps = B // B_blk
    N = B_blk * HW

    # Fold B_blk images into the lane axis: (n_steps, C, B_blk*HW).
    x_folded = jnp.transpose(x_nchw.reshape(n_steps, B_blk, C, HW),
                             (0, 2, 1, 3)).reshape(n_steps, C, N)

    # Precomputed per-tap multiplicative edge masks (also kill cross-image
    # taps when batch is folded) and per-image indicators for segmented GAP.
    pos = jnp.arange(N, dtype=jnp.int32) % HW
    hh, ww = pos // W, pos % W
    mask_rows = []
    for dh in range(K):
        for dw in range(K):
            oy, ox = dh - 1, dw - 1
            valid = ((hh + oy >= 0) & (hh + oy < H) &
                     (ww + ox >= 0) & (ww + ox < W))
            mask_rows.append(valid.astype(jnp.float32))
    masks = jnp.stack(mask_rows)                                      # (9, N)
    img = jnp.arange(N, dtype=jnp.int32) // HW
    ind = (img[None, :] == jnp.arange(B_blk)[:, None]).astype(jnp.float32)

    # Stack the two CPAB blocks' params on a leading axis of size 2.
    stacked = [jnp.stack([a, b]) for a, b in
               zip(_kernel_params(params1, C), _kernel_params(params2, C))]

    conv_flops = 2 * C * (K * K * C) * HW                # per conv, per image
    pa_flops = 2 * (C // 4) * C * HW + 2 * (C // 4) * HW
    cost = pl.CostEstimate(
        flops=int(B * 2 * (2 * conv_flops + pa_flops)),
        transcendentals=int(B * 2 * (HW + C)),
        bytes_accessed=int(4 * 2 * B * C * HW
                           + sum(int(a.size) * a.dtype.itemsize for a in stacked)
                           + 4 * int(masks.size + ind.size)),
    )

    def full_spec(a):
        nd = a.ndim
        return pl.BlockSpec(a.shape, lambda s, _nd=nd: (0,) * _nd)

    out = pl.pallas_call(
        functools.partial(_fusion1_kernel, W=W, HW=HW, B_blk=B_blk),
        out_shape=jax.ShapeDtypeStruct((n_steps, C, N), x_nchw.dtype),
        grid=(n_steps,),
        in_specs=[pl.BlockSpec((None, C, N), lambda s: (s, 0, 0)),
                  full_spec(masks), full_spec(ind)]
                 + [full_spec(a) for a in stacked],
        out_specs=pl.BlockSpec((None, C, N), lambda s: (s, 0, 0)),
        compiler_params=pltpu.CompilerParams(
            dimension_semantics=("parallel",)),
        cost_estimate=cost,
    )(x_folded, masks, ind, *stacked)

    return jnp.transpose(out.reshape(n_steps, C, B_blk, HW),
                         (0, 2, 1, 3)).reshape(B, C, H, W)


# --------------------------------------------------------------------------
# Parameters (deterministic, synthetic) and a pure-JAX reference.
# --------------------------------------------------------------------------
def init_cpab_params(key, C, Cr):
    ks = jax.random.split(key, 12)
    n = lambda k, shp: jax.random.normal(k, shp, jnp.float32) * 0.1
    return dict(
        w1=n(ks[0], (C, C, K, K)), b1=n(ks[1], (C,)),
        w2=n(ks[2], (C, C, K, K)), b2=n(ks[3], (C,)),
        caw1=n(ks[4], (Cr, C)), cab1=n(ks[5], (Cr,)),
        caw2=n(ks[6], (C, Cr)), cab2=n(ks[7], (C,)),
        paw1=n(ks[8], (Cr, C)), pab1=n(ks[9], (Cr,)),
        paw2=n(ks[10], (1, Cr)), pab2=n(ks[11], (1,)),
    )


def cpab_ref(x, p):
    hp = jax.lax.Precision.HIGHEST

    def conv3(h, w, b):
        out = jax.lax.conv_general_dilated(
            h, w, window_strides=(1, 1), padding="SAME",
            dimension_numbers=("NCHW", "OIHW", "NCHW"), precision=hp)
        return out + b.reshape(1, -1, 1, 1)

    h = jnp.maximum(conv3(x, p["w1"], p["b1"]), 0.0)
    r = conv3(h, p["w2"], p["b2"])
    gap = r.mean(axis=(2, 3))                                        # (B, C)
    ca = jnp.maximum(jnp.dot(gap, p["caw1"].T, precision=hp) + p["cab1"], 0.0)
    ca = jax.nn.sigmoid(jnp.dot(ca, p["caw2"].T, precision=hp) + p["cab2"])
    r = r * ca[:, :, None, None]
    pa = jnp.maximum(jnp.einsum("bchw,oc->bohw", r, p["paw1"], precision=hp)
                     + p["pab1"].reshape(1, -1, 1, 1), 0.0)
    pa = jax.nn.sigmoid(jnp.einsum("bchw,oc->bohw", pa, p["paw2"], precision=hp)
                        + p["pab2"].reshape(1, -1, 1, 1))
    return r * pa + x


def fusion1_ref(x, y, p1, p2):
    del y
    return cpab_ref(cpab_ref(x, p1), p2)


if __name__ == "__main__":
    B, n_feat, H, W = 2, 8, 16, 16
    reduction = 4
    Cr = n_feat // reduction

    key = jax.random.PRNGKey(0)
    kx, ky, kp1, kp2 = jax.random.split(key, 4)
    x = jax.random.normal(kx, (B, n_feat, H, W), jnp.float32)  # NCHW, like torch
    y = jax.random.normal(ky, (B, n_feat, H, W), jnp.float32)  # unused by forward

    p1 = init_cpab_params(kp1, n_feat, Cr)
    p2 = init_cpab_params(kp2, n_feat, Cr)

    out = jax.block_until_ready(fusion1_forward(x, y, p1, p2))
    ref = jax.block_until_ready(fusion1_ref(x, y, p1, p2))

    assert out.shape == (B, n_feat, H, W)
    max_err = float(jnp.max(jnp.abs(out - ref)))
    # Conv MXU operands are bf16 (f32 accumulate) -> bf16-appropriate tolerance.
    assert jnp.allclose(out, ref, atol=2e-2, rtol=2e-2), max_err

    print("KERNEL_OK")
</pallas_src>

<mosaic_0001>
module attributes {stable_mosaic.version = 11 : i64} {
  func.func @_fusion1_kernel(%arg0: i32, %arg1: memref<1x8x512xf32, #tpu.memory_space<vmem>>, %arg2: memref<9x512xf32, #tpu.memory_space<vmem>>, %arg3: memref<2x512xf32, #tpu.memory_space<vmem>>, %arg4: memref<2x9x8x8xbf16, #tpu.memory_space<vmem>>, %arg5: memref<2x8x1xf32, #tpu.memory_space<vmem>>, %arg6: memref<2x9x8x8xbf16, #tpu.memory_space<vmem>>, %arg7: memref<2x8x1xf32, #tpu.memory_space<vmem>>, %arg8: memref<2x8x2xf32, #tpu.memory_space<vmem>>, %arg9: memref<2x1x2xf32, #tpu.memory_space<vmem>>, %arg10: memref<2x8x2xf32, #tpu.memory_space<vmem>>, %arg11: memref<2x8x1xf32, #tpu.memory_space<vmem>>, %arg12: memref<2x2x8xf32, #tpu.memory_space<vmem>>, %arg13: memref<2x2x1xf32, #tpu.memory_space<vmem>>, %arg14: memref<2x1x2xf32, #tpu.memory_space<vmem>>, %arg15: memref<2x1x1xf32, #tpu.memory_space<vmem>>, %arg16: memref<1x8x512xf32, #tpu.memory_space<vmem>>) attributes {dimension_semantics = [#tpu.dimension_semantics<parallel>], iteration_bounds = array<i64: 1>, scalar_prefetch = 0 : i64, scratch_operands = 0 : i64, tpu.core_type = #tpu.core_type<tc>, window_params = [{transform_indices = @transform_0, window_bounds = array<i64: 1, 8, 512>}, {pipeline_mode = #tpu.pipeline_mode<synchronous>, transform_indices = @transform_1, window_bounds = array<i64: 9, 512>}, {pipeline_mode = #tpu.pipeline_mode<synchronous>, transform_indices = @transform_2, window_bounds = array<i64: 2, 512>}, {pipeline_mode = #tpu.pipeline_mode<synchronous>, transform_indices = @transform_3, window_bounds = array<i64: 2, 9, 8, 8>}, {pipeline_mode = #tpu.pipeline_mode<synchronous>, transform_indices = @transform_4, window_bounds = array<i64: 2, 8, 1>}, {pipeline_mode = #tpu.pipeline_mode<synchronous>, transform_indices = @transform_5, window_bounds = array<i64: 2, 9, 8, 8>}, {pipeline_mode = #tpu.pipeline_mode<synchronous>, transform_indices = @transform_6, window_bounds = array<i64: 2, 8, 1>}, {pipeline_mode = #tpu.pipeline_mode<synchronous>, transform_indices = @transform_7, window_bounds = array<i64: 2, 8, 2>}, {pipeline_mode = #tpu.pipeline_mode<synchronous>, transform_indices = @transform_8, window_bounds = array<i64: 2, 1, 2>}, {pipeline_mode = #tpu.pipeline_mode<synchronous>, transform_indices = @transform_9, window_bounds = array<i64: 2, 8, 2>}, {pipeline_mode = #tpu.pipeline_mode<synchronous>, transform_indices = @transform_10, window_bounds = array<i64: 2, 8, 1>}, {pipeline_mode = #tpu.pipeline_mode<synchronous>, transform_indices = @transform_11, window_bounds = array<i64: 2, 2, 8>}, {pipeline_mode = #tpu.pipeline_mode<synchronous>, transform_indices = @transform_12, window_bounds = array<i64: 2, 2, 1>}, {pipeline_mode = #tpu.pipeline_mode<synchronous>, transform_indices = @transform_13, window_bounds = array<i64: 2, 1, 2>}, {pipeline_mode = #tpu.pipeline_mode<synchronous>, transform_indices = @transform_14, window_bounds = array<i64: 2, 1, 1>}, {transform_indices = @transform_15, window_bounds = array<i64: 1, 8, 512>}]} {
    %c0 = arith.constant 0 : index
    %c0_0 = arith.constant 0 : index
    %c0_1 = arith.constant 0 : index
    %0 = vector.load %arg1[%c0, %c0_0, %c0_1] : memref<1x8x512xf32, #tpu.memory_space<vmem>>, vector<1x8x512xf32>
    %1 = vector.shape_cast %0 : vector<1x8x512xf32> to vector<8x512xf32>
    %c0_2 = arith.constant 0 : index
    %c0_3 = arith.constant 0 : index
    %c0_4 = arith.constant 0 : index
    %c0_5 = arith.constant 0 : index
    %2 = vector.load %arg4[%c0_2, %c0_3, %c0_4, %c0_5] : memref<2x9x8x8xbf16, #tpu.memory_space<vmem>>, vector<1x9x8x8xbf16>
    %3 = vector.shape_cast %2 : vector<1x9x8x8xbf16> to vector<9x8x8xbf16>
    %c0_6 = arith.constant 0 : index
    %c0_7 = arith.constant 0 : index
    %c0_8 = arith.constant 0 : index
    %4 = vector.load %arg5[%c0_6, %c0_7, %c0_8] : memref<2x8x1xf32, #tpu.memory_space<vmem>>, vector<1x8x1xf32>
    %5 = vector.shape_cast %4 : vector<1x8x1xf32> to vector<8x1xf32>
    %c17_i32 = arith.constant 17 : i32
    %6 = tpu.dynamic_rotate %1 by %c17_i32 dim 1 : vector<8x512xf32>, i32 -> vector<8x512xf32>
    %c0_9 = arith.constant 0 : index
    %c0_10 = arith.constant 0 : index
    %7 = vector.load %arg2[%c0_9, %c0_10] : memref<9x512xf32, #tpu.memory_space<vmem>>, vector<1x512xf32>
    %8 = vector.shape_cast %7 : vector<1x512xf32> to vector<512xf32>
    %9 = vector.shape_cast %8 : vector<512xf32> to vector<1x512xf32>
    %10 = vector.broadcast %9 : vector<1x512xf32> to vector<8x512xf32>
    %11 = arith.mulf %6, %10 : vector<8x512xf32>
    %12 = vector.extract_strided_slice %3 {offsets = [0, 0, 0], sizes = [1, 8, 8], strides = [1, 1, 1]} : vector<9x8x8xbf16> to vector<1x8x8xbf16>
    %13 = vector.shape_cast %12 : vector<1x8x8xbf16> to vector<8x8xbf16>
    %14 = arith.truncf %11 : vector<8x512xf32> to vector<8x512xbf16>
    %cst = arith.constant dense<0.000000e+00> : vector<8x512xf32>
    %15 = tpu.matmul %13, %14, %cst {dimension_numbers = #tpu.dot_dimension_numbers<[1], [0], [0], [1], [0, 0, 1, 1], [], []>} : vector<8x8xbf16>, vector<8x512xbf16>, vector<8x512xf32> -> vector<8x512xf32>
    %c16_i32 = arith.constant 16 : i32
    %16 = tpu.dynamic_rotate %1 by %c16_i32 dim 1 : vector<8x512xf32>, i32 -> vector<8x512xf32>
    %c1 = arith.constant 1 : index
    %c0_11 = arith.constant 0 : index
    %17 = vector.load %arg2[%c1, %c0_11] : memref<9x512xf32, #tpu.memory_space<vmem>>, vector<1x512xf32>
    %18 = vector.shape_cast %17 : vector<1x512xf32> to vector<512xf32>
    %19 = vector.shape_cast %18 : vector<512xf32> to vector<1x512xf32>
    %20 = vector.broadcast %19 : vector<1x512xf32> to vector<8x512xf32>
    %21 = arith.mulf %16, %20 : vector<8x512xf32>
    %22 = vector.extract_strided_slice %3 {offsets = [1, 0, 0], sizes = [1, 8, 8], strides = [1, 1, 1]} : vector<9x8x8xbf16> to vector<1x8x8xbf16>
    %23 = vector.shape_cast %22 : vector<1x8x8xbf16> to vector<8x8xbf16>
    %24 = arith.truncf %21 : vector<8x512xf32> to vector<8x512xbf16>
    %cst_12 = arith.constant dense<0.000000e+00> : vector<8x512xf32>
    %25 = tpu.matmul %23, %24, %cst_12 {dimension_numbers = #tpu.dot_dimension_numbers<[1], [0], [0], [1], [0, 0, 1, 1], [], []>} : vector<8x8xbf16>, vector<8x512xbf16>, vector<8x512xf32> -> vector<8x512xf32>
    %26 = arith.addf %15, %25 : vector<8x512xf32>
    %c15_i32 = arith.constant 15 : i32
    %27 = tpu.dynamic_rotate %1 by %c15_i32 dim 1 : vector<8x512xf32>, i32 -> vector<8x512xf32>
    %c2 = arith.constant 2 : index
    %c0_13 = arith.constant 0 : index
    %28 = vector.load %arg2[%c2, %c0_13] : memref<9x512xf32, #tpu.memory_space<vmem>>, vector<1x512xf32>
    %29 = vector.shape_cast %28 : vector<1x512xf32> to vector<512xf32>
    %30 = vector.shape_cast %29 : vector<512xf32> to vector<1x512xf32>
    %31 = vector.broadcast %30 : vector<1x512xf32> to vector<8x512xf32>
    %32 = arith.mulf %27, %31 : vector<8x512xf32>
    %33 = vector.extract_strided_slice %3 {offsets = [2, 0, 0], sizes = [1, 8, 8], strides = [1, 1, 1]} : vector<9x8x8xbf16> to vector<1x8x8xbf16>
    %34 = vector.shape_cast %33 : vector<1x8x8xbf16> to vector<8x8xbf16>
    %35 = arith.truncf %32 : vector<8x512xf32> to vector<8x512xbf16>
    %cst_14 = arith.constant dense<0.000000e+00> : vector<8x512xf32>
    %36 = tpu.matmul %34, %35, %cst_14 {dimension_numbers = #tpu.dot_dimension_numbers<[1], [0], [0], [1], [0, 0, 1, 1], [], []>} : vector<8x8xbf16>, vector<8x512xbf16>, vector<8x512xf32> -> vector<8x512xf32>
    %37 = arith.addf %26, %36 : vector<8x512xf32>
    %c1_i32 = arith.constant 1 : i32
    %38 = tpu.dynamic_rotate %1 by %c1_i32 dim 1 : vector<8x512xf32>, i32 -> vector<8x512xf32>
    %c3 = arith.constant 3 : index
    %c0_15 = arith.constant 0 : index
    %39 = vector.load %arg2[%c3, %c0_15] : memref<9x512xf32, #tpu.memory_space<vmem>>, vector<1x512xf32>
    %40 = vector.shape_cast %39 : vector<1x512xf32> to vector<512xf32>
    %41 = vector.shape_cast %40 : vector<512xf32> to vector<1x512xf32>
    %42 = vector.broadcast %41 : vector<1x512xf32> to vector<8x512xf32>
    %43 = arith.mulf %38, %42 : vector<8x512xf32>
    %44 = vector.extract_strided_slice %3 {offsets = [3, 0, 0], sizes = [1, 8, 8], strides = [1, 1, 1]} : vector<9x8x8xbf16> to vector<1x8x8xbf16>
    %45 = vector.shape_cast %44 : vector<1x8x8xbf16> to vector<8x8xbf16>
    %46 = arith.truncf %43 : vector<8x512xf32> to vector<8x512xbf16>
    %cst_16 = arith.constant dense<0.000000e+00> : vector<8x512xf32>
    %47 = tpu.matmul %45, %46, %cst_16 {dimension_numbers = #tpu.dot_dimension_numbers<[1], [0], [0], [1], [0, 0, 1, 1], [], []>} : vector<8x8xbf16>, vector<8x512xbf16>, vector<8x512xf32> -> vector<8x512xf32>
    %48 = arith.addf %37, %47 : vector<8x512xf32>
    %49 = vector.extract_strided_slice %3 {offsets = [4, 0, 0], sizes = [1, 8, 8], strides = [1, 1, 1]} : vector<9x8x8xbf16> to vector<1x8x8xbf16>
    %50 = vector.shape_cast %49 : vector<1x8x8xbf16> to vector<8x8xbf16>
    %51 = arith.truncf %1 : vector<8x512xf32> to vector<8x512xbf16>
    %cst_17 = arith.constant dense<0.000000e+00> : vector<8x512xf32>
    %52 = tpu.matmul %50, %51, %cst_17 {dimension_numbers = #tpu.dot_dimension_numbers<[1], [0], [0], [1], [0, 0, 1, 1], [], []>} : vector<8x8xbf16>, vector<8x512xbf16>, vector<8x512xf32> -> vector<8x512xf32>
    %53 = arith.addf %48, %52 : vector<8x512xf32>
    %c511_i32 = arith.constant 511 : i32
    %54 = tpu.dynamic_rotate %1 by %c511_i32 dim 1 : vector<8x512xf32>, i32 -> vector<8x512xf32>
    %c5 = arith.constant 5 : index
    %c0_18 = arith.constant 0 : index
    %55 = vector.load %arg2[%c5, %c0_18] : memref<9x512xf32, #tpu.memory_space<vmem>>, vector<1x512xf32>
    %56 = vector.shape_cast %55 : vector<1x512xf32> to vector<512xf32>
    %57 = vector.shape_cast %56 : vector<512xf32> to vector<1x512xf32>
    %58 = vector.broadcast %57 : vector<1x512xf32> to vector<8x512xf32>
    %59 = arith.mulf %54, %58 : vector<8x512xf32>
    %60 = vector.extract_strided_slice %3 {offsets = [5, 0, 0], sizes = [1, 8, 8], strides = [1, 1, 1]} : vector<9x8x8xbf16> to vector<1x8x8xbf16>
    %61 = vector.shape_cast %60 : vector<1x8x8xbf16> to vector<8x8xbf16>
    %62 = arith.truncf %59 : vector<8x512xf32> to vector<8x512xbf16>
    %cst_19 = arith.constant dense<0.000000e+00> : vector<8x512xf32>
    %63 = tpu.matmul %61, %62, %cst_19 {dimension_numbers = #tpu.dot_dimension_numbers<[1], [0], [0], [1], [0, 0, 1, 1], [], []>} : vector<8x8xbf16>, vector<8x512xbf16>, vector<8x512xf32> -> vector<8x512xf32>
    %64 = arith.addf %53, %63 : vector<8x512xf32>
    %c497_i32 = arith.constant 497 : i32
    %65 = tpu.dynamic_rotate %1 by %c497_i32 dim 1 : vector<8x512xf32>, i32 -> vector<8x512xf32>
    %c6 = arith.constant 6 : index
    %c0_20 = arith.constant 0 : index
    %66 = vector.load %arg2[%c6, %c0_20] : memref<9x512xf32, #tpu.memory_space<vmem>>, vector<1x512xf32>
    %67 = vector.shape_cast %66 : vector<1x512xf32> to vector<512xf32>
    %68 = vector.shape_cast %67 : vector<512xf32> to vector<1x512xf32>
    %69 = vector.broadcast %68 : vector<1x512xf32> to vector<8x512xf32>
    %70 = arith.mulf %65, %69 : vector<8x512xf32>
    %71 = vector.extract_strided_slice %3 {offsets = [6, 0, 0], sizes = [1, 8, 8], strides = [1, 1, 1]} : vector<9x8x8xbf16> to vector<1x8x8xbf16>
    %72 = vector.shape_cast %71 : vector<1x8x8xbf16> to vector<8x8xbf16>
    %73 = arith.truncf %70 : vector<8x512xf32> to vector<8x512xbf16>
    %cst_21 = arith.constant dense<0.000000e+00> : vector<8x512xf32>
    %74 = tpu.matmul %72, %73, %cst_21 {dimension_numbers = #tpu.dot_dimension_numbers<[1], [0], [0], [1], [0, 0, 1, 1], [], []>} : vector<8x8xbf16>, vector<8x512xbf16>, vector<8x512xf32> -> vector<8x512xf32>
    %75 = arith.addf %64, %74 : vector<8x512xf32>
    %c496_i32 = arith.constant 496 : i32
    %76 = tpu.dynamic_rotate %1 by %c496_i32 dim 1 : vector<8x512xf32>, i32 -> vector<8x512xf32>
    %c7 = arith.constant 7 : index
    %c0_22 = arith.constant 0 : index
    %77 = vector.load %arg2[%c7, %c0_22] : memref<9x512xf32, #tpu.memory_space<vmem>>, vector<1x512xf32>
    %78 = vector.shape_cast %77 : vector<1x512xf32> to vector<512xf32>
    %79 = vector.shape_cast %78 : vector<512xf32> to vector<1x512xf32>
    %80 = vector.broadcast %79 : vector<1x512xf32> to vector<8x512xf32>
    %81 = arith.mulf %76, %80 : vector<8x512xf32>
    %82 = vector.extract_strided_slice %3 {offsets = [7, 0, 0], sizes = [1, 8, 8], strides = [1, 1, 1]} : vector<9x8x8xbf16> to vector<1x8x8xbf16>
    %83 = vector.shape_cast %82 : vector<1x8x8xbf16> to vector<8x8xbf16>
    %84 = arith.truncf %81 : vector<8x512xf32> to vector<8x512xbf16>
    %cst_23 = arith.constant dense<0.000000e+00> : vector<8x512xf32>
    %85 = tpu.matmul %83, %84, %cst_23 {dimension_numbers = #tpu.dot_dimension_numbers<[1], [0], [0], [1], [0, 0, 1, 1], [], []>} : vector<8x8xbf16>, vector<8x512xbf16>, vector<8x512xf32> -> vector<8x512xf32>
    %86 = arith.addf %75, %85 : vector<8x512xf32>
    %c495_i32 = arith.constant 495 : i32
    %87 = tpu.dynamic_rotate %1 by %c495_i32 dim 1 : vector<8x512xf32>, i32 -> vector<8x512xf32>
    %c8 = arith.constant 8 : index
    %c0_24 = arith.constant 0 : index
    %88 = vector.load %arg2[%c8, %c0_24] : memref<9x512xf32, #tpu.memory_space<vmem>>, vector<1x512xf32>
    %89 = vector.shape_cast %88 : vector<1x512xf32> to vector<512xf32>
    %90 = vector.shape_cast %89 : vector<512xf32> to vector<1x512xf32>
    %91 = vector.broadcast %90 : vector<1x512xf32> to vector<8x512xf32>
    %92 = arith.mulf %87, %91 : vector<8x512xf32>
    %93 = vector.extract_strided_slice %3 {offsets = [8, 0, 0], sizes = [1, 8, 8], strides = [1, 1, 1]} : vector<9x8x8xbf16> to vector<1x8x8xbf16>
    %94 = vector.shape_cast %93 : vector<1x8x8xbf16> to vector<8x8xbf16>
    %95 = arith.truncf %92 : vector<8x512xf32> to vector<8x512xbf16>
    %cst_25 = arith.constant dense<0.000000e+00> : vector<8x512xf32>
    %96 = tpu.matmul %94, %95, %cst_25 {dimension_numbers = #tpu.dot_dimension_numbers<[1], [0], [0], [1], [0, 0, 1, 1], [], []>} : vector<8x8xbf16>, vector<8x512xbf16>, vector<8x512xf32> -> vector<8x512xf32>
    %97 = arith.addf %86, %96 : vector<8x512xf32>
    %98 = vector.broadcast %5 : vector<8x1xf32> to vector<8x512xf32>
    %99 = arith.addf %97, %98 : vector<8x512xf32>
    %cst_26 = arith.constant 0.000000e+00 : f32
    %100 = vector.broadcast %cst_26 : f32 to vector<8x512xf32>
    %101 = arith.maximumf %99, %100 : vector<8x512xf32>
    %c0_27 = arith.constant 0 : index
    %c0_28 = arith.constant 0 : index
    %c0_29 = arith.constant 0 : index
    %c0_30 = arith.constant 0 : index
    %102 = vector.load %arg6[%c0_27, %c0_28, %c0_29, %c0_30] : memref<2x9x8x8xbf16, #tpu.memory_space<vmem>>, vector<1x9x8x8xbf16>
    %103 = vector.shape_cast %102 : vector<1x9x8x8xbf16> to vector<9x8x8xbf16>
    %c0_31 = arith.constant 0 : index
    %c0_32 = arith.constant 0 : index
    %c0_33 = arith.constant 0 : index
    %104 = vector.load %arg7[%c0_31, %c0_32, %c0_33] : memref<2x8x1xf32, #tpu.memory_space<vmem>>, vector<1x8x1xf32>
    %105 = vector.shape_cast %104 : vector<1x8x1xf32> to vector<8x1xf32>
    %c17_i32_34 = arith.constant 17 : i32
    %106 = tpu.dynamic_rotate %101 by %c17_i32_34 dim 1 : vector<8x512xf32>, i32 -> vector<8x512xf32>
    %c0_35 = arith.constant 0 : index
    %c0_36 = arith.constant 0 : index
    %107 = vector.load %arg2[%c0_35, %c0_36] : memref<9x512xf32, #tpu.memory_space<vmem>>, vector<1x512xf32>
    %108 = vector.shape_cast %107 : vector<1x512xf32> to vector<512xf32>
    %109 = vector.shape_cast %108 : vector<512xf32> to vector<1x512xf32>
    %110 = vector.broadcast %109 : vector<1x512xf32> to vector<8x512xf32>
    %111 = arith.mulf %106, %110 : vector<8x512xf32>
    %112 = vector.extract_strided_slice %103 {offsets = [0, 0, 0], sizes = [1, 8, 8], strides = [1, 1, 1]} : vector<9x8x8xbf16> to vector<1x8x8xbf16>
    %113 = vector.shape_cast %112 : vector<1x8x8xbf16> to vector<8x8xbf16>
    %114 = arith.truncf %111 : vector<8x512xf32> to vector<8x512xbf16>
    %cst_37 = arith.constant dense<0.000000e+00> : vector<8x512xf32>
    %115 = tpu.matmul %113, %114, %cst_37 {dimension_numbers = #tpu.dot_dimension_numbers<[1], [0], [0], [1], [0, 0, 1, 1], [], []>} : vector<8x8xbf16>, vector<8x512xbf16>, vector<8x512xf32> -> vector<8x512xf32>
    %c16_i32_38 = arith.constant 16 : i32
    %116 = tpu.dynamic_rotate %101 by %c16_i32_38 dim 1 : vector<8x512xf32>, i32 -> vector<8x512xf32>
    %c1_39 = arith.constant 1 : index
    %c0_40 = arith.constant 0 : index
    %117 = vector.load %arg2[%c1_39, %c0_40] : memref<9x512xf32, #tpu.memory_space<vmem>>, vector<1x512xf32>
    %118 = vector.shape_cast %117 : vector<1x512xf32> to vector<512xf32>
    %119 = vector.shape_cast %118 : vector<512xf32> to vector<1x512xf32>
    %120 = vector.broadcast %119 : vector<1x512xf32> to vector<8x512xf32>
    %121 = arith.mulf %116, %120 : vector<8x512xf32>
    %122 = vector.extract_strided_slice %103 {offsets = [1, 0, 0], sizes = [1, 8, 8], strides = [1, 1, 1]} : vector<9x8x8xbf16> to vector<1x8x8xbf16>
    %123 = vector.shape_cast %122 : vector<1x8x8xbf16> to vector<8x8xbf16>
    %124 = arith.truncf %121 : vector<8x512xf32> to vector<8x512xbf16>
    %cst_41 = arith.constant dense<0.000000e+00> : vector<8x512xf32>
    %125 = tpu.matmul %123, %124, %cst_41 {dimension_numbers = #tpu.dot_dimension_numbers<[1], [0], [0], [1], [0, 0, 1, 1], [], []>} : vector<8x8xbf16>, vector<8x512xbf16>, vector<8x512xf32> -> vector<8x512xf32>
    %126 = arith.addf %115, %125 : vector<8x512xf32>
    %c15_i32_42 = arith.constant 15 : i32
    %127 = tpu.dynamic_rotate %101 by %c15_i32_42 dim 1 : vector<8x512xf32>, i32 -> vector<8x512xf32>
    %c2_43 = arith.constant 2 : index
    %c0_44 = arith.constant 0 : index
    %128 = vector.load %arg2[%c2_43, %c0_44] : memref<9x512xf32, #tpu.memory_space<vmem>>, vector<1x512xf32>
    %129 = vector.shape_cast %128 : vector<1x512xf32> to vector<512xf32>
    %130 = vector.shape_cast %129 : vector<512xf32> to vector<1x512xf32>
    %131 = vector.broadcast %130 : vector<1x512xf32> to vector<8x512xf32>
    %132 = arith.mulf %127, %131 : vector<8x512xf32>
    %133 = vector.extract_strided_slice %103 {offsets = [2, 0, 0], sizes = [1, 8, 8], strides = [1, 1, 1]} : vector<9x8x8xbf16> to vector<1x8x8xbf16>
    %134 = vector.shape_cast %133 : vector<1x8x8xbf16> to vector<8x8xbf16>
    %135 = arith.truncf %132 : vector<8x512xf32> to vector<8x512xbf16>
    %cst_45 = arith.constant dense<0.000000e+00> : vector<8x512xf32>
    %136 = tpu.matmul %134, %135, %cst_45 {dimension_numbers = #tpu.dot_dimension_numbers<[1], [0], [0], [1], [0, 0, 1, 1], [], []>} : vector<8x8xbf16>, vector<8x512xbf16>, vector<8x512xf32> -> vector<8x512xf32>
    %137 = arith.addf %126, %136 : vector<8x512xf32>
    %c1_i32_46 = arith.constant 1 : i32
    %138 = tpu.dynamic_rotate %101 by %c1_i32_46 dim 1 : vector<8x512xf32>, i32 -> vector<8x512xf32>
    %c3_47 = arith.constant 3 : index
    %c0_48 = arith.constant 0 : index
    %139 = vector.load %arg2[%c3_47, %c0_48] : memref<9x512xf32, #tpu.memory_space<vmem>>, vector<1x512xf32>
    %140 = vector.shape_cast %139 : vector<1x512xf32> to vector<512xf32>
    %141 = vector.shape_cast %140 : vector<512xf32> to vector<1x512xf32>
    %142 = vector.broadcast %141 : vector<1x512xf32> to vector<8x512xf32>
    %143 = arith.mulf %138, %142 : vector<8x512xf32>
    %144 = vector.extract_strided_slice %103 {offsets = [3, 0, 0], sizes = [1, 8, 8], strides = [1, 1, 1]} : vector<9x8x8xbf16> to vector<1x8x8xbf16>
    %145 = vector.shape_cast %144 : vector<1x8x8xbf16> to vector<8x8xbf16>
    %146 = arith.truncf %143 : vector<8x512xf32> to vector<8x512xbf16>
    %cst_49 = arith.constant dense<0.000000e+00> : vector<8x512xf32>
    %147 = tpu.matmul %145, %146, %cst_49 {dimension_numbers = #tpu.dot_dimension_numbers<[1], [0], [0], [1], [0, 0, 1, 1], [], []>} : vector<8x8xbf16>, vector<8x512xbf16>, vector<8x512xf32> -> vector<8x512xf32>
    %148 = arith.addf %137, %147 : vector<8x512xf32>
    %149 = vector.extract_strided_slice %103 {offsets = [4, 0, 0], sizes = [1, 8, 8], strides = [1, 1, 1]} : vector<9x8x8xbf16> to vector<1x8x8xbf16>
    %150 = vector.shape_cast %149 : vector<1x8x8xbf16> to vector<8x8xbf16>
    %151 = arith.truncf %101 : vector<8x512xf32> to vector<8x512xbf16>
    %cst_50 = arith.constant dense<0.000000e+00> : vector<8x512xf32>
    %152 = tpu.matmul %150, %151, %cst_50 {dimension_numbers = #tpu.dot_dimension_numbers<[1], [0], [0], [1], [0, 0, 1, 1], [], []>} : vector<8x8xbf16>, vector<8x512xbf16>, vector<8x512xf32> -> vector<8x512xf32>
    %153 = arith.addf %148, %152 : vector<8x512xf32>
    %c511_i32_51 = arith.constant 511 : i32
    %154 = tpu.dynamic_rotate %101 by %c511_i32_51 dim 1 : vector<8x512xf32>, i32 -> vector<8x512xf32>
    %c5_52 = arith.constant 5 : index
    %c0_53 = arith.constant 0 : index
    %155 = vector.load %arg2[%c5_52, %c0_53] : memref<9x512xf32, #tpu.memory_space<vmem>>, vector<1x512xf32>
    %156 = vector.shape_cast %155 : vector<1x512xf32> to vector<512xf32>
    %157 = vector.shape_cast %156 : vector<512xf32> to vector<1x512xf32>
    %158 = vector.broadcast %157 : vector<1x512xf32> to vector<8x512xf32>
    %159 = arith.mulf %154, %158 : vector<8x512xf32>
    %160 = vector.extract_strided_slice %103 {offsets = [5, 0, 0], sizes = [1, 8, 8], strides = [1, 1, 1]} : vector<9x8x8xbf16> to vector<1x8x8xbf16>
    %161 = vector.shape_cast %160 : vector<1x8x8xbf16> to vector<8x8xbf16>
    %162 = arith.truncf %159 : vector<8x512xf32> to vector<8x512xbf16>
    %cst_54 = arith.constant dense<0.000000e+00> : vector<8x512xf32>
    %163 = tpu.matmul %161, %162, %cst_54 {dimension_numbers = #tpu.dot_dimension_numbers<[1], [0], [0], [1], [0, 0, 1, 1], [], []>} : vector<8x8xbf16>, vector<8x512xbf16>, vector<8x512xf32> -> vector<8x512xf32>
    %164 = arith.addf %153, %163 : vector<8x512xf32>
    %c497_i32_55 = arith.constant 497 : i32
    %165 = tpu.dynamic_rotate %101 by %c497_i32_55 dim 1 : vector<8x512xf32>, i32 -> vector<8x512xf32>
    %c6_56 = arith.constant 6 : index
    %c0_57 = arith.constant 0 : index
    %166 = vector.load %arg2[%c6_56, %c0_57] : memref<9x512xf32, #tpu.memory_space<vmem>>, vector<1x512xf32>
    %167 = vector.shape_cast %166 : vector<1x512xf32> to vector<512xf32>
    %168 = vector.shape_cast %167 : vector<512xf32> to vector<1x512xf32>
    %169 = vector.broadcast %168 : vector<1x512xf32> to vector<8x512xf32>
    %170 = arith.mulf %165, %169 : vector<8x512xf32>
    %171 = vector.extract_strided_slice %103 {offsets = [6, 0, 0], sizes = [1, 8, 8], strides = [1, 1, 1]} : vector<9x8x8xbf16> to vector<1x8x8xbf16>
    %172 = vector.shape_cast %171 : vector<1x8x8xbf16> to vector<8x8xbf16>
    %173 = arith.truncf %170 : vector<8x512xf32> to vector<8x512xbf16>
    %cst_58 = arith.constant dense<0.000000e+00> : vector<8x512xf32>
    %174 = tpu.matmul %172, %173, %cst_58 {dimension_numbers = #tpu.dot_dimension_numbers<[1], [0], [0], [1], [0, 0, 1, 1], [], []>} : vector<8x8xbf16>, vector<8x512xbf16>, vector<8x512xf32> -> vector<8x512xf32>
    %175 = arith.addf %164, %174 : vector<8x512xf32>
    %c496_i32_59 = arith.constant 496 : i32
    %176 = tpu.dynamic_rotate %101 by %c496_i32_59 dim 1 : vector<8x512xf32>, i32 -> vector<8x512xf32>
    %c7_60 = arith.constant 7 : index
    %c0_61 = arith.constant 0 : index
    %177 = vector.load %arg2[%c7_60, %c0_61] : memref<9x512xf32, #tpu.memory_space<vmem>>, vector<1x512xf32>
    %178 = vector.shape_cast %177 : vector<1x512xf32> to vector<512xf32>
    %179 = vector.shape_cast %178 : vector<512xf32> to vector<1x512xf32>
    %180 = vector.broadcast %179 : vector<1x512xf32> to vector<8x512xf32>
    %181 = arith.mulf %176, %180 : vector<8x512xf32>
    %182 = vector.extract_strided_slice %103 {offsets = [7, 0, 0], sizes = [1, 8, 8], strides = [1, 1, 1]} : vector<9x8x8xbf16> to vector<1x8x8xbf16>
    %183 = vector.shape_cast %182 : vector<1x8x8xbf16> to vector<8x8xbf16>
    %184 = arith.truncf %181 : vector<8x512xf32> to vector<8x512xbf16>
    %cst_62 = arith.constant dense<0.000000e+00> : vector<8x512xf32>
    %185 = tpu.matmul %183, %184, %cst_62 {dimension_numbers = #tpu.dot_dimension_numbers<[1], [0], [0], [1], [0, 0, 1, 1], [], []>} : vector<8x8xbf16>, vector<8x512xbf16>, vector<8x512xf32> -> vector<8x512xf32>
    %186 = arith.addf %175, %185 : vector<8x512xf32>
    %c495_i32_63 = arith.constant 495 : i32
    %187 = tpu.dynamic_rotate %101 by %c495_i32_63 dim 1 : vector<8x512xf32>, i32 -> vector<8x512xf32>
    %c8_64 = arith.constant 8 : index
    %c0_65 = arith.constant 0 : index
    %188 = vector.load %arg2[%c8_64, %c0_65] : memref<9x512xf32, #tpu.memory_space<vmem>>, vector<1x512xf32>
    %189 = vector.shape_cast %188 : vector<1x512xf32> to vector<512xf32>
    %190 = vector.shape_cast %189 : vector<512xf32> to vector<1x512xf32>
    %191 = vector.broadcast %190 : vector<1x512xf32> to vector<8x512xf32>
    %192 = arith.mulf %187, %191 : vector<8x512xf32>
    %193 = vector.extract_strided_slice %103 {offsets = [8, 0, 0], sizes = [1, 8, 8], strides = [1, 1, 1]} : vector<9x8x8xbf16> to vector<1x8x8xbf16>
    %194 = vector.shape_cast %193 : vector<1x8x8xbf16> to vector<8x8xbf16>
    %195 = arith.truncf %192 : vector<8x512xf32> to vector<8x512xbf16>
    %cst_66 = arith.constant dense<0.000000e+00> : vector<8x512xf32>
    %196 = tpu.matmul %194, %195, %cst_66 {dimension_numbers = #tpu.dot_dimension_numbers<[1], [0], [0], [1], [0, 0, 1, 1], [], []>} : vector<8x8xbf16>, vector<8x512xbf16>, vector<8x512xf32> -> vector<8x512xf32>
    %197 = arith.addf %186, %196 : vector<8x512xf32>
    %198 = vector.broadcast %105 : vector<8x1xf32> to vector<8x512xf32>
    %199 = arith.addf %197, %198 : vector<8x512xf32>
    %c0_67 = arith.constant 0 : index
    %c0_68 = arith.constant 0 : index
    %c0_69 = arith.constant 0 : index
    %200 = vector.load %arg8[%c0_67, %c0_68, %c0_69] : memref<2x8x2xf32, #tpu.memory_space<vmem>>, vector<1x8x2xf32>
    %201 = vector.shape_cast %200 : vector<1x8x2xf32> to vector<8x2xf32>
    %c0_70 = arith.constant 0 : index
    %c0_71 = arith.constant 0 : index
    %c0_72 = arith.constant 0 : index
    %202 = vector.load %arg9[%c0_70, %c0_71, %c0_72] : memref<2x1x2xf32, #tpu.memory_space<vmem>>, vector<1x1x2xf32>
    %203 = vector.shape_cast %202 : vector<1x1x2xf32> to vector<1x2xf32>
    %c0_73 = arith.constant 0 : index
    %c0_74 = arith.constant 0 : index
    %c0_75 = arith.constant 0 : index
    %204 = vector.load %arg10[%c0_73, %c0_74, %c0_75] : memref<2x8x2xf32, #tpu.memory_space<vmem>>, vector<1x8x2xf32>
    %205 = vector.shape_cast %204 : vector<1x8x2xf32> to vector<8x2xf32>
    %c0_76 = arith.constant 0 : index
    %c0_77 = arith.constant 0 : index
    %c0_78 = arith.constant 0 : index
    %206 = vector.load %arg11[%c0_76, %c0_77, %c0_78] : memref<2x8x1xf32, #tpu.memory_space<vmem>>, vector<1x8x1xf32>
    %207 = vector.shape_cast %206 : vector<1x8x1xf32> to vector<8x1xf32>
    %cst_79 = arith.constant 0.000000e+00 : f32
    %208 = vector.broadcast %cst_79 : f32 to vector<8x512xf32>
    %c0_80 = arith.constant 0 : index
    %c0_81 = arith.constant 0 : index
    %209 = vector.load %arg3[%c0_80, %c0_81] : memref<2x512xf32, #tpu.memory_space<vmem>>, vector<1x512xf32>
    %210 = vector.shape_cast %209 : vector<1x512xf32> to vector<512xf32>
    %211 = vector.shape_cast %210 : vector<512xf32> to vector<1x512xf32>
    %212 = vector.broadcast %211 : vector<1x512xf32> to vector<8x512xf32>
    %213 = arith.mulf %199, %212 : vector<8x512xf32>
    %cst_82 = arith.constant dense<0.000000e+00> : vector<8xf32>
    %214 = vector.multi_reduction <add>, %213, %cst_82 [1] : vector<8x512xf32> to vector<8xf32>
    %215 = vector.shape_cast %214 : vector<8xf32> to vector<8x1xf32>
    %cst_83 = arith.constant 3.906250e-03 : f32
    %216 = vector.broadcast %cst_83 : f32 to vector<8x1xf32>
    %217 = arith.mulf %215, %216 : vector<8x1xf32>
    %218 = vector.broadcast %217 : vector<8x1xf32> to vector<8x2xf32>
    %219 = arith.mulf %201, %218 : vector<8x2xf32>
    %cst_84 = arith.constant dense<0.000000e+00> : vector<2xf32>
    %220 = vector.multi_reduction <add>, %219, %cst_84 [0] : vector<8x2xf32> to vector<2xf32>
    %221 = vector.shape_cast %220 : vector<2xf32> to vector<1x2xf32>
    %222 = arith.addf %221, %203 : vector<1x2xf32>
    %cst_85 = arith.constant 0.000000e+00 : f32
    %223 = vector.broadcast %cst_85 : f32 to vector<1x2xf32>
    %224 = arith.maximumf %222, %223 : vector<1x2xf32>
    %225 = vector.broadcast %224 : vector<1x2xf32> to vector<8x2xf32>
    %226 = arith.mulf %205, %225 : vector<8x2xf32>
    %cst_86 = arith.constant dense<0.000000e+00> : vector<8xf32>
    %227 = vector.multi_reduction <add>, %226, %cst_86 [1] : vector<8x2xf32> to vector<8xf32>
    %228 = vector.shape_cast %227 : vector<8xf32> to vector<8x1xf32>
    %229 = arith.addf %228, %207 : vector<8x1xf32>
    %230 = arith.negf %229 : vector<8x1xf32>
    %231 = math.exp %230 : vector<8x1xf32>
    %cst_87 = arith.constant 1.000000e+00 : f32
    %232 = vector.broadcast %cst_87 : f32 to vector<8x1xf32>
    %233 = arith.addf %232, %231 : vector<8x1xf32>
    %234 = arith.divf %232, %233 : vector<8x1xf32>
    %235 = vector.shape_cast %210 : vector<512xf32> to vector<1x512xf32>
    %236 = vector.broadcast %234 : vector<8x1xf32> to vector<8x512xf32>
    %237 = vector.broadcast %235 : vector<1x512xf32> to vector<8x512xf32>
    %238 = arith.mulf %236, %237 : vector<8x512xf32>
    %239 = arith.addf %208, %238 : vector<8x512xf32>
    %c1_88 = arith.constant 1 : index
    %c0_89 = arith.constant 0 : index
    %240 = vector.load %arg3[%c1_88, %c0_89] : memref<2x512xf32, #tpu.memory_space<vmem>>, vector<1x512xf32>
    %241 = vector.shape_cast %240 : vector<1x512xf32> to vector<512xf32>
    %242 = vector.shape_cast %241 : vector<512xf32> to vector<1x512xf32>
    %243 = vector.broadcast %242 : vector<1x512xf32> to vector<8x512xf32>
    %244 = arith.mulf %199, %243 : vector<8x512xf32>
    %cst_90 = arith.constant dense<0.000000e+00> : vector<8xf32>
    %245 = vector.multi_reduction <add>, %244, %cst_90 [1] : vector<8x512xf32> to vector<8xf32>
    %246 = vector.shape_cast %245 : vector<8xf32> to vector<8x1xf32>
    %cst_91 = arith.constant 3.906250e-03 : f32
    %247 = vector.broadcast %cst_91 : f32 to vector<8x1xf32>
    %248 = arith.mulf %246, %247 : vector<8x1xf32>
    %249 = vector.broadcast %248 : vector<8x1xf32> to vector<8x2xf32>
    %250 = arith.mulf %201, %249 : vector<8x2xf32>
    %cst_92 = arith.constant dense<0.000000e+00> : vector<2xf32>
    %251 = vector.multi_reduction <add>, %250, %cst_92 [0] : vector<8x2xf32> to vector<2xf32>
    %252 = vector.shape_cast %251 : vector<2xf32> to vector<1x2xf32>
    %253 = arith.addf %252, %203 : vector<1x2xf32>
    %cst_93 = arith.constant 0.000000e+00 : f32
    %254 = vector.broadcast %cst_93 : f32 to vector<1x2xf32>
    %255 = arith.maximumf %253, %254 : vector<1x2xf32>
    %256 = vector.broadcast %255 : vector<1x2xf32> to vector<8x2xf32>
    %257 = arith.mulf %205, %256 : vector<8x2xf32>
    %cst_94 = arith.constant dense<0.000000e+00> : vector<8xf32>
    %258 = vector.multi_reduction <add>, %257, %cst_94 [1] : vector<8x2xf32> to vector<8xf32>
    %259 = vector.shape_cast %258 : vector<8xf32> to vector<8x1xf32>
    %260 = arith.addf %259, %207 : vector<8x1xf32>
    %261 = arith.negf %260 : vector<8x1xf32>
    %262 = math.exp %261 : vector<8x1xf32>
    %cst_95 = arith.constant 1.000000e+00 : f32
    %263 = vector.broadcast %cst_95 : f32 to vector<8x1xf32>
    %264 = arith.addf %263, %262 : vector<8x1xf32>
    %265 = arith.divf %263, %264 : vector<8x1xf32>
    %266 = vector.shape_cast %241 : vector<512xf32> to vector<1x512xf32>
    %267 = vector.broadcast %265 : vector<8x1xf32> to vector<8x512xf32>
    %268 = vector.broadcast %266 : vector<1x512xf32> to vector<8x512xf32>
    %269 = arith.mulf %267, %268 : vector<8x512xf32>
    %270 = arith.addf %239, %269 : vector<8x512xf32>
    %271 = arith.mulf %199, %270 : vector<8x512xf32>
    %c0_96 = arith.constant 0 : index
    %c0_97 = arith.constant 0 : index
    %c0_98 = arith.constant 0 : index
    %272 = vector.load %arg12[%c0_96, %c0_97, %c0_98] : memref<2x2x8xf32, #tpu.memory_space<vmem>>, vector<1x2x8xf32>
    %273 = vector.shape_cast %272 : vector<1x2x8xf32> to vector<2x8xf32>
    %cst_99 = arith.constant dense<0.000000e+00> : vector<2x512xf32>
    %274 = tpu.matmul %273, %271, %cst_99 {dimension_numbers = #tpu.dot_dimension_numbers<[1], [0], [0], [1], [0, 0, 1, 1], [], []>} : vector<2x8xf32>, vector<8x512xf32>, vector<2x512xf32> -> vector<2x512xf32>
    %c0_100 = arith.constant 0 : index
    %c0_101 = arith.constant 0 : index
    %c0_102 = arith.constant 0 : index
    %275 = vector.load %arg13[%c0_100, %c0_101, %c0_102] : memref<2x2x1xf32, #tpu.memory_space<vmem>>, vector<1x2x1xf32>
    %276 = vector.shape_cast %275 : vector<1x2x1xf32> to vector<2x1xf32>
    %277 = vector.broadcast %276 : vector<2x1xf32> to vector<2x512xf32>
    %278 = arith.addf %274, %277 : vector<2x512xf32>
    %cst_103 = arith.constant 0.000000e+00 : f32
    %279 = vector.broadcast %cst_103 : f32 to vector<2x512xf32>
    %280 = arith.maximumf %278, %279 : vector<2x512xf32>
    %c0_104 = arith.constant 0 : index
    %c0_105 = arith.constant 0 : index
    %c0_106 = arith.constant 0 : index
    %281 = vector.load %arg14[%c0_104, %c0_105, %c0_106] : memref<2x1x2xf32, #tpu.memory_space<vmem>>, vector<1x1x2xf32>
    %282 = vector.shape_cast %281 : vector<1x1x2xf32> to vector<1x2xf32>
    %cst_107 = arith.constant dense<0.000000e+00> : vector<1x512xf32>
    %283 = tpu.matmul %282, %280, %cst_107 {dimension_numbers = #tpu.dot_dimension_numbers<[1], [0], [0], [1], [0, 0, 1, 1], [], []>} : vector<1x2xf32>, vector<2x512xf32>, vector<1x512xf32> -> vector<1x512xf32>
    %c0_108 = arith.constant 0 : index
    %c0_109 = arith.constant 0 : index
    %c0_110 = arith.constant 0 : index
    %284 = vector.load %arg15[%c0_108, %c0_109, %c0_110] : memref<2x1x1xf32, #tpu.memory_space<vmem>>, vector<1x1x1xf32>
    %285 = vector.shape_cast %284 : vector<1x1x1xf32> to vector<1x1xf32>
    %286 = vector.broadcast %285 : vector<1x1xf32> to vector<1x512xf32>
    %287 = arith.addf %283, %286 : vector<1x512xf32>
    %288 = arith.negf %287 : vector<1x512xf32>
    %289 = math.exp %288 : vector<1x512xf32>
    %cst_111 = arith.constant 1.000000e+00 : f32
    %290 = vector.broadcast %cst_111 : f32 to vector<1x512xf32>
    %291 = arith.addf %290, %289 : vector<1x512xf32>
    %292 = arith.divf %290, %291 : vector<1x512xf32>
    %293 = vector.broadcast %292 : vector<1x512xf32> to vector<8x512xf32>
    %294 = arith.mulf %271, %293 : vector<8x512xf32>
    %295 = arith.addf %294, %1 : vector<8x512xf32>
    %c1_112 = arith.constant 1 : index
    %c0_113 = arith.constant 0 : index
    %c0_114 = arith.constant 0 : index
    %c0_115 = arith.constant 0 : index
    %296 = vector.load %arg4[%c1_112, %c0_113, %c0_114, %c0_115] : memref<2x9x8x8xbf16, #tpu.memory_space<vmem>>, vector<1x9x8x8xbf16>
    %297 = vector.shape_cast %296 : vector<1x9x8x8xbf16> to vector<9x8x8xbf16>
    %c1_116 = arith.constant 1 : index
    %c0_117 = arith.constant 0 : index
    %c0_118 = arith.constant 0 : index
    %298 = vector.load %arg5[%c1_116, %c0_117, %c0_118] : memref<2x8x1xf32, #tpu.memory_space<vmem>>, vector<1x8x1xf32>
    %299 = vector.shape_cast %298 : vector<1x8x1xf32> to vector<8x1xf32>
    %c17_i32_119 = arith.constant 17 : i32
    %300 = tpu.dynamic_rotate %295 by %c17_i32_119 dim 1 : vector<8x512xf32>, i32 -> vector<8x512xf32>
    %c0_120 = arith.constant 0 : index
    %c0_121 = arith.constant 0 : index
    %301 = vector.load %arg2[%c0_120, %c0_121] : memref<9x512xf32, #tpu.memory_space<vmem>>, vector<1x512xf32>
    %302 = vector.shape_cast %301 : vector<1x512xf32> to vector<512xf32>
    %303 = vector.shape_cast %302 : vector<512xf32> to vector<1x512xf32>
    %304 = vector.broadcast %303 : vector<1x512xf32> to vector<8x512xf32>
    %305 = arith.mulf %300, %304 : vector<8x512xf32>
    %306 = vector.extract_strided_slice %297 {offsets = [0, 0, 0], sizes = [1, 8, 8], strides = [1, 1, 1]} : vector<9x8x8xbf16> to vector<1x8x8xbf16>
    %307 = vector.shape_cast %306 : vector<1x8x8xbf16> to vector<8x8xbf16>
    %308 = arith.truncf %305 : vector<8x512xf32> to vector<8x512xbf16>
    %cst_122 = arith.constant dense<0.000000e+00> : vector<8x512xf32>
    %309 = tpu.matmul %307, %308, %cst_122 {dimension_numbers = #tpu.dot_dimension_numbers<[1], [0], [0], [1], [0, 0, 1, 1], [], []>} : vector<8x8xbf16>, vector<8x512xbf16>, vector<8x512xf32> -> vector<8x512xf32>
    %c16_i32_123 = arith.constant 16 : i32
    %310 = tpu.dynamic_rotate %295 by %c16_i32_123 dim 1 : vector<8x512xf32>, i32 -> vector<8x512xf32>
    %c1_124 = arith.constant 1 : index
    %c0_125 = arith.constant 0 : index
    %311 = vector.load %arg2[%c1_124, %c0_125] : memref<9x512xf32, #tpu.memory_space<vmem>>, vector<1x512xf32>
    %312 = vector.shape_cast %311 : vector<1x512xf32> to vector<512xf32>
    %313 = vector.shape_cast %312 : vector<512xf32> to vector<1x512xf32>
    %314 = vector.broadcast %313 : vector<1x512xf32> to vector<8x512xf32>
    %315 = arith.mulf %310, %314 : vector<8x512xf32>
    %316 = vector.extract_strided_slice %297 {offsets = [1, 0, 0], sizes = [1, 8, 8], strides = [1, 1, 1]} : vector<9x8x8xbf16> to vector<1x8x8xbf16>
    %317 = vector.shape_cast %316 : vector<1x8x8xbf16> to vector<8x8xbf16>
    %318 = arith.truncf %315 : vector<8x512xf32> to vector<8x512xbf16>
    %cst_126 = arith.constant dense<0.000000e+00> : vector<8x512xf32>
    %319 = tpu.matmul %317, %318, %cst_126 {dimension_numbers = #tpu.dot_dimension_numbers<[1], [0], [0], [1], [0, 0, 1, 1], [], []>} : vector<8x8xbf16>, vector<8x512xbf16>, vector<8x512xf32> -> vector<8x512xf32>
    %320 = arith.addf %309, %319 : vector<8x512xf32>
    %c15_i32_127 = arith.constant 15 : i32
    %321 = tpu.dynamic_rotate %295 by %c15_i32_127 dim 1 : vector<8x512xf32>, i32 -> vector<8x512xf32>
    %c2_128 = arith.constant 2 : index
    %c0_129 = arith.constant 0 : index
    %322 = vector.load %arg2[%c2_128, %c0_129] : memref<9x512xf32, #tpu.memory_space<vmem>>, vector<1x512xf32>
    %323 = vector.shape_cast %322 : vector<1x512xf32> to vector<512xf32>
    %324 = vector.shape_cast %323 : vector<512xf32> to vector<1x512xf32>
    %325 = vector.broadcast %324 : vector<1x512xf32> to vector<8x512xf32>
    %326 = arith.mulf %321, %325 : vector<8x512xf32>
    %327 = vector.extract_strided_slice %297 {offsets = [2, 0, 0], sizes = [1, 8, 8], strides = [1, 1, 1]} : vector<9x8x8xbf16> to vector<1x8x8xbf16>
    %328 = vector.shape_cast %327 : vector<1x8x8xbf16> to vector<8x8xbf16>
    %329 = arith.truncf %326 : vector<8x512xf32> to vector<8x512xbf16>
    %cst_130 = arith.constant dense<0.000000e+00> : vector<8x512xf32>
    %330 = tpu.matmul %328, %329, %cst_130 {dimension_numbers = #tpu.dot_dimension_numbers<[1], [0], [0], [1], [0, 0, 1, 1], [], []>} : vector<8x8xbf16>, vector<8x512xbf16>, vector<8x512xf32> -> vector<8x512xf32>
    %331 = arith.addf %320, %330 : vector<8x512xf32>
    %c1_i32_131 = arith.constant 1 : i32
    %332 = tpu.dynamic_rotate %295 by %c1_i32_131 dim 1 : vector<8x512xf32>, i32 -> vector<8x512xf32>
    %c3_132 = arith.constant 3 : index
    %c0_133 = arith.constant 0 : index
    %333 = vector.load %arg2[%c3_132, %c0_133] : memref<9x512xf32, #tpu.memory_space<vmem>>, vector<1x512xf32>
    %334 = vector.shape_cast %333 : vector<1x512xf32> to vector<512xf32>
    %335 = vector.shape_cast %334 : vector<512xf32> to vector<1x512xf32>
    %336 = vector.broadcast %335 : vector<1x512xf32> to vector<8x512xf32>
    %337 = arith.mulf %332, %336 : vector<8x512xf32>
    %338 = vector.extract_strided_slice %297 {offsets = [3, 0, 0], sizes = [1, 8, 8], strides = [1, 1, 1]} : vector<9x8x8xbf16> to vector<1x8x8xbf16>
    %339 = vector.shape_cast %338 : vector<1x8x8xbf16> to vector<8x8xbf16>
    %340 = arith.truncf %337 : vector<8x512xf32> to vector<8x512xbf16>
    %cst_134 = arith.constant dense<0.000000e+00> : vector<8x512xf32>
    %341 = tpu.matmul %339, %340, %cst_134 {dimension_numbers = #tpu.dot_dimension_numbers<[1], [0], [0], [1], [0, 0, 1, 1], [], []>} : vector<8x8xbf16>, vector<8x512xbf16>, vector<8x512xf32> -> vector<8x512xf32>
    %342 = arith.addf %331, %341 : vector<8x512xf32>
    %343 = vector.extract_strided_slice %297 {offsets = [4, 0, 0], sizes = [1, 8, 8], strides = [1, 1, 1]} : vector<9x8x8xbf16> to vector<1x8x8xbf16>
    %344 = vector.shape_cast %343 : vector<1x8x8xbf16> to vector<8x8xbf16>
    %345 = arith.truncf %295 : vector<8x512xf32> to vector<8x512xbf16>
    %cst_135 = arith.constant dense<0.000000e+00> : vector<8x512xf32>
    %346 = tpu.matmul %344, %345, %cst_135 {dimension_numbers = #tpu.dot_dimension_numbers<[1], [0], [0], [1], [0, 0, 1, 1], [], []>} : vector<8x8xbf16>, vector<8x512xbf16>, vector<8x512xf32> -> vector<8x512xf32>
    %347 = arith.addf %342, %346 : vector<8x512xf32>
    %c511_i32_136 = arith.constant 511 : i32
    %348 = tpu.dynamic_rotate %295 by %c511_i32_136 dim 1 : vector<8x512xf32>, i32 -> vector<8x512xf32>
    %c5_137 = arith.constant 5 : index
    %c0_138 = arith.constant 0 : index
    %349 = vector.load %arg2[%c5_137, %c0_138] : memref<9x512xf32, #tpu.memory_space<vmem>>, vector<1x512xf32>
    %350 = vector.shape_cast %349 : vector<1x512xf32> to vector<512xf32>
    %351 = vector.shape_cast %350 : vector<512xf32> to vector<1x512xf32>
    %352 = vector.broadcast %351 : vector<1x512xf32> to vector<8x512xf32>
    %353 = arith.mulf %348, %352 : vector<8x512xf32>
    %354 = vector.extract_strided_slice %297 {offsets = [5, 0, 0], sizes = [1, 8, 8], strides = [1, 1, 1]} : vector<9x8x8xbf16> to vector<1x8x8xbf16>
    %355 = vector.shape_cast %354 : vector<1x8x8xbf16> to vector<8x8xbf16>
    %356 = arith.truncf %353 : vector<8x512xf32> to vector<8x512xbf16>
    %cst_139 = arith.constant dense<0.000000e+00> : vector<8x512xf32>
    %357 = tpu.matmul %355, %356, %cst_139 {dimension_numbers = #tpu.dot_dimension_numbers<[1], [0], [0], [1], [0, 0, 1, 1], [], []>} : vector<8x8xbf16>, vector<8x512xbf16>, vector<8x512xf32> -> vector<8x512xf32>
    %358 = arith.addf %347, %357 : vector<8x512xf32>
    %c497_i32_140 = arith.constant 497 : i32
    %359 = tpu.dynamic_rotate %295 by %c497_i32_140 dim 1 : vector<8x512xf32>, i32 -> vector<8x512xf32>
    %c6_141 = arith.constant 6 : index
    %c0_142 = arith.constant 0 : index
    %360 = vector.load %arg2[%c6_141, %c0_142] : memref<9x512xf32, #tpu.memory_space<vmem>>, vector<1x512xf32>
    %361 = vector.shape_cast %360 : vector<1x512xf32> to vector<512xf32>
    %362 = vector.shape_cast %361 : vector<512xf32> to vector<1x512xf32>
    %363 = vector.broadcast %362 : vector<1x512xf32> to vector<8x512xf32>
    %364 = arith.mulf %359, %363 : vector<8x512xf32>
    %365 = vector.extract_strided_slice %297 {offsets = [6, 0, 0], sizes = [1, 8, 8], strides = [1, 1, 1]} : vector<9x8x8xbf16> to vector<1x8x8xbf16>
    %366 = vector.shape_cast %365 : vector<1x8x8xbf16> to vector<8x8xbf16>
    %367 = arith.truncf %364 : vector<8x512xf32> to vector<8x512xbf16>
    %cst_143 = arith.constant dense<0.000000e+00> : vector<8x512xf32>
    %368 = tpu.matmul %366, %367, %cst_143 {dimension_numbers = #tpu.dot_dimension_numbers<[1], [0], [0], [1], [0, 0, 1, 1], [], []>} : vector<8x8xbf16>, vector<8x512xbf16>, vector<8x512xf32> -> vector<8x512xf32>
    %369 = arith.addf %358, %368 : vector<8x512xf32>
    %c496_i32_144 = arith.constant 496 : i32
    %370 = tpu.dynamic_rotate %295 by %c496_i32_144 dim 1 : vector<8x512xf32>, i32 -> vector<8x512xf32>
    %c7_145 = arith.constant 7 : index
    %c0_146 = arith.constant 0 : index
    %371 = vector.load %arg2[%c7_145, %c0_146] : memref<9x512xf32, #tpu.memory_space<vmem>>, vector<1x512xf32>
    %372 = vector.shape_cast %371 : vector<1x512xf32> to vector<512xf32>
    %373 = vector.shape_cast %372 : vector<512xf32> to vector<1x512xf32>
    %374 = vector.broadcast %373 : vector<1x512xf32> to vector<8x512xf32>
    %375 = arith.mulf %370, %374 : vector<8x512xf32>
    %376 = vector.extract_strided_slice %297 {offsets = [7, 0, 0], sizes = [1, 8, 8], strides = [1, 1, 1]} : vector<9x8x8xbf16> to vector<1x8x8xbf16>
    %377 = vector.shape_cast %376 : vector<1x8x8xbf16> to vector<8x8xbf16>
    %378 = arith.truncf %375 : vector<8x512xf32> to vector<8x512xbf16>
    %cst_147 = arith.constant dense<0.000000e+00> : vector<8x512xf32>
    %379 = tpu.matmul %377, %378, %cst_147 {dimension_numbers = #tpu.dot_dimension_numbers<[1], [0], [0], [1], [0, 0, 1, 1], [], []>} : vector<8x8xbf16>, vector<8x512xbf16>, vector<8x512xf32> -> vector<8x512xf32>
    %380 = arith.addf %369, %379 : vector<8x512xf32>
    %c495_i32_148 = arith.constant 495 : i32
    %381 = tpu.dynamic_rotate %295 by %c495_i32_148 dim 1 : vector<8x512xf32>, i32 -> vector<8x512xf32>
    %c8_149 = arith.constant 8 : index
    %c0_150 = arith.constant 0 : index
    %382 = vector.load %arg2[%c8_149, %c0_150] : memref<9x512xf32, #tpu.memory_space<vmem>>, vector<1x512xf32>
    %383 = vector.shape_cast %382 : vector<1x512xf32> to vector<512xf32>
    %384 = vector.shape_cast %383 : vector<512xf32> to vector<1x512xf32>
    %385 = vector.broadcast %384 : vector<1x512xf32> to vector<8x512xf32>
    %386 = arith.mulf %381, %385 : vector<8x512xf32>
    %387 = vector.extract_strided_slice %297 {offsets = [8, 0, 0], sizes = [1, 8, 8], strides = [1, 1, 1]} : vector<9x8x8xbf16> to vector<1x8x8xbf16>
    %388 = vector.shape_cast %387 : vector<1x8x8xbf16> to vector<8x8xbf16>
    %389 = arith.truncf %386 : vector<8x512xf32> to vector<8x512xbf16>
    %cst_151 = arith.constant dense<0.000000e+00> : vector<8x512xf32>
    %390 = tpu.matmul %388, %389, %cst_151 {dimension_numbers = #tpu.dot_dimension_numbers<[1], [0], [0], [1], [0, 0, 1, 1], [], []>} : vector<8x8xbf16>, vector<8x512xbf16>, vector<8x512xf32> -> vector<8x512xf32>
    %391 = arith.addf %380, %390 : vector<8x512xf32>
    %392 = vector.broadcast %299 : vector<8x1xf32> to vector<8x512xf32>
    %393 = arith.addf %391, %392 : vector<8x512xf32>
    %cst_152 = arith.constant 0.000000e+00 : f32
    %394 = vector.broadcast %cst_152 : f32 to vector<8x512xf32>
    %395 = arith.maximumf %393, %394 : vector<8x512xf32>
    %c1_153 = arith.constant 1 : index
    %c0_154 = arith.constant 0 : index
    %c0_155 = arith.constant 0 : index
    %c0_156 = arith.constant 0 : index
    %396 = vector.load %arg6[%c1_153, %c0_154, %c0_155, %c0_156] : memref<2x9x8x8xbf16, #tpu.memory_space<vmem>>, vector<1x9x8x8xbf16>
    %397 = vector.shape_cast %396 : vector<1x9x8x8xbf16> to vector<9x8x8xbf16>
    %c1_157 = arith.constant 1 : index
    %c0_158 = arith.constant 0 : index
    %c0_159 = arith.constant 0 : index
    %398 = vector.load %arg7[%c1_157, %c0_158, %c0_159] : memref<2x8x1xf32, #tpu.memory_space<vmem>>, vector<1x8x1xf32>
    %399 = vector.shape_cast %398 : vector<1x8x1xf32> to vector<8x1xf32>
    %c17_i32_160 = arith.constant 17 : i32
    %400 = tpu.dynamic_rotate %395 by %c17_i32_160 dim 1 : vector<8x512xf32>, i32 -> vector<8x512xf32>
    %c0_161 = arith.constant 0 : index
    %c0_162 = arith.constant 0 : index
    %401 = vector.load %arg2[%c0_161, %c0_162] : memref<9x512xf32, #tpu.memory_space<vmem>>, vector<1x512xf32>
    %402 = vector.shape_cast %401 : vector<1x512xf32> to vector<512xf32>
    %403 = vector.shape_cast %402 : vector<512xf32> to vector<1x512xf32>
    %404 = vector.broadcast %403 : vector<1x512xf32> to vector<8x512xf32>
    %405 = arith.mulf %400, %404 : vector<8x512xf32>
    %406 = vector.extract_strided_slice %397 {offsets = [0, 0, 0], sizes = [1, 8, 8], strides = [1, 1, 1]} : vector<9x8x8xbf16> to vector<1x8x8xbf16>
    %407 = vector.shape_cast %406 : vector<1x8x8xbf16> to vector<8x8xbf16>
    %408 = arith.truncf %405 : vector<8x512xf32> to vector<8x512xbf16>
    %cst_163 = arith.constant dense<0.000000e+00> : vector<8x512xf32>
    %409 = tpu.matmul %407, %408, %cst_163 {dimension_numbers = #tpu.dot_dimension_numbers<[1], [0], [0], [1], [0, 0, 1, 1], [], []>} : vector<8x8xbf16>, vector<8x512xbf16>, vector<8x512xf32> -> vector<8x512xf32>
    %c16_i32_164 = arith.constant 16 : i32
    %410 = tpu.dynamic_rotate %395 by %c16_i32_164 dim 1 : vector<8x512xf32>, i32 -> vector<8x512xf32>
    %c1_165 = arith.constant 1 : index
    %c0_166 = arith.constant 0 : index
    %411 = vector.load %arg2[%c1_165, %c0_166] : memref<9x512xf32, #tpu.memory_space<vmem>>, vector<1x512xf32>
    %412 = vector.shape_cast %411 : vector<1x512xf32> to vector<512xf32>
    %413 = vector.shape_cast %412 : vector<512xf32> to vector<1x512xf32>
    %414 = vector.broadcast %413 : vector<1x512xf32> to vector<8x512xf32>
    %415 = arith.mulf %410, %414 : vector<8x512xf32>
    %416 = vector.extract_strided_slice %397 {offsets = [1, 0, 0], sizes = [1, 8, 8], strides = [1, 1, 1]} : vector<9x8x8xbf16> to vector<1x8x8xbf16>
    %417 = vector.shape_cast %416 : vector<1x8x8xbf16> to vector<8x8xbf16>
    %418 = arith.truncf %415 : vector<8x512xf32> to vector<8x512xbf16>
    %cst_167 = arith.constant dense<0.000000e+00> : vector<8x512xf32>
    %419 = tpu.matmul %417, %418, %cst_167 {dimension_numbers = #tpu.dot_dimension_numbers<[1], [0], [0], [1], [0, 0, 1, 1], [], []>} : vector<8x8xbf16>, vector<8x512xbf16>, vector<8x512xf32> -> vector<8x512xf32>
    %420 = arith.addf %409, %419 : vector<8x512xf32>
    %c15_i32_168 = arith.constant 15 : i32
    %421 = tpu.dynamic_rotate %395 by %c15_i32_168 dim 1 : vector<8x512xf32>, i32 -> vector<8x512xf32>
    %c2_169 = arith.constant 2 : index
    %c0_170 = arith.constant 0 : index
    %422 = vector.load %arg2[%c2_169, %c0_170] : memref<9x512xf32, #tpu.memory_space<vmem>>, vector<1x512xf32>
    %423 = vector.shape_cast %422 : vector<1x512xf32> to vector<512xf32>
    %424 = vector.shape_cast %423 : vector<512xf32> to vector<1x512xf32>
    %425 = vector.broadcast %424 : vector<1x512xf32> to vector<8x512xf32>
    %426 = arith.mulf %421, %425 : vector<8x512xf32>
    %427 = vector.extract_strided_slice %397 {offsets = [2, 0, 0], sizes = [1, 8, 8], strides = [1, 1, 1]} : vector<9x8x8xbf16> to vector<1x8x8xbf16>
    %428 = vector.shape_cast %427 : vector<1x8x8xbf16> to vector<8x8xbf16>
    %429 = arith.truncf %426 : vector<8x512xf32> to vector<8x512xbf16>
    %cst_171 = arith.constant dense<0.000000e+00> : vector<8x512xf32>
    %430 = tpu.matmul %428, %429, %cst_171 {dimension_numbers = #tpu.dot_dimension_numbers<[1], [0], [0], [1], [0, 0, 1, 1], [], []>} : vector<8x8xbf16>, vector<8x512xbf16>, vector<8x512xf32> -> vector<8x512xf32>
    %431 = arith.addf %420, %430 : vector<8x512xf32>
    %c1_i32_172 = arith.constant 1 : i32
    %432 = tpu.dynamic_rotate %395 by %c1_i32_172 dim 1 : vector<8x512xf32>, i32 -> vector<8x512xf32>
    %c3_173 = arith.constant 3 : index
    %c0_174 = arith.constant 0 : index
    %433 = vector.load %arg2[%c3_173, %c0_174] : memref<9x512xf32, #tpu.memory_space<vmem>>, vector<1x512xf32>
    %434 = vector.shape_cast %433 : vector<1x512xf32> to vector<512xf32>
    %435 = vector.shape_cast %434 : vector<512xf32> to vector<1x512xf32>
    %436 = vector.broadcast %435 : vector<1x512xf32> to vector<8x512xf32>
    %437 = arith.mulf %432, %436 : vector<8x512xf32>
    %438 = vector.extract_strided_slice %397 {offsets = [3, 0, 0], sizes = [1, 8, 8], strides = [1, 1, 1]} : vector<9x8x8xbf16> to vector<1x8x8xbf16>
    %439 = vector.shape_cast %438 : vector<1x8x8xbf16> to vector<8x8xbf16>
    %440 = arith.truncf %437 : vector<8x512xf32> to vector<8x512xbf16>
    %cst_175 = arith.constant dense<0.000000e+00> : vector<8x512xf32>
    %441 = tpu.matmul %439, %440, %cst_175 {dimension_numbers = #tpu.dot_dimension_numbers<[1], [0], [0], [1], [0, 0, 1, 1], [], []>} : vector<8x8xbf16>, vector<8x512xbf16>, vector<8x512xf32> -> vector<8x512xf32>
    %442 = arith.addf %431, %441 : vector<8x512xf32>
    %443 = vector.extract_strided_slice %397 {offsets = [4, 0, 0], sizes = [1, 8, 8], strides = [1, 1, 1]} : vector<9x8x8xbf16> to vector<1x8x8xbf16>
    %444 = vector.shape_cast %443 : vector<1x8x8xbf16> to vector<8x8xbf16>
    %445 = arith.truncf %395 : vector<8x512xf32> to vector<8x512xbf16>
    %cst_176 = arith.constant dense<0.000000e+00> : vector<8x512xf32>
    %446 = tpu.matmul %444, %445, %cst_176 {dimension_numbers = #tpu.dot_dimension_numbers<[1], [0], [0], [1], [0, 0, 1, 1], [], []>} : vector<8x8xbf16>, vector<8x512xbf16>, vector<8x512xf32> -> vector<8x512xf32>
    %447 = arith.addf %442, %446 : vector<8x512xf32>
    %c511_i32_177 = arith.constant 511 : i32
    %448 = tpu.dynamic_rotate %395 by %c511_i32_177 dim 1 : vector<8x512xf32>, i32 -> vector<8x512xf32>
    %c5_178 = arith.constant 5 : index
    %c0_179 = arith.constant 0 : index
    %449 = vector.load %arg2[%c5_178, %c0_179] : memref<9x512xf32, #tpu.memory_space<vmem>>, vector<1x512xf32>
    %450 = vector.shape_cast %449 : vector<1x512xf32> to vector<512xf32>
    %451 = vector.shape_cast %450 : vector<512xf32> to vector<1x512xf32>
    %452 = vector.broadcast %451 : vector<1x512xf32> to vector<8x512xf32>
    %453 = arith.mulf %448, %452 : vector<8x512xf32>
    %454 = vector.extract_strided_slice %397 {offsets = [5, 0, 0], sizes = [1, 8, 8], strides = [1, 1, 1]} : vector<9x8x8xbf16> to vector<1x8x8xbf16>
    %455 = vector.shape_cast %454 : vector<1x8x8xbf16> to vector<8x8xbf16>
    %456 = arith.truncf %453 : vector<8x512xf32> to vector<8x512xbf16>
    %cst_180 = arith.constant dense<0.000000e+00> : vector<8x512xf32>
    %457 = tpu.matmul %455, %456, %cst_180 {dimension_numbers = #tpu.dot_dimension_numbers<[1], [0], [0], [1], [0, 0, 1, 1], [], []>} : vector<8x8xbf16>, vector<8x512xbf16>, vector<8x512xf32> -> vector<8x512xf32>
    %458 = arith.addf %447, %457 : vector<8x512xf32>
    %c497_i32_181 = arith.constant 497 : i32
    %459 = tpu.dynamic_rotate %395 by %c497_i32_181 dim 1 : vector<8x512xf32>, i32 -> vector<8x512xf32>
    %c6_182 = arith.constant 6 : index
    %c0_183 = arith.constant 0 : index
    %460 = vector.load %arg2[%c6_182, %c0_183] : memref<9x512xf32, #tpu.memory_space<vmem>>, vector<1x512xf32>
    %461 = vector.shape_cast %460 : vector<1x512xf32> to vector<512xf32>
    %462 = vector.shape_cast %461 : vector<512xf32> to vector<1x512xf32>
    %463 = vector.broadcast %462 : vector<1x512xf32> to vector<8x512xf32>
    %464 = arith.mulf %459, %463 : vector<8x512xf32>
    %465 = vector.extract_strided_slice %397 {offsets = [6, 0, 0], sizes = [1, 8, 8], strides = [1, 1, 1]} : vector<9x8x8xbf16> to vector<1x8x8xbf16>
    %466 = vector.shape_cast %465 : vector<1x8x8xbf16> to vector<8x8xbf16>
    %467 = arith.truncf %464 : vector<8x512xf32> to vector<8x512xbf16>
    %cst_184 = arith.constant dense<0.000000e+00> : vector<8x512xf32>
    %468 = tpu.matmul %466, %467, %cst_184 {dimension_numbers = #tpu.dot_dimension_numbers<[1], [0], [0], [1], [0, 0, 1, 1], [], []>} : vector<8x8xbf16>, vector<8x512xbf16>, vector<8x512xf32> -> vector<8x512xf32>
    %469 = arith.addf %458, %468 : vector<8x512xf32>
    %c496_i32_185 = arith.constant 496 : i32
    %470 = tpu.dynamic_rotate %395 by %c496_i32_185 dim 1 : vector<8x512xf32>, i32 -> vector<8x512xf32>
    %c7_186 = arith.constant 7 : index
    %c0_187 = arith.constant 0 : index
    %471 = vector.load %arg2[%c7_186, %c0_187] : memref<9x512xf32, #tpu.memory_space<vmem>>, vector<1x512xf32>
    %472 = vector.shape_cast %471 : vector<1x512xf32> to vector<512xf32>
    %473 = vector.shape_cast %472 : vector<512xf32> to vector<1x512xf32>
    %474 = vector.broadcast %473 : vector<1x512xf32> to vector<8x512xf32>
    %475 = arith.mulf %470, %474 : vector<8x512xf32>
    %476 = vector.extract_strided_slice %397 {offsets = [7, 0, 0], sizes = [1, 8, 8], strides = [1, 1, 1]} : vector<9x8x8xbf16> to vector<1x8x8xbf16>
    %477 = vector.shape_cast %476 : vector<1x8x8xbf16> to vector<8x8xbf16>
    %478 = arith.truncf %475 : vector<8x512xf32> to vector<8x512xbf16>
    %cst_188 = arith.constant dense<0.000000e+00> : vector<8x512xf32>
    %479 = tpu.matmul %477, %478, %cst_188 {dimension_numbers = #tpu.dot_dimension_numbers<[1], [0], [0], [1], [0, 0, 1, 1], [], []>} : vector<8x8xbf16>, vector<8x512xbf16>, vector<8x512xf32> -> vector<8x512xf32>
    %480 = arith.addf %469, %479 : vector<8x512xf32>
    %c495_i32_189 = arith.constant 495 : i32
    %481 = tpu.dynamic_rotate %395 by %c495_i32_189 dim 1 : vector<8x512xf32>, i32 -> vector<8x512xf32>
    %c8_190 = arith.constant 8 : index
    %c0_191 = arith.constant 0 : index
    %482 = vector.load %arg2[%c8_190, %c0_191] : memref<9x512xf32, #tpu.memory_space<vmem>>, vector<1x512xf32>
    %483 = vector.shape_cast %482 : vector<1x512xf32> to vector<512xf32>
    %484 = vector.shape_cast %483 : vector<512xf32> to vector<1x512xf32>
    %485 = vector.broadcast %484 : vector<1x512xf32> to vector<8x512xf32>
    %486 = arith.mulf %481, %485 : vector<8x512xf32>
    %487 = vector.extract_strided_slice %397 {offsets = [8, 0, 0], sizes = [1, 8, 8], strides = [1, 1, 1]} : vector<9x8x8xbf16> to vector<1x8x8xbf16>
    %488 = vector.shape_cast %487 : vector<1x8x8xbf16> to vector<8x8xbf16>
    %489 = arith.truncf %486 : vector<8x512xf32> to vector<8x512xbf16>
    %cst_192 = arith.constant dense<0.000000e+00> : vector<8x512xf32>
    %490 = tpu.matmul %488, %489, %cst_192 {dimension_numbers = #tpu.dot_dimension_numbers<[1], [0], [0], [1], [0, 0, 1, 1], [], []>} : vector<8x8xbf16>, vector<8x512xbf16>, vector<8x512xf32> -> vector<8x512xf32>
    %491 = arith.addf %480, %490 : vector<8x512xf32>
    %492 = vector.broadcast %399 : vector<8x1xf32> to vector<8x512xf32>
    %493 = arith.addf %491, %492 : vector<8x512xf32>
    %c1_193 = arith.constant 1 : index
    %c0_194 = arith.constant 0 : index
    %c0_195 = arith.constant 0 : index
    %494 = vector.load %arg8[%c1_193, %c0_194, %c0_195] : memref<2x8x2xf32, #tpu.memory_space<vmem>>, vector<1x8x2xf32>
    %495 = vector.shape_cast %494 : vector<1x8x2xf32> to vector<8x2xf32>
    %c1_196 = arith.constant 1 : index
    %c0_197 = arith.constant 0 : index
    %c0_198 = arith.constant 0 : index
    %496 = vector.load %arg9[%c1_196, %c0_197, %c0_198] : memref<2x1x2xf32, #tpu.memory_space<vmem>>, vector<1x1x2xf32>
    %497 = vector.shape_cast %496 : vector<1x1x2xf32> to vector<1x2xf32>
    %c1_199 = arith.constant 1 : index
    %c0_200 = arith.constant 0 : index
    %c0_201 = arith.constant 0 : index
    %498 = vector.load %arg10[%c1_199, %c0_200, %c0_201] : memref<2x8x2xf32, #tpu.memory_space<vmem>>, vector<1x8x2xf32>
    %499 = vector.shape_cast %498 : vector<1x8x2xf32> to vector<8x2xf32>
    %c1_202 = arith.constant 1 : index
    %c0_203 = arith.constant 0 : index
    %c0_204 = arith.constant 0 : index
    %500 = vector.load %arg11[%c1_202, %c0_203, %c0_204] : memref<2x8x1xf32, #tpu.memory_space<vmem>>, vector<1x8x1xf32>
    %501 = vector.shape_cast %500 : vector<1x8x1xf32> to vector<8x1xf32>
    %cst_205 = arith.constant 0.000000e+00 : f32
    %502 = vector.broadcast %cst_205 : f32 to vector<8x512xf32>
    %c0_206 = arith.constant 0 : index
    %c0_207 = arith.constant 0 : index
    %503 = vector.load %arg3[%c0_206, %c0_207] : memref<2x512xf32, #tpu.memory_space<vmem>>, vector<1x512xf32>
    %504 = vector.shape_cast %503 : vector<1x512xf32> to vector<512xf32>
    %505 = vector.shape_cast %504 : vector<512xf32> to vector<1x512xf32>
    %506 = vector.broadcast %505 : vector<1x512xf32> to vector<8x512xf32>
    %507 = arith.mulf %493, %506 : vector<8x512xf32>
    %cst_208 = arith.constant dense<0.000000e+00> : vector<8xf32>
    %508 = vector.multi_reduction <add>, %507, %cst_208 [1] : vector<8x512xf32> to vector<8xf32>
    %509 = vector.shape_cast %508 : vector<8xf32> to vector<8x1xf32>
    %cst_209 = arith.constant 3.906250e-03 : f32
    %510 = vector.broadcast %cst_209 : f32 to vector<8x1xf32>
    %511 = arith.mulf %509, %510 : vector<8x1xf32>
    %512 = vector.broadcast %511 : vector<8x1xf32> to vector<8x2xf32>
    %513 = arith.mulf %495, %512 : vector<8x2xf32>
    %cst_210 = arith.constant dense<0.000000e+00> : vector<2xf32>
    %514 = vector.multi_reduction <add>, %513, %cst_210 [0] : vector<8x2xf32> to vector<2xf32>
    %515 = vector.shape_cast %514 : vector<2xf32> to vector<1x2xf32>
    %516 = arith.addf %515, %497 : vector<1x2xf32>
    %cst_211 = arith.constant 0.000000e+00 : f32
    %517 = vector.broadcast %cst_211 : f32 to vector<1x2xf32>
    %518 = arith.maximumf %516, %517 : vector<1x2xf32>
    %519 = vector.broadcast %518 : vector<1x2xf32> to vector<8x2xf32>
    %520 = arith.mulf %499, %519 : vector<8x2xf32>
    %cst_212 = arith.constant dense<0.000000e+00> : vector<8xf32>
    %521 = vector.multi_reduction <add>, %520, %cst_212 [1] : vector<8x2xf32> to vector<8xf32>
    %522 = vector.shape_cast %521 : vector<8xf32> to vector<8x1xf32>
    %523 = arith.addf %522, %501 : vector<8x1xf32>
    %524 = arith.negf %523 : vector<8x1xf32>
    %525 = math.exp %524 : vector<8x1xf32>
    %cst_213 = arith.constant 1.000000e+00 : f32
    %526 = vector.broadcast %cst_213 : f32 to vector<8x1xf32>
    %527 = arith.addf %526, %525 : vector<8x1xf32>
    %528 = arith.divf %526, %527 : vector<8x1xf32>
    %529 = vector.shape_cast %504 : vector<512xf32> to vector<1x512xf32>
    %530 = vector.broadcast %528 : vector<8x1xf32> to vector<8x512xf32>
    %531 = vector.broadcast %529 : vector<1x512xf32> to vector<8x512xf32>
    %532 = arith.mulf %530, %531 : vector<8x512xf32>
    %533 = arith.addf %502, %532 : vector<8x512xf32>
    %c1_214 = arith.constant 1 : index
    %c0_215 = arith.constant 0 : index
    %534 = vector.load %arg3[%c1_214, %c0_215] : memref<2x512xf32, #tpu.memory_space<vmem>>, vector<1x512xf32>
    %535 = vector.shape_cast %534 : vector<1x512xf32> to vector<512xf32>
    %536 = vector.shape_cast %535 : vector<512xf32> to vector<1x512xf32>
    %537 = vector.broadcast %536 : vector<1x512xf32> to vector<8x512xf32>
    %538 = arith.mulf %493, %537 : vector<8x512xf32>
    %cst_216 = arith.constant dense<0.000000e+00> : vector<8xf32>
    %539 = vector.multi_reduction <add>, %538, %cst_216 [1] : vector<8x512xf32> to vector<8xf32>
    %540 = vector.shape_cast %539 : vector<8xf32> to vector<8x1xf32>
    %cst_217 = arith.constant 3.906250e-03 : f32
    %541 = vector.broadcast %cst_217 : f32 to vector<8x1xf32>
    %542 = arith.mulf %540, %541 : vector<8x1xf32>
    %543 = vector.broadcast %542 : vector<8x1xf32> to vector<8x2xf32>
    %544 = arith.mulf %495, %543 : vector<8x2xf32>
    %cst_218 = arith.constant dense<0.000000e+00> : vector<2xf32>
    %545 = vector.multi_reduction <add>, %544, %cst_218 [0] : vector<8x2xf32> to vector<2xf32>
    %546 = vector.shape_cast %545 : vector<2xf32> to vector<1x2xf32>
    %547 = arith.addf %546, %497 : vector<1x2xf32>
    %cst_219 = arith.constant 0.000000e+00 : f32
    %548 = vector.broadcast %cst_219 : f32 to vector<1x2xf32>
    %549 = arith.maximumf %547, %548 : vector<1x2xf32>
    %550 = vector.broadcast %549 : vector<1x2xf32> to vector<8x2xf32>
    %551 = arith.mulf %499, %550 : vector<8x2xf32>
    %cst_220 = arith.constant dense<0.000000e+00> : vector<8xf32>
    %552 = vector.multi_reduction <add>, %551, %cst_220 [1] : vector<8x2xf32> to vector<8xf32>
    %553 = vector.shape_cast %552 : vector<8xf32> to vector<8x1xf32>
    %554 = arith.addf %553, %501 : vector<8x1xf32>
    %555 = arith.negf %554 : vector<8x1xf32>
    %556 = math.exp %555 : vector<8x1xf32>
    %cst_221 = arith.constant 1.000000e+00 : f32
    %557 = vector.broadcast %cst_221 : f32 to vector<8x1xf32>
    %558 = arith.addf %557, %556 : vector<8x1xf32>
    %559 = arith.divf %557, %558 : vector<8x1xf32>
    %560 = vector.shape_cast %535 : vector<512xf32> to vector<1x512xf32>
    %561 = vector.broadcast %559 : vector<8x1xf32> to vector<8x512xf32>
    %562 = vector.broadcast %560 : vector<1x512xf32> to vector<8x512xf32>
    %563 = arith.mulf %561, %562 : vector<8x512xf32>
    %564 = arith.addf %533, %563 : vector<8x512xf32>
    %565 = arith.mulf %493, %564 : vector<8x512xf32>
    %c1_222 = arith.constant 1 : index
    %c0_223 = arith.constant 0 : index
    %c0_224 = arith.constant 0 : index
    %566 = vector.load %arg12[%c1_222, %c0_223, %c0_224] : memref<2x2x8xf32, #tpu.memory_space<vmem>>, vector<1x2x8xf32>
    %567 = vector.shape_cast %566 : vector<1x2x8xf32> to vector<2x8xf32>
    %cst_225 = arith.constant dense<0.000000e+00> : vector<2x512xf32>
    %568 = tpu.matmul %567, %565, %cst_225 {dimension_numbers = #tpu.dot_dimension_numbers<[1], [0], [0], [1], [0, 0, 1, 1], [], []>} : vector<2x8xf32>, vector<8x512xf32>, vector<2x512xf32> -> vector<2x512xf32>
    %c1_226 = arith.constant 1 : index
    %c0_227 = arith.constant 0 : index
    %c0_228 = arith.constant 0 : index
    %569 = vector.load %arg13[%c1_226, %c0_227, %c0_228] : memref<2x2x1xf32, #tpu.memory_space<vmem>>, vector<1x2x1xf32>
    %570 = vector.shape_cast %569 : vector<1x2x1xf32> to vector<2x1xf32>
    %571 = vector.broadcast %570 : vector<2x1xf32> to vector<2x512xf32>
    %572 = arith.addf %568, %571 : vector<2x512xf32>
    %cst_229 = arith.constant 0.000000e+00 : f32
    %573 = vector.broadcast %cst_229 : f32 to vector<2x512xf32>
    %574 = arith.maximumf %572, %573 : vector<2x512xf32>
    %c1_230 = arith.constant 1 : index
    %c0_231 = arith.constant 0 : index
    %c0_232 = arith.constant 0 : index
    %575 = vector.load %arg14[%c1_230, %c0_231, %c0_232] : memref<2x1x2xf32, #tpu.memory_space<vmem>>, vector<1x1x2xf32>
    %576 = vector.shape_cast %575 : vector<1x1x2xf32> to vector<1x2xf32>
    %cst_233 = arith.constant dense<0.000000e+00> : vector<1x512xf32>
    %577 = tpu.matmul %576, %574, %cst_233 {dimension_numbers = #tpu.dot_dimension_numbers<[1], [0], [0], [1], [0, 0, 1, 1], [], []>} : vector<1x2xf32>, vector<2x512xf32>, vector<1x512xf32> -> vector<1x512xf32>
    %c1_234 = arith.constant 1 : index
    %c0_235 = arith.constant 0 : index
    %c0_236 = arith.constant 0 : index
    %578 = vector.load %arg15[%c1_234, %c0_235, %c0_236] : memref<2x1x1xf32, #tpu.memory_space<vmem>>, vector<1x1x1xf32>
    %579 = vector.shape_cast %578 : vector<1x1x1xf32> to vector<1x1xf32>
    %580 = vector.broadcast %579 : vector<1x1xf32> to vector<1x512xf32>
    %581 = arith.addf %577, %580 : vector<1x512xf32>
    %582 = arith.negf %581 : vector<1x512xf32>
    %583 = math.exp %582 : vector<1x512xf32>
    %cst_237 = arith.constant 1.000000e+00 : f32
    %584 = vector.broadcast %cst_237 : f32 to vector<1x512xf32>
    %585 = arith.addf %584, %583 : vector<1x512xf32>
    %586 = arith.divf %584, %585 : vector<1x512xf32>
    %587 = vector.broadcast %586 : vector<1x512xf32> to vector<8x512xf32>
    %588 = arith.mulf %565, %587 : vector<8x512xf32>
    %589 = arith.addf %588, %295 : vector<8x512xf32>
    %c0_238 = arith.constant 0 : index
    %c0_239 = arith.constant 0 : index
    %c0_240 = arith.constant 0 : index
    %590 = vector.load %arg16[%c0_238, %c0_239, %c0_240] : memref<1x8x512xf32, #tpu.memory_space<vmem>>, vector<1x8x512xf32>
    %591 = vector.shape_cast %590 : vector<1x8x512xf32> to vector<8x512xf32>
    %592 = vector.shape_cast %589 : vector<8x512xf32> to vector<1x8x512xf32>
    tpu.vector_store %arg16[%c0_238, %c0_239, %c0_240], %592 {strides = array<i32>} : memref<1x8x512xf32, #tpu.memory_space<vmem>>, vector<1x8x512xf32>,
    return
  }
  func.func @transform_0(%arg0: i32) -> (i32, i32, i32) {
    %c0_i32 = arith.constant 0 : i32
    %c0_i32_0 = arith.constant 0 : i32
    %c0_i32_1 = arith.constant 0 : i32
    return %arg0, %c0_i32, %c0_i32_0 : i32, i32, i32
  }
  func.func @transform_1(%arg0: i32) -> (i32, i32) {
    %c0_i32 = arith.constant 0 : i32
    %c0_i32_0 = arith.constant 0 : i32
    %c0_i32_1 = arith.constant 0 : i32
    return %c0_i32, %c0_i32_0 : i32, i32
  }
  func.func @transform_2(%arg0: i32) -> (i32, i32) {
    %c0_i32 = arith.constant 0 : i32
    %c0_i32_0 = arith.constant 0 : i32
    %c0_i32_1 = arith.constant 0 : i32
    return %c0_i32, %c0_i32_0 : i32, i32
  }
  func.func @transform_3(%arg0: i32) -> (i32, i32, i32, i32) {
    %c0_i32 = arith.constant 0 : i32
    %c0_i32_0 = arith.constant 0 : i32
    %c0_i32_1 = arith.constant 0 : i32
    %c0_i32_2 = arith.constant 0 : i32
    %c0_i32_3 = arith.constant 0 : i32
    return %c0_i32, %c0_i32_0, %c0_i32_1, %c0_i32_2 : i32, i32, i32, i32
  }
  func.func @transform_4(%arg0: i32) -> (i32, i32, i32) {
    %c0_i32 = arith.constant 0 : i32
    %c0_i32_0 = arith.constant 0 : i32
    %c0_i32_1 = arith.constant 0 : i32
    %c0_i32_2 = arith.constant 0 : i32
    return %c0_i32, %c0_i32_0, %c0_i32_1 : i32, i32, i32
  }
  func.func @transform_5(%arg0: i32) -> (i32, i32, i32, i32) {
    %c0_i32 = arith.constant 0 : i32
    %c0_i32_0 = arith.constant 0 : i32
    %c0_i32_1 = arith.constant 0 : i32
    %c0_i32_2 = arith.constant 0 : i32
    %c0_i32_3 = arith.constant 0 : i32
    return %c0_i32, %c0_i32_0, %c0_i32_1, %c0_i32_2 : i32, i32, i32, i32
  }
  func.func @transform_6(%arg0: i32) -> (i32, i32, i32) {
    %c0_i32 = arith.constant 0 : i32
    %c0_i32_0 = arith.constant 0 : i32
    %c0_i32_1 = arith.constant 0 : i32
    %c0_i32_2 = arith.constant 0 : i32
    return %c0_i32, %c0_i32_0, %c0_i32_1 : i32, i32, i32
  }
  func.func @transform_7(%arg0: i32) -> (i32, i32, i32) {
    %c0_i32 = arith.constant 0 : i32
    %c0_i32_0 = arith.constant 0 : i32
    %c0_i32_1 = arith.constant 0 : i32
    %c0_i32_2 = arith.constant 0 : i32
    return %c0_i32, %c0_i32_0, %c0_i32_1 : i32, i32, i32
  }
  func.func @transform_8(%arg0: i32) -> (i32, i32, i32) {
    %c0_i32 = arith.constant 0 : i32
    %c0_i32_0 = arith.constant 0 : i32
    %c0_i32_1 = arith.constant 0 : i32
    %c0_i32_2 = arith.constant 0 : i32
    return %c0_i32, %c0_i32_0, %c0_i32_1 : i32, i32, i32
  }
  func.func @transform_9(%arg0: i32) -> (i32, i32, i32) {
    %c0_i32 = arith.constant 0 : i32
    %c0_i32_0 = arith.constant 0 : i32
    %c0_i32_1 = arith.constant 0 : i32
    %c0_i32_2 = arith.constant 0 : i32
    return %c0_i32, %c0_i32_0, %c0_i32_1 : i32, i32, i32
  }
  func.func @transform_10(%arg0: i32) -> (i32, i32, i32) {
    %c0_i32 = arith.constant 0 : i32
    %c0_i32_0 = arith.constant 0 : i32
    %c0_i32_1 = arith.constant 0 : i32
    %c0_i32_2 = arith.constant 0 : i32
    return %c0_i32, %c0_i32_0, %c0_i32_1 : i32, i32, i32
  }
  func.func @transform_11(%arg0: i32) -> (i32, i32, i32) {
    %c0_i32 = arith.constant 0 : i32
    %c0_i32_0 = arith.constant 0 : i32
    %c0_i32_1 = arith.constant 0 : i32
    %c0_i32_2 = arith.constant 0 : i32
    return %c0_i32, %c0_i32_0, %c0_i32_1 : i32, i32, i32
  }
  func.func @transform_12(%arg0: i32) -> (i32, i32, i32) {
    %c0_i32 = arith.constant 0 : i32
    %c0_i32_0 = arith.constant 0 : i32
    %c0_i32_1 = arith.constant 0 : i32
    %c0_i32_2 = arith.constant 0 : i32
    return %c0_i32, %c0_i32_0, %c0_i32_1 : i32, i32, i32
  }
  func.func @transform_13(%arg0: i32) -> (i32, i32, i32) {
    %c0_i32 = arith.constant 0 : i32
    %c0_i32_0 = arith.constant 0 : i32
    %c0_i32_1 = arith.constant 0 : i32
    %c0_i32_2 = arith.constant 0 : i32
    return %c0_i32, %c0_i32_0, %c0_i32_1 : i32, i32, i32
  }
  func.func @transform_14(%arg0: i32) -> (i32, i32, i32) {
    %c0_i32 = arith.constant 0 : i32
    %c0_i32_0 = arith.constant 0 : i32
    %c0_i32_1 = arith.constant 0 : i32
    %c0_i32_2 = arith.constant 0 : i32
    return %c0_i32, %c0_i32_0, %c0_i32_1 : i32, i32, i32
  }
  func.func @transform_15(%arg0: i32) -> (i32, i32, i32) {
    %c0_i32 = arith.constant 0 : i32
    %c0_i32_0 = arith.constant 0 : i32
    %c0_i32_1 = arith.constant 0 : i32
    return %arg0, %c0_i32, %c0_i32_0 : i32, i32, i32
  }
}

</mosaic_0001>

<bundles_post_ra>
// kernel: tpu_custom_call.1
= control target key start
LH: loop header
LB: loop body
LE: loop exit
PB: predicated region body
PF: predicated region fallthrough
CT: control target
= control target key end

     0   :  { %s4599_s22 = smov 16   ;;  %s6144_s0 = inlined_call_operand.vmem [shape: f32[1,8,512], index: 0, kind: input, shape index: {}]   ;;  %s6145_s1 = inlined_call_operand.vmem [shape: f32[9,512], index: 1, kind: input, shape index: {}]   ;;  %s6146_s2 = inlined_call_operand.vmem [shape: f32[2,512], index: 2, kind: input, shape index: {}]   ;;  %s6147_s3 = inlined_call_operand.vmem [shape: bf16[2,9,8,8], index: 3, kind: input, shape index: {}]   ;;  %s6148_s4 = inlined_call_operand.vmem [shape: f32[2,8,1], index: 4, kind: input, shape index: {}]   ;;  %s6149_s5 = inlined_call_operand.vmem [shape: bf16[2,9,8,8], index: 5, kind: input, shape index: {}]   ;;  %s6150_s6 = inlined_call_operand.vmem [shape: f32[2,8,1], index: 6, kind: input, shape index: {}]   ;;  %s6151_s7 = inlined_call_operand.vmem [shape: f32[2,8,2], index: 7, kind: input, shape index: {}]   ;;  %s6152_s8 = inlined_call_operand.vmem [shape: f32[2,1,2], index: 8, kind: input, shape index: {}]   ;;  %s6153_s9 = inlined_call_operand.vmem [shape: f32[2,8,2], index: 9, kind: input, shape index: {}]   ;;  %s6154_s10 = inlined_call_operand.vmem [shape: f32[2,8,1], index: 10, kind: input, shape index: {}]   ;;  %s6155_s11 = inlined_call_operand.vmem [shape: f32[2,2,8], index: 11, kind: input, shape index: {}]   ;;  %s6156_s12 = inlined_call_operand.vmem [shape: f32[2,2,1], index: 12, kind: input, shape index: {}]   ;;  %s6157_s13 = inlined_call_operand.vmem [shape: f32[2,1,2], index: 13, kind: input, shape index: {}]   ;;  %s6158_s14 = inlined_call_operand.vmem [shape: f32[2,1,1], index: 14, kind: input, shape index: {}]   ;;  %s6159_s15 = inlined_call_operand.hbm [shape: f32[1,8,512], index: 15, kind: output, shape index: {}]  }
   0x1   :  { %v4692_v0 = vld [vmem:[%s6144_s0 + $0x18] sm:$0xff]  ;;  %v4697_v1 = vld [vmem:[%s6144_s0 + $0x8] sm:$0xff] }
   0x2   :  { %105 = vrot.lane.b32.xlu1 %v4692_v0, %s4599_s22  ;;  %101 = vrot.lane.b32.xlu0 %v4697_v1, %s4599_s22 }
   0x3   :  { %20 = vsyncpa [#allocation3], 0  ;;  %s4600_s23 = smov 17   ;;  %v4708_v2 = vld [vmem:[%s6144_s0 + $0x10] sm:$0xff]  ;;  %v4713_v3 = vld [vmem:[%s6144_s0] sm:$0xff]  ;;  %s4601_s28 = smov 15   ;;  %v74_v6 = vlaneseq }
   0x4   :  { %68 = vrot.lane.b32.xlu2 %v4697_v1, %s4600_s23  ;;  %s4602_s29 = smov 1   ;;  %s4603_s30 = smov 127   ;;  %v81_v9 = vld [vmem:[%s6145_s1] ss:$8 sm:$0xf]  ;;  %vm135_vm3 = vcmask 1043456  }
   0x5   :  { %s4604_s16 = smov 113   ;;  %s4605_s17 = smov 112   ;;  %v4775_v8 = vand.u32 127, %v74_v6  ;;  %v4781_v12 = vperm.slane %v81_v9, 2  ;;  %v4822_v35 = vperm.slane %v81_v9, 1  ;;  %v4825_v41 = vperm.slane %v81_v9, 0 }
   0x6   :  { %s4606_s18 = smov 111   ;;  %v4292_v14 = vld [vmem:[%s6145_s1 + $0x1] ss:$8 sm:$0xf]  ;;  %v4827_v42 = vperm.slane %v81_v9, 3  ;;  %vm131_vm4 = vcmask 64512  }
   0x7   :  { %vm76_vm0 = vcmp.lt.s32.totalorder %v4775_v8, 17  ;;  %vm107_vm1 = vcmp.lt.s32.totalorder %v4775_v8, 16  ;;  %vm275_vm2 = vcmp.lt.s32.totalorder %v4775_v8, 15  ;;  %v4301_v16 = vld [vmem:[%s6145_s1 + $0x2] ss:$8 sm:$0xf] }
   0x8   :  { %v4796_v18 = vperm.slane %v4292_v14, 0  ;;  %v4798_v19 = vperm.slane %v4292_v14, 1  ;;  %v4800_v20 = vperm.slane %v4292_v14, 2  ;;  %v4802_v21 = vperm.slane %v4292_v14, 3  ;;  %v57_v48 = vld [vmem:[%s6147_s3 + $0x4] sm:$0xf] }
   0x9   :  { %v4804_v25 = vperm.slane %v4301_v16, 1  ;;  %v4850_v61 = vperm.slane %v4301_v16, 2  ;;  %v4852_v62 = vperm.slane %v4301_v16, 0  ;;  %v4858_v9 = vperm.slane %v4301_v16, 3  ;;  %s4283_s21 = sshll.u32 %s6159_s15, 4  ;;  %s4284_s21 = int_to_ptr.hbm [resolvable:$true] %s4283_s21 }
   0xa   :  { %103 = vrot.lane.b32.xlu0 %v4708_v2, %s4599_s22  ;;  %99 = vrot.lane.b32.xlu1 %v4713_v3, %s4599_s22  ;;  %vm378_vm5 = vcmp.lt.s32.totalorder %v4775_v8, 1  ;;  %vm556_vm6 = vcmp.lt.s32.totalorder %v4775_v8, 127  ;;  %vm6178_vm7 = vcmp.lt.s32.totalorder %v4775_v8, 113  ;;  %vm6177_vm8 = vcmp.lt.s32.totalorder %v4775_v8, 112 }
   0xb   :  { %vm6176_vm9 = vcmp.lt.s32.totalorder %v4775_v8, 111  ;;  %vm1812_vm10 = vcmask 15360  }
   0xc   :  { %70 = vrot.lane.b32.xlu2 %v4708_v2, %s4600_s23 }
  0x12   :  { %66 = vrot.lane.b32.xlu1 %v4713_v3, %s4600_s23  ;;  %72 = vrot.lane.b32.xlu0 %v4692_v0, %s4600_s23 }
  0x14   :  { %269 = vrot.lane.b32.xlu2 %v4697_v1, %s4601_s28 }
  0x1a   :  { %271 = vrot.lane.b32.xlu0 %v4708_v2, %s4601_s28  ;;  %273 = vrot.lane.b32.xlu1 %v4692_v0, %s4601_s28 }
  0x1c   :  { %267 = vrot.lane.b32.xlu2 %v4713_v3, %s4601_s28 }
  0x22   :  { %372 = vrot.lane.b32.xlu0 %v4697_v1, %s4602_s29  ;;  %374 = vrot.lane.b32.xlu1 %v4708_v2, %s4602_s29 }
  0x24   :  { %376 = vrot.lane.b32.xlu2 %v4692_v0, %s4602_s29 }
  0x2a   :  { %370 = vrot.lane.b32.xlu0 %v4713_v3, %s4602_s29  ;;  %552 = vrot.lane.b32.xlu1 %v4708_v2, %s4603_s30 }
  0x2c   :  { %554 = vrot.lane.b32.xlu2 %v4692_v0, %s4603_s30 }
  0x32   :  { %550 = vrot.lane.b32.xlu1 %v4697_v1, %s4603_s30  ;;  %548 = vrot.lane.b32.xlu0 %v4713_v3, %s4603_s30 }
  0x34   :  { %655 = vrot.lane.b32.xlu2 %v4708_v2, %s4604_s16 }
  0x3a   :  { %657 = vrot.lane.b32.xlu0 %v4692_v0, %s4604_s16  ;;  %651 = vrot.lane.b32.xlu1 %v4713_v3, %s4604_s16 }
  0x3c   :  { %653 = vrot.lane.b32.xlu2 %v4697_v1, %s4604_s16 }
  0x42   :  { %758 = vrot.lane.b32.xlu0 %v4708_v2, %s4605_s17  ;;  %760 = vrot.lane.b32.xlu1 %v4692_v0, %s4605_s17 }
  0x44   :  { %754 = vrot.lane.b32.xlu2 %v4713_v3, %s4605_s17 }
  0x4a   :  { %756 = vrot.lane.b32.xlu0 %v4697_v1, %s4605_s17  ;;  %861 = vrot.lane.b32.xlu1 %v4708_v2, %s4606_s18 }
  0x4c   :  { %863 = vrot.lane.b32.xlu2 %v4692_v0, %s4606_s18 }
  0x52   :  { %859 = vrot.lane.b32.xlu1 %v4697_v1, %s4606_s18  ;;  %857 = vrot.lane.b32.xlu0 %v4713_v3, %s4606_s18 }
  0x5e   :  { %v69_v4 = vpop.permute.xlu2 %68 }
  0x66   :  { %v71_v5 = vpop.permute.xlu2 %70 }
  0x67   :  { %v78_v13 = vsel %vm76_vm0, %v69_v4, %v71_v5 }
  0x68   :  { %v93_v15 = vmul.f32 %v4781_v12, %v78_v13 }
  0x6a   :  { %v97_v24 = vpack.c.bf16 %v93_v15, %v93_v15 }
  0x6c   :  { %v210_v40 = vsel %vm135_vm3, %v97_v24, 0  ;;  %v4306_v24 = vld [vmem:[%s6145_s1 + $0x3] ss:$8 sm:$0xf] }
  0x6e   :  { %v4773_v7 = vpop.permute.xlu2 %269 }
  0x74   :  { %v106_v10 = vpop.permute.xlu1 %105  ;;  %v102_v11 = vpop.permute.xlu0 %101 }
  0x76   :  { %v4794_v17 = vpop.permute.xlu2 %267 }
  0x77   :  { %v278_v26 = vsel %vm275_vm2, %v4794_v17, %v4773_v7 }
  0x78   :  { %v292_v43 = vmul.f32 %v4804_v25, %v278_v26 }
  0x7a   :  { %v296_v54 = vpack.c.bf16 %v292_v43, %v292_v43 }
  0x7c   :  { %v104_v22 = vpop.permute.xlu0 %103  ;;  %v100_v23 = vpop.permute.xlu1 %99  ;;  %v306_v63 = vsel %vm135_vm3, %v296_v54, 0 }
  0x7d   :  { %v108_v27 = vsel %vm107_vm1, %v104_v22, %v106_v10  ;;  %v109_v28 = vsel %vm107_vm1, %v102_v11, %v104_v22  ;;  %v110_v29 = vsel %vm107_vm1, %v100_v23, %v102_v11  ;;  %v111_v30 = vsel %vm107_vm1, %v106_v10, %v100_v23 }
  0x7e   :  { %v123_v31 = vmul.f32 %v4796_v18, %v111_v30  ;;  %v124_v32 = vmul.f32 %v4798_v19, %v110_v29  ;;  %v125_v33 = vmul.f32 %v4800_v20, %v109_v28  ;;  %v126_v34 = vmul.f32 %v4802_v21, %v108_v27 }
  0x7f   :  { %v4875_v28 = vperm.slane %v4306_v24, 2 }
  0x80   :  { %v127_v36 = vpack.c.bf16 %v123_v31, %v123_v31  ;;  %v128_v37 = vpack.c.bf16 %v124_v32, %v124_v32  ;;  %v129_v38 = vpack.c.bf16 %v125_v33, %v125_v33  ;;  %v130_v39 = vpack.c.bf16 %v126_v34, %v126_v34  ;;  %v377_v32 = vpop.permute.xlu2 %376  ;;  %v56_v33 = vld [vmem:[%s6147_s3] sm:$0xf] }
  0x81   :  { %v4880_v31 = vperm.slane %v4306_v24, 3 }
  0x82   :  { %v137_v44 = vsel %vm135_vm3, %v127_v36, 0  ;;  %v140_v45 = vsel %vm135_vm3, %v128_v37, 0  ;;  %v143_v46 = vsel %vm135_vm3, %v129_v38, 0  ;;  %v146_v47 = vsel %vm135_vm3, %v130_v39, 0 }
  0x83   :  { %155 = vmatpush.bf16.msra.mxu0 %v137_v44  ;;  %168 = vmatpush.bf16.msra.mxu1 %v140_v45  ;;  %v4895_v45 = vperm.slane %v4306_v24, 1 }
  0x84   :  { %181 = vmatpush.bf16.msra.mxu2 %v143_v46  ;;  %194 = vmatpush.bf16.msra.mxu3 %v146_v47  ;;  %v67_v49 = vpop.permute.xlu1 %66  ;;  %v73_v50 = vpop.permute.xlu0 %72  ;;  %v4897_v46 = vperm.slane %v4306_v24, 0 }
  0x85   :  { %v79_v51 = vsel %vm76_vm0, %v67_v49, %v69_v4  ;;  %v77_v52 = vsel %vm76_vm0, %v71_v5, %v73_v50  ;;  %v80_v53 = vsel %vm76_vm0, %v73_v50, %v67_v49 }
  0x86   :  { %v92_v55 = vmul.f32 %v4822_v35, %v79_v51  ;;  %4293 = vmatmul.msk.bf16.vlgmr.msra.gmra.mxu0 %vm131_vm4, %v57_v48  ;;  %4294 = vmatmul.msk.bf16.vlgmr.msra.gmra.mxu1 %vm131_vm4, %v57_v48  ;;  %v91_v56 = vmul.f32 %v4825_v41, %v80_v53  ;;  %v94_v57 = vmul.f32 %v4827_v42, %v77_v52 }
  0x87   :  { %4295 = vmatmul.msk.bf16.vlgmr.msra.gmra.mxu2 %vm131_vm4, %v57_v48  ;;  %4296 = vmatmul.msk.bf16.vlgmr.msra.gmra.mxu3 %vm131_vm4, %v57_v48 }
  0x88   :  { %248 = vmatpush.bf16.msrb.mxu2 %v210_v40  ;;  %v96_v58 = vpack.c.bf16 %v92_v55, %v92_v55  ;;  %v95_v59 = vpack.c.bf16 %v91_v56, %v91_v56  ;;  %v98_v60 = vpack.c.bf16 %v94_v57, %v94_v57  ;;  %v473_v57 = vpack.c.bf16 %v4713_v3, %v4713_v3  ;;  %v555_v3 = vpop.permute.xlu2 %554 }
  0x8a   :  { %v207_v4 = vsel %vm135_vm3, %v96_v58, 0  ;;  %v204_v5 = vsel %vm135_vm3, %v95_v59, 0  ;;  %v213_v6 = vsel %vm135_vm3, %v98_v60, 0  ;;  %v474_v58 = vpack.c.bf16 %v4697_v1, %v4697_v1 }
  0x8b   :  { %235 = vmatpush.bf16.msrb.mxu1 %v207_v4  ;;  %222 = vmatpush.bf16.msrb.mxu0 %v204_v5  ;;  %v476_v4 = vpack.c.bf16 %v4692_v0, %v4692_v0  ;;  %v58_v5 = vld [vmem:[%s6147_s3 + $0x8] sm:$0xf]  ;;  %v4315_v0 = vld [vmem:[%s6145_s1 + $0x5] ss:$8 sm:$0xf] }
  0x8c   :  { %261 = vmatpush.bf16.msrb.mxu3 %v213_v6  ;;  %v272_v10 = vpop.permute.xlu0 %271  ;;  %v274_v11 = vpop.permute.xlu1 %273  ;;  %v481_v6 = vsel %vm135_vm3, %v473_v57, 0  ;;  %v484_v1 = vsel %vm135_vm3, %v474_v58, 0  ;;  %v4942_v24 = vperm.slane %v4315_v0, 3 }
  0x8d   :  { %v277_v13 = vsel %vm275_vm2, %v4773_v7, %v272_v10  ;;  %v276_v14 = vsel %vm275_vm2, %v272_v10, %v274_v11  ;;  %v279_v15 = vsel %vm275_vm2, %v274_v11, %v4794_v17  ;;  %v490_v10 = vsel %vm135_vm3, %v476_v4, 0 }
  0x8e   :  { %v293_v16 = vmul.f32 %v4850_v61, %v277_v13  ;;  %v291_v22 = vmul.f32 %v4852_v62, %v279_v15  ;;  %v294_v23 = vmul.f32 %v4858_v9, %v276_v14  ;;  %v4932_v14 = vperm.slane %v4315_v0, 2 }
  0x8f   :  { %334 = vmatpush.bf16.msra.mxu1 %v306_v63  ;;  %v475_v63 = vpack.c.bf16 %v4708_v2, %v4708_v2  ;;  %v4934_v15 = vperm.slane %v4315_v0, 1 }
  0x90   :  { %v297_v26 = vpack.c.bf16 %v293_v16, %v293_v16  ;;  %v295_v27 = vpack.c.bf16 %v291_v22, %v291_v22  ;;  %v298_v7 = vpack.c.bf16 %v294_v23, %v294_v23  ;;  %v4940_v23 = vperm.slane %v4315_v0, 0 }
  0x91   :  { %v487_v2 = vsel %vm135_vm3, %v475_v63, 0 }
  0x92   :  { %v309_v29 = vsel %vm135_vm3, %v297_v26, 0  ;;  %v303_v17 = vsel %vm135_vm3, %v295_v27, 0  ;;  %v312_v30 = vsel %vm135_vm3, %v298_v7, 0 }
  0x93   :  { %347 = vmatpush.bf16.msra.mxu2 %v309_v29  ;;  %321 = vmatpush.bf16.msra.mxu0 %v303_v17  ;;  %v656_v17 = vpop.permute.xlu2 %655 }
  0x94   :  { %v373_v34 = vpop.permute.xlu0 %372  ;;  %360 = vmatpush.bf16.msra.mxu3 %v312_v30  ;;  %v375_v36 = vpop.permute.xlu1 %374 }
  0x95   :  { %v380_v37 = vsel %vm378_vm5, %v373_v34, %v375_v36  ;;  %v379_v38 = vsel %vm378_vm5, %v375_v36, %v377_v32 }
  0x96   :  { %4297 = vmatmul.msk.bf16.vlgmr.msrb.gmra.mxu0 %vm131_vm4, %v56_v33  ;;  %4298 = vmatmul.msk.bf16.vlgmr.msrb.gmra.mxu1 %vm131_vm4, %v56_v33  ;;  %v396_v39 = vmul.f32 %v4875_v28, %v380_v37  ;;  %v397_v40 = vmul.f32 %v4880_v31, %v379_v38  ;;  %v59_v38 = vld [vmem:[%s6147_s3 + $0xc] sm:$0xf] }
  0x97   :  { %4299 = vmatmul.msk.bf16.vlgmr.msrb.gmra.mxu2 %vm131_vm4, %v56_v33  ;;  %4300 = vmatmul.msk.bf16.vlgmr.msrb.gmra.mxu3 %vm131_vm4, %v56_v33 }
  0x98   :  { %v400_v43 = vpack.c.bf16 %v396_v39, %v396_v39  ;;  %v401_v44 = vpack.c.bf16 %v397_v40, %v397_v40 }
  0x9a   :  { %v412_v47 = vsel %vm135_vm3, %v400_v43, 0  ;;  %v415_v48 = vsel %vm135_vm3, %v401_v44, 0 }
  0x9b   :  { %450 = vmatpush.bf16.msrb.mxu2 %v412_v47  ;;  %463 = vmatpush.bf16.msrb.mxu3 %v415_v48  ;;  %v4320_v48 = vld [vmem:[%s6145_s1 + $0x6] ss:$8 sm:$0xf] }
  0x9c   :  { %v371_v49 = vpop.permute.xlu0 %370  ;;  %v553_v52 = vpop.permute.xlu1 %552 }
  0x9d   :  { %v381_v50 = vsel %vm378_vm5, %v371_v49, %v373_v34  ;;  %v382_v51 = vsel %vm378_vm5, %v377_v32, %v371_v49  ;;  %v557_v16 = vsel %vm556_vm6, %v553_v52, %v555_v3  ;;  %v654_v49 = vpop.permute.xlu2 %653 }
  0x9e   :  { %v395_v53 = vmul.f32 %v4895_v45, %v381_v50  ;;  %v394_v54 = vmul.f32 %v4897_v46, %v382_v51  ;;  %v574_v7 = vmul.f32 %v4932_v14, %v557_v16  ;;  %v4967_v51 = vperm.slane %v4320_v48, 2 }
  0xa0   :  { %v399_v55 = vpack.c.bf16 %v395_v53, %v395_v53  ;;  %v398_v56 = vpack.c.bf16 %v394_v54, %v394_v54  ;;  %v578_v33 = vpack.c.bf16 %v574_v7, %v574_v7  ;;  %v661_v54 = vsel %vm6178_vm7, %v654_v49, %v656_v17 }
  0xa2   :  { %v409_v59 = vsel %vm135_vm3, %v399_v55, 0  ;;  %v406_v60 = vsel %vm135_vm3, %v398_v56, 0  ;;  %v590_v43 = vsel %vm135_vm3, %v578_v33, 0  ;;  %v4975_v55 = vperm.slane %v4320_v48, 0 }
  0xa3   :  { %437 = vmatpush.bf16.msrb.mxu1 %v409_v59  ;;  %424 = vmatpush.bf16.msrb.mxu0 %v406_v60  ;;  %v4977_v56 = vperm.slane %v4320_v48, 3 }
  0xa4   :  { %v551_v11 = vpop.permute.xlu1 %550  ;;  %v549_v13 = vpop.permute.xlu0 %548 }
  0xa5   :  { %v558_v22 = vsel %vm556_vm6, %v551_v11, %v553_v52  ;;  %v559_v26 = vsel %vm556_vm6, %v549_v13, %v551_v11  ;;  %v560_v27 = vsel %vm556_vm6, %v555_v3, %v549_v13  ;;  %v4969_v52 = vperm.slane %v4320_v48, 1  ;;  %v755_v7 = vpop.permute.xlu2 %754 }
  0xa6   :  { %4302 = vmatmul.msk.bf16.vlgmr.msra.gmra.mxu0 %vm131_vm4, %v58_v5  ;;  %4303 = vmatmul.msk.bf16.vlgmr.msra.gmra.mxu1 %vm131_vm4, %v58_v5  ;;  %v573_v29 = vmul.f32 %v4934_v15, %v558_v22  ;;  %v572_v30 = vmul.f32 %v4940_v23, %v559_v26  ;;  %v575_v32 = vmul.f32 %v4942_v24, %v560_v27  ;;  %v4325_v22 = vld [vmem:[%s6145_s1 + $0x7] ss:$8 sm:$0xf] }
  0xa7   :  { %4304 = vmatmul.msk.bf16.vlgmr.msra.gmra.mxu2 %vm131_vm4, %v58_v5  ;;  %4305 = vmatmul.msk.bf16.vlgmr.msra.gmra.mxu3 %vm131_vm4, %v58_v5  ;;  %v676_v60 = vmul.f32 %v4969_v52, %v661_v54  ;;  %v5010_v33 = vperm.slane %v4325_v22, 0 }
  0xa8   :  { %499 = vmatpush.bf16.msra.mxu0 %v481_v6  ;;  %512 = vmatpush.bf16.msra.mxu1 %v484_v1  ;;  %v577_v34 = vpack.c.bf16 %v573_v29, %v573_v29  ;;  %v576_v36 = vpack.c.bf16 %v572_v30, %v572_v30  ;;  %v579_v37 = vpack.c.bf16 %v575_v32, %v575_v32  ;;  %v5002_v29 = vperm.slane %v4325_v22, 1 }
  0xa9   :  { %525 = vmatpush.bf16.msra.mxu2 %v487_v2  ;;  %538 = vmatpush.bf16.msra.mxu3 %v490_v10  ;;  %v680_v6 = vpack.c.bf16 %v676_v60, %v676_v60  ;;  %v60_v10 = vld [vmem:[%s6147_s3 + $0x10] sm:$0xf]  ;;  %6205 = vst [vmem:[#allocation7_spill] sm:$0xff] %v5010_v33 }
  0xaa   :  { %v587_v40 = vsel %vm135_vm3, %v577_v34, 0  ;;  %v584_v44 = vsel %vm135_vm3, %v576_v36, 0  ;;  %v593_v47 = vsel %vm135_vm3, %v579_v37, 0  ;;  %6203 = vst [vmem:[#allocation5_spill] sm:$0xff] %v5002_v29  ;;  %v5012_v34 = vperm.slane %v4325_v22, 3 }
  0xab   :  { %v690_v0 = vsel %vm135_vm3, %v680_v6, 0  ;;  %v4330_v60 = vld [vmem:[%s6145_s1 + $0x20] ss:$8 sm:$0xf] }
  0xac   :  { %v658_v39 = vpop.permute.xlu0 %657  ;;  %v652_v50 = vpop.permute.xlu1 %651  ;;  %6206 = vst [vmem:[#allocation8_spill] sm:$0xff] %v5012_v34  ;;  %v5039_v6 = vperm.slane %v4330_v60, 1 }
  0xad   :  { %v660_v53 = vsel %vm6178_vm7, %v656_v17, %v658_v39  ;;  %v662_v57 = vsel %vm6178_vm7, %v652_v50, %v654_v49  ;;  %v663_v58 = vsel %vm6178_vm7, %v658_v39, %v652_v50  ;;  %v5004_v17 = vperm.slane %v4325_v22, 2 }
  0xae   :  { %v677_v59 = vmul.f32 %v4967_v51, %v660_v53  ;;  %v675_v4 = vmul.f32 %v4975_v55, %v662_v57  ;;  %v678_v5 = vmul.f32 %v4977_v56, %v663_v58  ;;  %v61_v53 = vld [vmem:[%s6147_s3 + $0x14] sm:$0xf]  ;;  %6208 = vst [vmem:[#allocation10_spill] sm:$0xff] %v5039_v6 }
  0xaf   :  { %6204 = vst [vmem:[#allocation6_spill] sm:$0xff] %v5004_v17 }
  0xb0   :  { %v681_v3 = vpack.c.bf16 %v677_v59, %v677_v59  ;;  %v679_v1 = vpack.c.bf16 %v675_v4, %v675_v4  ;;  %v682_v2 = vpack.c.bf16 %v678_v5, %v678_v5 }
  0xb2   :  { %v693_v11 = vsel %vm135_vm3, %v681_v3, 0  ;;  %v687_v13 = vsel %vm135_vm3, %v679_v1, 0  ;;  %v696_v16 = vsel %vm135_vm3, %v682_v2, 0  ;;  %v5037_v3 = vperm.slane %v4330_v60, 2 }
  0xb4   :  { %v759_v63 = vpop.permute.xlu0 %758  ;;  %v761_v27 = vpop.permute.xlu1 %760  ;;  %6207 = vst [vmem:[#allocation9_spill] sm:$0xff] %v5037_v3 }
  0xb5   :  { %v763_v32 = vsel %vm6177_vm8, %v759_v63, %v761_v27  ;;  %v766_v37 = vsel %vm6177_vm8, %v761_v27, %v755_v7 }
  0xb6   :  { %4307 = vmatmul.msk.bf16.vlgmr.msrb.gmra.mxu0 %vm131_vm4, %v59_v38  ;;  %4308 = vmatmul.msk.bf16.vlgmr.msrb.gmra.mxu1 %vm131_vm4, %v59_v38  ;;  %v780_v39 = vmul.f32 %v5004_v17, %v763_v32 }
  0xb7   :  { %4309 = vmatmul.msk.bf16.vlgmr.msrb.gmra.mxu2 %vm131_vm4, %v59_v38  ;;  %4310 = vmatmul.msk.bf16.vlgmr.msrb.gmra.mxu3 %vm131_vm4, %v59_v38 }
  0xb8   :  { %615 = vmatpush.bf16.msrb.mxu1 %v587_v40  ;;  %628 = vmatpush.bf16.msrb.mxu2 %v590_v43  ;;  %v781_v43 = vmul.f32 %v5012_v34, %v766_v37  ;;  %v784_v48 = vpack.c.bf16 %v780_v39, %v780_v39  ;;  %v62_v37 = vld [vmem:[%s6147_s3 + $0x18] sm:$0xf] }
  0xb9   :  { %602 = vmatpush.bf16.msrb.mxu0 %v584_v44  ;;  %641 = vmatpush.bf16.msrb.mxu3 %v593_v47 }
  0xba   :  { %v785_v50 = vpack.c.bf16 %v781_v43, %v781_v43  ;;  %v796_v57 = vsel %vm135_vm3, %v784_v48, 0 }
  0xbc   :  { %v757_v26 = vpop.permute.xlu0 %756  ;;  %v862_v44 = vpop.permute.xlu1 %861  ;;  %v799_v59 = vsel %vm135_vm3, %v785_v50, 0 }
  0xbd   :  { %v764_v30 = vsel %vm6177_vm8, %v757_v26, %v759_v63  ;;  %v765_v36 = vsel %vm6177_vm8, %v755_v7, %v757_v26  ;;  %v864_v63 = vpop.permute.xlu2 %863 }
  0xbe   :  { %v779_v38 = vmul.f32 %v5002_v29, %v764_v30  ;;  %v778_v40 = vmul.f32 %v5010_v33, %v765_v36  ;;  %v866_v1 = vsel %vm6176_vm9, %v862_v44, %v864_v63 }
  0xc0   :  { %v783_v47 = vpack.c.bf16 %v779_v38, %v779_v38  ;;  %v782_v49 = vpack.c.bf16 %v778_v40, %v778_v40 }
  0xc2   :  { %v793_v54 = vsel %vm135_vm3, %v783_v47, 0  ;;  %v790_v58 = vsel %vm135_vm3, %v782_v49, 0  ;;  %v64_v49 = vld [vmem:[%s6147_s3 + $0x20] sm:$0xf] }
  0xc4   :  { %v860_v4 = vpop.permute.xlu1 %859  ;;  %v858_v5 = vpop.permute.xlu0 %857 }
  0xc5   :  { %v867_v2 = vsel %vm6176_vm9, %v860_v4, %v862_v44  ;;  %v63_v44 = vld [vmem:[%s6147_s3 + $0x1c] sm:$0xf] }
  0xc6   :  { %4312 = vmatmul.msk.bf16.vlgmr.msra.gmra.mxu1 %vm131_vm4, %v60_v10  ;;  %4311 = vmatmul.msk.bf16.vlgmr.msra.gmra.mxu0 %vm131_vm4, %v60_v10  ;;  %v882_v22 = vmul.f32 %v5039_v6, %v867_v2 }
  0xc7   :  { %4313 = vmatmul.msk.bf16.vlgmr.msra.gmra.mxu2 %vm131_vm4, %v60_v10  ;;  %4314 = vmatmul.msk.bf16.vlgmr.msra.gmra.mxu3 %vm131_vm4, %v60_v10  ;;  %v5045_v10 = vperm.slane %v4330_v60, 0 }
  0xc8   :  { %718 = vmatpush.bf16.msra.mxu1 %v690_v0  ;;  %731 = vmatpush.bf16.msra.mxu2 %v693_v11  ;;  %v5047_v0 = vperm.slane %v4330_v60, 3  ;;  %v868_v11 = vsel %vm6176_vm9, %v858_v5, %v860_v4  ;;  %v886_v30 = vpack.c.bf16 %v882_v22, %v882_v22 }
  0xc9   :  { %705 = vmatpush.bf16.msra.mxu0 %v687_v13  ;;  %744 = vmatpush.bf16.msra.mxu3 %v696_v16  ;;  %6209 = vst [vmem:[#allocation11_spill] sm:$0xff] %v5045_v10  ;;  %v869_v13 = vsel %vm6176_vm9, %v864_v63, %v858_v5  ;;  %v883_v16 = vmul.f32 %v5037_v3, %v866_v1 }
  0xca   :  { %6210 = vst [vmem:[#allocation12_spill] sm:$0xff] %v5047_v0  ;;  %v881_v26 = vmul.f32 %v5045_v10, %v868_v11  ;;  %v884_v27 = vmul.f32 %v5047_v0, %v869_v13  ;;  %v896_v38 = vsel %vm135_vm3, %v886_v30, 0 }
  0xcb   :  { %v887_v7 = vpack.c.bf16 %v883_v16, %v883_v16 }
  0xcc   :  { %v885_v32 = vpack.c.bf16 %v881_v26, %v881_v26  ;;  %v888_v36 = vpack.c.bf16 %v884_v27, %v884_v27 }
  0xcd   :  { %v899_v39 = vsel %vm135_vm3, %v887_v7, 0 }
  0xce   :  { %v893_v40 = vsel %vm135_vm3, %v885_v32, 0  ;;  %v902_v43 = vsel %vm135_vm3, %v888_v36, 0 }
  0xd6   :  { %4316 = vmatmul.msk.bf16.vlgmr.msrb.gmra.mxu0 %vm131_vm4, %v61_v53  ;;  %4317 = vmatmul.msk.bf16.vlgmr.msrb.gmra.mxu1 %vm131_vm4, %v61_v53 }
  0xd7   :  { %4318 = vmatmul.msk.bf16.vlgmr.msrb.gmra.mxu2 %vm131_vm4, %v61_v53  ;;  %4319 = vmatmul.msk.bf16.vlgmr.msrb.gmra.mxu3 %vm131_vm4, %v61_v53 }
  0xd8   :  { %821 = vmatpush.bf16.msrb.mxu1 %v793_v54  ;;  %834 = vmatpush.bf16.msrb.mxu2 %v796_v57 }
  0xd9   :  { %808 = vmatpush.bf16.msrb.mxu0 %v790_v58  ;;  %847 = vmatpush.bf16.msrb.mxu3 %v799_v59  ;;  %v4607_v58 = vmov 0   ;;  %v65_v59 = vld [vmem:[%s6148_s4] sm:$0xff] }
  0xda   :  { %4518 = vset.pattern.permute.xlu2 %v4607_v58  ;;  %4519 = vset.pattern.permute.xlu0 %v4607_v58 }
  0xdb   :  { %962 = vperm.xlu2 %4518, %v65_v59   ;;  %4520 = vset.pattern.permute.xlu1 %v4607_v58 }
  0xe6   :  { %4322 = vmatmul.msk.bf16.vlgmr.msra.gmra.mxu1 %vm131_vm4, %v62_v37  ;;  %4321 = vmatmul.msk.bf16.vlgmr.msra.gmra.mxu0 %vm131_vm4, %v62_v37 }
  0xe7   :  { %4323 = vmatmul.msk.bf16.vlgmr.msra.gmra.mxu2 %vm131_vm4, %v62_v37  ;;  %4324 = vmatmul.msk.bf16.vlgmr.msra.gmra.mxu3 %vm131_vm4, %v62_v37 }
  0xe8   :  { %924 = vmatpush.bf16.msra.mxu1 %v896_v38  ;;  %937 = vmatpush.bf16.msra.mxu2 %v899_v39 }
  0xe9   :  { %911 = vmatpush.bf16.msra.mxu0 %v893_v40  ;;  %950 = vmatpush.bf16.msra.mxu3 %v902_v43 }
  0xf6   :  { %4327 = vmatmul.msk.bf16.vlgmr.msrb.gmra.mxu1 %vm131_vm4, %v63_v44  ;;  %4326 = vmatmul.msk.bf16.vlgmr.msrb.gmra.mxu0 %vm131_vm4, %v63_v44 }
  0xf7   :  { %4328 = vmatmul.msk.bf16.vlgmr.msrb.gmra.mxu2 %vm131_vm4, %v63_v44  ;;  %4329 = vmatmul.msk.bf16.vlgmr.msrb.gmra.mxu3 %vm131_vm4, %v63_v44 }
 0x103   :  { %v157_v47 = vpop.f32.mrf.mxu0  ;;  %v170_v48 = vpop.f32.mrf.mxu1 }
 0x106   :  { %4331 = vmatmul.msk.bf16.vlgmr.msra.gmra.mxu0 %vm131_vm4, %v64_v49  ;;  %4332 = vmatmul.msk.bf16.vlgmr.msra.gmra.mxu1 %vm131_vm4, %v64_v49 }
 0x107   :  { %4333 = vmatmul.msk.bf16.vlgmr.msra.gmra.mxu2 %vm131_vm4, %v64_v49  ;;  %4334 = vmatmul.msk.bf16.vlgmr.msra.gmra.mxu3 %vm131_vm4, %v64_v49 }
 0x10a   :  { %v183_v50 = vpop.f32.mrf.mxu2  ;;  %v196_v53 = vpop.f32.mrf.mxu3 }
 0x10b   :  { %v159_v54 = vpop.f32.mrf.mxu0  ;;  %v172_v57 = vpop.f32.mrf.mxu1 }
 0x112   :  { %v185_v60 = vpop.f32.mrf.mxu2  ;;  %v198_v63 = vpop.f32.mrf.mxu3 }
 0x113   :  { %v224_v4 = vpop.f32.mrf.mxu0  ;;  %v237_v5 = vpop.f32.mrf.mxu1 }
 0x114   :  { %v225_v1 = vadd.f32 %v224_v4, %v157_v47  ;;  %v238_v2 = vadd.f32 %v237_v5, %v170_v48 }
 0x11a   :  { %v250_v11 = vpop.f32.mrf.mxu2  ;;  %v263_v13 = vpop.f32.mrf.mxu3 }
 0x11b   :  { %v251_v16 = vadd.f32 %v250_v11, %v183_v50  ;;  %v264_v22 = vadd.f32 %v263_v13, %v196_v53  ;;  %v226_v26 = vpop.f32.mrf.mxu0  ;;  %v239_v27 = vpop.f32.mrf.mxu1 }
 0x122   :  { %v252_v7 = vpop.f32.mrf.mxu2  ;;  %v265_v30 = vpop.f32.mrf.mxu3 }
 0x123   :  { %v323_v32 = vpop.f32.mrf.mxu0  ;;  %v336_v36 = vpop.f32.mrf.mxu1 }
 0x124   :  { %v366_v37 = vadd.f32 %v323_v32, %v225_v1  ;;  %v367_v38 = vadd.f32 %v336_v36, %v238_v2 }
 0x12a   :  { %v349_v39 = vpop.f32.mrf.mxu2  ;;  %v362_v40 = vpop.f32.mrf.mxu3 }
 0x12b   :  { %v368_v43 = vadd.f32 %v349_v39, %v251_v16  ;;  %v369_v44 = vadd.f32 %v362_v40, %v264_v22  ;;  %v325_v49 = vpop.f32.mrf.mxu0  ;;  %v338_v54 = vpop.f32.mrf.mxu1 }
 0x132   :  { %v351_v47 = vpop.f32.mrf.mxu2  ;;  %v364_v48 = vpop.f32.mrf.mxu3 }
 0x133   :  { %v426_v57 = vpop.f32.mrf.mxu0  ;;  %v439_v58 = vpop.f32.mrf.mxu1 }
 0x134   :  { %v469_v50 = vadd.f32 %v426_v57, %v366_v37  ;;  %v470_v53 = vadd.f32 %v439_v58, %v367_v38 }
 0x13a   :  { %v452_v59 = vpop.f32.mrf.mxu2  ;;  %v465_v60 = vpop.f32.mrf.mxu3 }
 0x13b   :  { %v471_v63 = vadd.f32 %v452_v59, %v368_v43  ;;  %v472_v4 = vadd.f32 %v465_v60, %v369_v44  ;;  %v428_v5 = vpop.f32.mrf.mxu0  ;;  %v441_v11 = vpop.f32.mrf.mxu1 }
 0x142   :  { %v454_v1 = vpop.f32.mrf.mxu2  ;;  %v467_v2 = vpop.f32.mrf.mxu3 }
 0x143   :  { %v501_v13 = vpop.f32.mrf.mxu0  ;;  %v514_v26 = vpop.f32.mrf.mxu1 }
 0x144   :  { %v544_v16 = vadd.f32 %v501_v13, %v469_v50 }
 0x14a   :  { %v527_v22 = vpop.f32.mrf.mxu2  ;;  %v540_v27 = vpop.f32.mrf.mxu3 }
 0x14b   :  { %v503_v7 = vpop.f32.mrf.mxu0  ;;  %v516_v30 = vpop.f32.mrf.mxu1  ;;  %v546_v0 = vadd.f32 %v527_v22, %v471_v63  ;;  %v547_v3 = vadd.f32 %v540_v27, %v472_v4 }
 0x152   :  { %v529_v32 = vpop.f32.mrf.mxu2  ;;  %v542_v36 = vpop.f32.mrf.mxu3 }
 0x153   :  { %v604_v39 = vpop.f32.mrf.mxu0  ;;  %v617_v37 = vpop.f32.mrf.mxu1  ;;  %v545_v32 = vadd.f32 %v514_v26, %v470_v53 }
 0x155   :  { %v648_v36 = vadd.f32 %v617_v37, %v545_v32 }
 0x15a   :  { %v630_v38 = vpop.f32.mrf.mxu2  ;;  %v643_v40 = vpop.f32.mrf.mxu3 }
 0x15b   :  { %v606_v49 = vpop.f32.mrf.mxu0  ;;  %v619_v43 = vpop.f32.mrf.mxu1  ;;  %v649_v29 = vadd.f32 %v630_v38, %v546_v0  ;;  %v650_v33 = vadd.f32 %v643_v40, %v547_v3  ;;  %v982_v40 = vld [vmem:[%s6150_s6] sm:$0xff] }
 0x15c   :  { %v963_v43 = vpop.permute.xlu2 %962 }
 0x162   :  { %v632_v44 = vpop.f32.mrf.mxu2  ;;  %v645_v54 = vpop.f32.mrf.mxu3 }
 0x163   :  { %v707_v47 = vpop.f32.mrf.mxu0  ;;  %v720_v48 = vpop.f32.mrf.mxu1  ;;  %v647_v44 = vadd.f32 %v604_v39, %v544_v16 }
 0x164   :  { %v751_v49 = vadd.f32 %v720_v48, %v648_v36 }
 0x16a   :  { %v733_v57 = vpop.f32.mrf.mxu2  ;;  %v746_v58 = vpop.f32.mrf.mxu3 }
 0x16b   :  { %v709_v59 = vpop.f32.mrf.mxu0  ;;  %v722_v50 = vpop.f32.mrf.mxu1 }
 0x172   :  { %v735_v60 = vpop.f32.mrf.mxu2  ;;  %v748_v5 = vpop.f32.mrf.mxu3 }
 0x173   :  { %v810_v11 = vpop.f32.mrf.mxu0  ;;  %v823_v1 = vpop.f32.mrf.mxu1  ;;  %v750_v60 = vadd.f32 %v707_v47, %v647_v44 }
 0x174   :  { %v854_v54 = vadd.f32 %v823_v1, %v751_v49 }
 0x175   :  { %v853_v34 = vadd.f32 %v810_v11, %v750_v60 }
 0x17a   :  { %v836_v2 = vpop.f32.mrf.mxu2  ;;  %v849_v13 = vpop.f32.mrf.mxu3 }
 0x17b   :  { %v812_v7 = vpop.f32.mrf.mxu0  ;;  %v825_v30 = vpop.f32.mrf.mxu1 }
 0x17c   :  { %v752_v7 = vadd.f32 %v733_v57, %v649_v29  ;;  %v753_v30 = vadd.f32 %v746_v58, %v650_v33 }
 0x17e   :  { %v855_v37 = vadd.f32 %v836_v2, %v752_v7  ;;  %v856_v16 = vadd.f32 %v849_v13, %v753_v30 }
 0x182   :  { %v838_v6 = vpop.f32.mrf.mxu2  ;;  %v851_v10 = vpop.f32.mrf.mxu3 }
 0x183   :  { %v913_v59 = vpop.f32.mrf.mxu0  ;;  %v926_v50 = vpop.f32.mrf.mxu1 }
 0x184   :  { %v957_v5 = vadd.f32 %v926_v50, %v854_v54  ;;  %v956_v53 = vadd.f32 %v913_v59, %v853_v34 }
 0x186   :  { %v966_v17 = vadd.f32 %v963_v43, %v957_v5  ;;  %v965_v0 = vadd.f32 %v963_v43, %v956_v53 }
 0x188   :  { %v5085_v26 = vmax.f32 %v966_v17, 0.0  ;;  %v5093_v17 = vmax.f32 %v965_v0, 0.0 }
 0x18a   :  { %v939_v39 = vpop.f32.mrf.mxu2  ;;  %v952_v6 = vpop.f32.mrf.mxu3  ;;  %1005 = vrot.lane.b32.xlu0 %v5085_v26, %s4599_s22 }
 0x18b   :  { %v958_v10 = vadd.f32 %v939_v39, %v855_v37  ;;  %v959_v63 = vadd.f32 %v952_v6, %v856_v16  ;;  %v928_v4 = vpop.f32.mrf.mxu1  ;;  %v915_v22 = vpop.f32.mrf.mxu0  ;;  %v974_v37 = vld [vmem:[%s6149_s5 + $0x4] sm:$0xf] }
 0x18d   :  { %v967_v3 = vadd.f32 %v963_v43, %v958_v10  ;;  %v968_v27 = vadd.f32 %v963_v43, %v959_v63 }
 0x18f   :  { %v5089_v38 = vmax.f32 %v967_v3, 0.0  ;;  %v5091_v29 = vmax.f32 %v968_v27, 0.0 }
 0x191   :  { %1009 = vrot.lane.b32.xlu2 %v5091_v29, %s4599_s22  ;;  %1007 = vrot.lane.b32.xlu1 %v5089_v38, %s4599_s22 }
 0x192   :  { %v941_v33 = vpop.f32.mrf.mxu2  ;;  %1003 = vrot.lane.b32.xlu0 %v5093_v17, %s4599_s22  ;;  %v954_v34 = vpop.f32.mrf.mxu3 }
 0x199   :  { %987 = vrot.lane.b32.xlu2 %v5089_v38, %s4600_s23  ;;  %985 = vrot.lane.b32.xlu1 %v5085_v26, %s4600_s23 }
 0x19a   :  { %989 = vrot.lane.b32.xlu0 %v5091_v29, %s4600_s23 }
 0x1a1   :  { %1159 = vrot.lane.b32.xlu2 %v5085_v26, %s4601_s28  ;;  %983 = vrot.lane.b32.xlu1 %v5093_v17, %s4600_s23 }
 0x1a2   :  { %1161 = vrot.lane.b32.xlu0 %v5089_v38, %s4601_s28 }
 0x1a9   :  { %1157 = vrot.lane.b32.xlu2 %v5093_v17, %s4601_s28  ;;  %1163 = vrot.lane.b32.xlu1 %v5091_v29, %s4601_s28 }
 0x1aa   :  { %1250 = vrot.lane.b32.xlu0 %v5085_v26, %s4602_s29 }
 0x1b1   :  { %1254 = vrot.lane.b32.xlu2 %v5091_v29, %s4602_s29  ;;  %1252 = vrot.lane.b32.xlu1 %v5089_v38, %s4602_s29 }
 0x1b2   :  { %1248 = vrot.lane.b32.xlu0 %v5093_v17, %s4602_s29 }
 0x1b9   :  { %1420 = vrot.lane.b32.xlu2 %v5091_v29, %s4603_s30  ;;  %1418 = vrot.lane.b32.xlu1 %v5089_v38, %s4603_s30 }
 0x1ba   :  { %1414 = vrot.lane.b32.xlu0 %v5093_v17, %s4603_s30 }
 0x1c1   :  { %1509 = vrot.lane.b32.xlu2 %v5089_v38, %s4604_s16  ;;  %1416 = vrot.lane.b32.xlu1 %v5085_v26, %s4603_s30 }
 0x1c2   :  { %1511 = vrot.lane.b32.xlu0 %v5091_v29, %s4604_s16 }
 0x1c9   :  { %1507 = vrot.lane.b32.xlu2 %v5085_v26, %s4604_s16  ;;  %1505 = vrot.lane.b32.xlu1 %v5093_v17, %s4604_s16 }
 0x1ca   :  { %1600 = vrot.lane.b32.xlu0 %v5089_v38, %s4605_s17 }
 0x1d1   :  { %1596 = vrot.lane.b32.xlu2 %v5093_v17, %s4605_s17  ;;  %1602 = vrot.lane.b32.xlu1 %v5091_v29, %s4605_s17 }
 0x1d2   :  { %1598 = vrot.lane.b32.xlu0 %v5085_v26, %s4605_s17 }
 0x1d9   :  { %1693 = vrot.lane.b32.xlu2 %v5091_v29, %s4606_s18  ;;  %1691 = vrot.lane.b32.xlu1 %v5089_v38, %s4606_s18 }
 0x1da   :  { %1687 = vrot.lane.b32.xlu0 %v5093_v17, %s4606_s18 }
 0x1e1   :  { %1780 = vperm.xlu2 %4518, %v982_v40   ;;  %1689 = vrot.lane.b32.xlu1 %v5085_v26, %s4606_s18 }
 0x1eb   :  { %v1010_v47 = vpop.permute.xlu2 %1009 }
 0x1f3   :  { %v988_v48 = vpop.permute.xlu2 %987 }
 0x1fb   :  { %v1160_v58 = vpop.permute.xlu2 %1159 }
 0x1fc   :  { %v1006_v57 = vpop.permute.xlu0 %1005 }
 0x203   :  { %v1008_v11 = vpop.permute.xlu1 %1007  ;;  %v1158_v6 = vpop.permute.xlu2 %1157 }
 0x204   :  { %v1011_v1 = vsel %vm107_vm1, %v1008_v11, %v1010_v47  ;;  %v1012_v2 = vsel %vm107_vm1, %v1006_v57, %v1008_v11  ;;  %v1004_v13 = vpop.permute.xlu0 %1003  ;;  %v1167_v3 = vsel %vm275_vm2, %v1158_v6, %v1160_v58 }
 0x205   :  { %v1017_v32 = vmul.f32 %v1012_v2, %v4800_v20  ;;  %v1018_v36 = vmul.f32 %v1011_v1, %v4802_v21  ;;  %v1013_v49 = vsel %vm107_vm1, %v1004_v13, %v1006_v57  ;;  %v1014_v43 = vsel %vm107_vm1, %v1010_v47, %v1004_v13 }
 0x206   :  { %v1016_v44 = vmul.f32 %v1013_v49, %v4798_v19  ;;  %v1015_v50 = vmul.f32 %v1014_v43, %v4796_v18  ;;  %v1170_v40 = vmul.f32 %v1167_v3, %v4804_v25 }
 0x207   :  { %v1021_v54 = vpack.c.bf16 %v1017_v32, %v1017_v32  ;;  %v1022_v59 = vpack.c.bf16 %v1018_v36, %v1018_v36 }
 0x208   :  { %v1020_v60 = vpack.c.bf16 %v1016_v44, %v1016_v44  ;;  %v1019_v5 = vpack.c.bf16 %v1015_v50, %v1015_v50  ;;  %v1174_v36 = vpack.c.bf16 %v1170_v40, %v1170_v40 }
 0x209   :  { %v1033_v7 = vsel %vm135_vm3, %v1021_v54, 0  ;;  %v1036_v30 = vsel %vm135_vm3, %v1022_v59, 0 }
 0x20a   :  { %1071 = vmatpush.bf16.msrb.mxu2 %v1033_v7  ;;  %1084 = vmatpush.bf16.msrb.mxu3 %v1036_v30  ;;  %v1030_v53 = vsel %vm135_vm3, %v1020_v60, 0  ;;  %v1027_v39 = vsel %vm135_vm3, %v1019_v5, 0  ;;  %v1184_v60 = vsel %vm135_vm3, %v1174_v36, 0 }
 0x20b   :  { %v986_v16 = vpop.permute.xlu1 %985  ;;  %1058 = vmatpush.bf16.msrb.mxu1 %v1030_v53  ;;  %1045 = vmatpush.bf16.msrb.mxu0 %v1027_v39 }
 0x20c   :  { %v992_v10 = vsel %vm76_vm0, %v986_v16, %v988_v48  ;;  %v990_v63 = vpop.permute.xlu0 %989 }
 0x20d   :  { %v997_v4 = vmul.f32 %v992_v10, %v4781_v12  ;;  %4337 = vmatmul.msk.bf16.vlgmr.msrb.gmra.mxu2 %vm131_vm4, %v974_v37  ;;  %4338 = vmatmul.msk.bf16.vlgmr.msrb.gmra.mxu3 %vm131_vm4, %v974_v37  ;;  %v991_v22 = vsel %vm76_vm0, %v988_v48, %v990_v63 }
 0x20e   :  { %v998_v0 = vmul.f32 %v991_v22, %v4827_v42  ;;  %4336 = vmatmul.msk.bf16.vlgmr.msrb.gmra.mxu1 %vm131_vm4, %v974_v37  ;;  %4335 = vmatmul.msk.bf16.vlgmr.msrb.gmra.mxu0 %vm131_vm4, %v974_v37 }
 0x20f   :  { %v1001_v27 = vpack.c.bf16 %v997_v4, %v997_v4 }
 0x210   :  { %v1002_v33 = vpack.c.bf16 %v998_v0, %v998_v0 }
 0x211   :  { %v1100_v34 = vsel %vm135_vm3, %v1001_v27, 0 }
 0x212   :  { %1138 = vmatpush.bf16.msra.mxu2 %v1100_v34  ;;  %v1103_v47 = vsel %vm135_vm3, %v1002_v33, 0 }
 0x213   :  { %v984_v57 = vpop.permute.xlu1 %983  ;;  %1151 = vmatpush.bf16.msra.mxu3 %v1103_v47 }
 0x214   :  { %v993_v48 = vsel %vm76_vm0, %v984_v57, %v986_v16  ;;  %v994_v11 = vsel %vm76_vm0, %v990_v63, %v984_v57  ;;  %v1162_v1 = vpop.permute.xlu0 %1161 }
 0x215   :  { %v995_v2 = vmul.f32 %v994_v11, %v4825_v41  ;;  %v996_v13 = vmul.f32 %v993_v48, %v4822_v35  ;;  %v1166_v32 = vsel %vm275_vm2, %v1160_v58, %v1162_v1  ;;  %v973_v58 = vld [vmem:[%s6149_s5] sm:$0xf] }
 0x216   :  { %v1171_v49 = vmul.f32 %v1166_v32, %v4850_v61  ;;  %v1341_v32 = vpack.c.bf16 %v5089_v38, %v5089_v38  ;;  %v1339_v38 = vpack.c.bf16 %v5093_v17, %v5093_v17 }
 0x217   :  { %v999_v43 = vpack.c.bf16 %v995_v2, %v995_v2  ;;  %v1000_v44 = vpack.c.bf16 %v996_v13, %v996_v13 }
 0x218   :  { %v1175_v54 = vpack.c.bf16 %v1171_v49, %v1171_v49  ;;  %v1347_v17 = vsel %vm135_vm3, %v1339_v38, 0 }
 0x219   :  { %v1094_v59 = vsel %vm135_vm3, %v999_v43, 0  ;;  %v1097_v50 = vsel %vm135_vm3, %v1000_v44, 0  ;;  %v1342_v44 = vpack.c.bf16 %v5091_v29, %v5091_v29 }
 0x21a   :  { %1112 = vmatpush.bf16.msra.mxu0 %v1094_v59  ;;  %1125 = vmatpush.bf16.msra.mxu1 %v1097_v50  ;;  %v1187_v5 = vsel %vm135_vm3, %v1175_v54, 0  ;;  %v975_v59 = vld [vmem:[%s6149_s5 + $0x8] sm:$0xf] }
 0x21b   :  { %v1164_v7 = vpop.permute.xlu1 %1163  ;;  %1225 = vmatpush.bf16.msrb.mxu2 %v1187_v5  ;;  %v1340_v5 = vpack.c.bf16 %v5085_v26, %v5085_v26 }
 0x21c   :  { %v1165_v30 = vsel %vm275_vm2, %v1162_v1, %v1164_v7  ;;  %v1168_v53 = vsel %vm275_vm2, %v1164_v7, %v1158_v6  ;;  %v1251_v37 = vpop.permute.xlu0 %1250  ;;  %v1255_v6 = vpop.permute.xlu2 %1254  ;;  %v1356_v7 = vsel %vm135_vm3, %v1342_v44, 0 }
 0x21d   :  { %v1169_v16 = vmul.f32 %v1168_v53, %v4852_v62  ;;  %v1172_v39 = vmul.f32 %v1165_v30, %v4858_v9  ;;  %4341 = vmatmul.msk.bf16.vlgmr.msra.gmra.mxu2 %vm131_vm4, %v973_v58  ;;  %4342 = vmatmul.msk.bf16.vlgmr.msra.gmra.mxu3 %vm131_vm4, %v973_v58  ;;  %v1350_v26 = vsel %vm135_vm3, %v1340_v5, 0 }
 0x21e   :  { %1212 = vmatpush.bf16.msrb.mxu1 %v1184_v60  ;;  %4339 = vmatmul.msk.bf16.vlgmr.msra.gmra.mxu0 %vm131_vm4, %v973_v58 }
 0x21f   :  { %4340 = vmatmul.msk.bf16.vlgmr.msra.gmra.mxu1 %vm131_vm4, %v973_v58  ;;  %v1173_v10 = vpack.c.bf16 %v1169_v16, %v1169_v16  ;;  %v1176_v63 = vpack.c.bf16 %v1172_v39, %v1172_v39  ;;  %v1353_v58 = vsel %vm135_vm3, %v1341_v32, 0 }
 0x221   :  { %v1181_v4 = vsel %vm135_vm3, %v1173_v10, 0  ;;  %v1190_v22 = vsel %vm135_vm3, %v1176_v63, 0 }
 0x222   :  { %1199 = vmatpush.bf16.msrb.mxu0 %v1181_v4  ;;  %1238 = vmatpush.bf16.msrb.mxu3 %v1190_v22 }
 0x223   :  { %v1253_v0 = vpop.permute.xlu1 %1252 }
 0x224   :  { %v1256_v3 = vsel %vm378_vm5, %v1253_v0, %v1255_v6  ;;  %v1257_v27 = vsel %vm378_vm5, %v1251_v37, %v1253_v0  ;;  %v1249_v33 = vpop.permute.xlu0 %1248  ;;  %v1421_v29 = vpop.permute.xlu2 %1420 }
 0x225   :  { %v1262_v34 = vmul.f32 %v1257_v27, %v4875_v28  ;;  %v1263_v40 = vmul.f32 %v1256_v3, %v4880_v31  ;;  %v1258_v47 = vsel %vm378_vm5, %v1249_v33, %v1251_v37  ;;  %v1259_v57 = vsel %vm378_vm5, %v1255_v6, %v1249_v33  ;;  %v976_v33 = vld [vmem:[%s6149_s5 + $0xc] sm:$0xf] }
 0x226   :  { %v1261_v48 = vmul.f32 %v1258_v47, %v4895_v45  ;;  %v1260_v2 = vmul.f32 %v1259_v57, %v4897_v46 }
 0x227   :  { %v1266_v11 = vpack.c.bf16 %v1262_v34, %v1262_v34  ;;  %v1267_v1 = vpack.c.bf16 %v1263_v40, %v1263_v40 }
 0x228   :  { %v1265_v13 = vpack.c.bf16 %v1261_v48, %v1261_v48  ;;  %v1264_v36 = vpack.c.bf16 %v1260_v2, %v1260_v2 }
 0x229   :  { %v1278_v49 = vsel %vm135_vm3, %v1266_v11, 0  ;;  %v1281_v43 = vsel %vm135_vm3, %v1267_v1, 0 }
 0x22a   :  { %1316 = vmatpush.bf16.msra.mxu2 %v1278_v49  ;;  %1329 = vmatpush.bf16.msra.mxu3 %v1281_v43  ;;  %v1275_v54 = vsel %vm135_vm3, %v1265_v13, 0  ;;  %v1272_v60 = vsel %vm135_vm3, %v1264_v36, 0 }
 0x22b   :  { %v1419_v50 = vpop.permute.xlu1 %1418  ;;  %1303 = vmatpush.bf16.msra.mxu1 %v1275_v54  ;;  %1290 = vmatpush.bf16.msra.mxu0 %v1272_v60 }
 0x22c   :  { %v1415_v30 = vpop.permute.xlu0 %1414  ;;  %v1422_v53 = vsel %vm556_vm6, %v1419_v50, %v1421_v29  ;;  %v1510_v22 = vpop.permute.xlu2 %1509 }
 0x22d   :  { %4345 = vmatmul.msk.bf16.vlgmr.msrb.gmra.mxu2 %vm131_vm4, %v975_v59  ;;  %4346 = vmatmul.msk.bf16.vlgmr.msrb.gmra.mxu3 %vm131_vm4, %v975_v59  ;;  %v1425_v37 = vsel %vm556_vm6, %v1421_v29, %v1415_v30  ;;  %v1428_v63 = vmul.f32 %v1422_v53, %v4932_v14  ;;  %v977_v29 = vld [vmem:[%s6149_s5 + $0x10] sm:$0xf] }
 0x22e   :  { %1391 = vmatpush.bf16.msrb.mxu2 %v1353_v58  ;;  %1404 = vmatpush.bf16.msrb.mxu3 %v1356_v7  ;;  %v1429_v4 = vmul.f32 %v1425_v37, %v4942_v24 }
 0x22f   :  { %4343 = vmatmul.msk.bf16.vlgmr.msrb.gmra.mxu0 %vm131_vm4, %v975_v59  ;;  %4344 = vmatmul.msk.bf16.vlgmr.msrb.gmra.mxu1 %vm131_vm4, %v975_v59  ;;  %v1432_v3 = vpack.c.bf16 %v1428_v63, %v1428_v63 }
 0x230   :  { %1365 = vmatpush.bf16.msrb.mxu0 %v1347_v17  ;;  %1378 = vmatpush.bf16.msrb.mxu1 %v1350_v26  ;;  %v1433_v27 = vpack.c.bf16 %v1429_v4, %v1429_v4 }
 0x231   :  { %v1444_v57 = vsel %vm135_vm3, %v1432_v3, 0  ;;  %v6212_v3 = vld [vmem:[#allocation8_spill] sm:$0xff] }
 0x232   :  { %v1447_v48 = vsel %vm135_vm3, %v1433_v27, 0 }
 0x233   :  { %v1417_v16 = vpop.permute.xlu1 %1416 }
 0x234   :  { %v1423_v39 = vsel %vm556_vm6, %v1417_v16, %v1419_v50  ;;  %v1424_v10 = vsel %vm556_vm6, %v1415_v30, %v1417_v16  ;;  %v1512_v47 = vpop.permute.xlu0 %1511  ;;  %v1508_v13 = vpop.permute.xlu2 %1507 }
 0x235   :  { %v1426_v6 = vmul.f32 %v1424_v10, %v4940_v23  ;;  %v1427_v0 = vmul.f32 %v1423_v39, %v4934_v15  ;;  %v1513_v32 = vsel %vm6178_vm7, %v1510_v22, %v1512_v47  ;;  %v1514_v49 = vsel %vm6178_vm7, %v1508_v13, %v1510_v22 }
 0x236   :  { %v1519_v44 = vmul.f32 %v1513_v32, %v4967_v51  ;;  %v1518_v59 = vmul.f32 %v1514_v49, %v4969_v52 }
 0x237   :  { %v1430_v34 = vpack.c.bf16 %v1426_v6, %v1426_v6  ;;  %v1431_v40 = vpack.c.bf16 %v1427_v0, %v1427_v0  ;;  %v6211_v6 = vld [vmem:[#allocation6_spill] sm:$0xff] }
 0x238   :  { %v1523_v38 = vpack.c.bf16 %v1519_v44, %v1519_v44  ;;  %v1522_v58 = vpack.c.bf16 %v1518_v59, %v1518_v59 }
 0x239   :  { %v1438_v1 = vsel %vm135_vm3, %v1430_v34, 0  ;;  %v1441_v2 = vsel %vm135_vm3, %v1431_v40, 0  ;;  %v6214_v40 = vld [vmem:[#allocation5_spill] sm:$0xff] }
 0x23a   :  { %v1535_v17 = vsel %vm135_vm3, %v1523_v38, 0  ;;  %v1532_v37 = vsel %vm135_vm3, %v1522_v58, 0 }
 0x23b   :  { %v1506_v11 = vpop.permute.xlu1 %1505 }
 0x23c   :  { %v1516_v36 = vsel %vm6178_vm7, %v1512_v47, %v1506_v11  ;;  %v1515_v43 = vsel %vm6178_vm7, %v1506_v11, %v1508_v13  ;;  %v1601_v60 = vpop.permute.xlu0 %1600  ;;  %v1597_v16 = vpop.permute.xlu2 %1596 }
 0x23d   :  { %4349 = vmatmul.msk.bf16.vlgmr.msra.gmra.mxu2 %vm131_vm4, %v976_v33  ;;  %4350 = vmatmul.msk.bf16.vlgmr.msra.gmra.mxu3 %vm131_vm4, %v976_v33  ;;  %v1520_v54 = vmul.f32 %v1516_v36, %v4977_v56  ;;  %v1517_v50 = vmul.f32 %v1515_v43, %v4975_v55 }
 0x23e   :  { %1482 = vmatpush.bf16.msra.mxu2 %v1444_v57  ;;  %1495 = vmatpush.bf16.msra.mxu3 %v1447_v48 }
 0x23f   :  { %4347 = vmatmul.msk.bf16.vlgmr.msra.gmra.mxu0 %vm131_vm4, %v976_v33  ;;  %4348 = vmatmul.msk.bf16.vlgmr.msra.gmra.mxu1 %vm131_vm4, %v976_v33  ;;  %v1524_v5 = vpack.c.bf16 %v1520_v54, %v1520_v54  ;;  %v1521_v7 = vpack.c.bf16 %v1517_v50, %v1517_v50  ;;  %v6213_v33 = vld [vmem:[#allocation7_spill] sm:$0xff] }
 0x240   :  { %1456 = vmatpush.bf16.msra.mxu0 %v1438_v1  ;;  %1469 = vmatpush.bf16.msra.mxu1 %v1441_v2  ;;  %v978_v1 = vld [vmem:[%s6149_s5 + $0x14] sm:$0xf] }
 0x241   :  { %v1538_v26 = vsel %vm135_vm3, %v1524_v5, 0  ;;  %v1529_v53 = vsel %vm135_vm3, %v1521_v7, 0  ;;  %v6216_v7 = vld [vmem:[#allocation12_spill] sm:$0xff] }
 0x243   :  { %v1603_v30 = vpop.permute.xlu1 %1602 }
 0x244   :  { %v1599_v39 = vpop.permute.xlu0 %1598  ;;  %v1604_v10 = vsel %vm6177_vm8, %v1601_v60, %v1603_v30  ;;  %v1607_v63 = vsel %vm6177_vm8, %v1603_v30, %v1597_v16  ;;  %v1694_v54 = vpop.permute.xlu2 %1693 }
 0x245   :  { %v1605_v4 = vsel %vm6177_vm8, %v1599_v39, %v1601_v60  ;;  %v1606_v22 = vsel %vm6177_vm8, %v1597_v16, %v1599_v39  ;;  %v1610_v0 = vmul.f32 %v1604_v10, %v6211_v6  ;;  %v1611_v27 = vmul.f32 %v1607_v63, %v6212_v3  ;;  %v979_v10 = vld [vmem:[%s6149_s5 + $0x18] sm:$0xf] }
 0x246   :  { %v1608_v34 = vmul.f32 %v1606_v22, %v6213_v33  ;;  %v1609_v47 = vmul.f32 %v1605_v4, %v6214_v40 }
 0x247   :  { %v1614_v48 = vpack.c.bf16 %v1610_v0, %v1610_v0  ;;  %v1615_v11 = vpack.c.bf16 %v1611_v27, %v1611_v27 }
 0x248   :  { %v1612_v2 = vpack.c.bf16 %v1608_v34, %v1608_v34  ;;  %v1613_v13 = vpack.c.bf16 %v1609_v47, %v1609_v47  ;;  %v980_v47 = vld [vmem:[%s6149_s5 + $0x1c] sm:$0xf] }
 0x249   :  { %v1626_v32 = vsel %vm135_vm3, %v1614_v48, 0  ;;  %v1629_v36 = vsel %vm135_vm3, %v1615_v11, 0 }
 0x24a   :  { %v1620_v43 = vsel %vm135_vm3, %v1612_v2, 0  ;;  %v1623_v44 = vsel %vm135_vm3, %v1613_v13, 0 }
 0x24b   :  { %v1692_v57 = vpop.permute.xlu1 %1691 }
 0x24c   :  { %v1688_v49 = vpop.permute.xlu0 %1687  ;;  %v1695_v50 = vsel %vm6176_vm9, %v1692_v57, %v1694_v54 }
 0x24d   :  { %4353 = vmatmul.msk.bf16.vlgmr.msrb.gmra.mxu2 %vm131_vm4, %v977_v29  ;;  %4354 = vmatmul.msk.bf16.vlgmr.msrb.gmra.mxu3 %vm131_vm4, %v977_v29  ;;  %v1698_v60 = vsel %vm6176_vm9, %v1694_v54, %v1688_v49 }
 0x24e   :  { %1573 = vmatpush.bf16.msrb.mxu2 %v1535_v17  ;;  %1586 = vmatpush.bf16.msrb.mxu3 %v1538_v26  ;;  %v1702_v30 = vmul.f32 %v1698_v60, %v6216_v7  ;;  %v6217_v17 = vld [vmem:[#allocation11_spill] sm:$0xff] }
 0x24f   :  { %4351 = vmatmul.msk.bf16.vlgmr.msrb.gmra.mxu0 %vm131_vm4, %v977_v29  ;;  %4352 = vmatmul.msk.bf16.vlgmr.msrb.gmra.mxu1 %vm131_vm4, %v977_v29  ;;  %v6215_v29 = vld [vmem:[#allocation9_spill] sm:$0xff] }
 0x250   :  { %1547 = vmatpush.bf16.msrb.mxu0 %v1529_v53  ;;  %1560 = vmatpush.bf16.msrb.mxu1 %v1532_v37  ;;  %v1701_v58 = vmul.f32 %v1695_v50, %v6215_v29  ;;  %v6218_v53 = vld [vmem:[#allocation10_spill] sm:$0xff]  ;;  %v1706_v39 = vpack.c.bf16 %v1702_v30, %v1702_v30 }
 0x252   :  { %v1705_v16 = vpack.c.bf16 %v1701_v58, %v1701_v58  ;;  %v1720_v0 = vsel %vm135_vm3, %v1706_v39, 0 }
 0x253   :  { %v1690_v59 = vpop.permute.xlu1 %1689 }
 0x254   :  { %v1696_v38 = vsel %vm6176_vm9, %v1690_v59, %v1692_v57  ;;  %v1697_v5 = vsel %vm6176_vm9, %v1688_v49, %v1690_v59  ;;  %v1717_v22 = vsel %vm135_vm3, %v1705_v16, 0  ;;  %v981_v57 = vld [vmem:[%s6149_s5 + $0x20] sm:$0xf] }
 0x255   :  { %v1699_v26 = vmul.f32 %v1697_v5, %v6217_v17  ;;  %v1700_v37 = vmul.f32 %v1696_v38, %v6218_v53 }
 0x257   :  { %v1703_v63 = vpack.c.bf16 %v1699_v26, %v1699_v26  ;;  %v1704_v4 = vpack.c.bf16 %v1700_v37, %v1700_v37 }
 0x259   :  { %v1711_v27 = vsel %vm135_vm3, %v1703_v63, 0  ;;  %v1714_v34 = vsel %vm135_vm3, %v1704_v4, 0 }
 0x25d   :  { %4357 = vmatmul.msk.bf16.vlgmr.msra.gmra.mxu2 %vm131_vm4, %v978_v1  ;;  %4358 = vmatmul.msk.bf16.vlgmr.msra.gmra.mxu3 %vm131_vm4, %v978_v1 }
 0x25e   :  { %1664 = vmatpush.bf16.msra.mxu2 %v1626_v32  ;;  %1677 = vmatpush.bf16.msra.mxu3 %v1629_v36 }
 0x25f   :  { %4355 = vmatmul.msk.bf16.vlgmr.msra.gmra.mxu0 %vm131_vm4, %v978_v1  ;;  %4356 = vmatmul.msk.bf16.vlgmr.msra.gmra.mxu1 %vm131_vm4, %v978_v1 }
 0x260   :  { %1638 = vmatpush.bf16.msra.mxu0 %v1620_v43  ;;  %1651 = vmatpush.bf16.msra.mxu1 %v1623_v44 }
 0x26d   :  { %4361 = vmatmul.msk.bf16.vlgmr.msrb.gmra.mxu2 %vm131_vm4, %v979_v10  ;;  %4362 = vmatmul.msk.bf16.vlgmr.msrb.gmra.mxu3 %vm131_vm4, %v979_v10 }
 0x26e   :  { %1755 = vmatpush.bf16.msrb.mxu2 %v1717_v22  ;;  %1768 = vmatpush.bf16.msrb.mxu3 %v1720_v0 }
 0x26f   :  { %4359 = vmatmul.msk.bf16.vlgmr.msrb.gmra.mxu0 %vm131_vm4, %v979_v10  ;;  %4360 = vmatmul.msk.bf16.vlgmr.msrb.gmra.mxu1 %vm131_vm4, %v979_v10 }
 0x270   :  { %1729 = vmatpush.bf16.msrb.mxu0 %v1711_v27  ;;  %1742 = vmatpush.bf16.msrb.mxu1 %v1714_v34 }
 0x27d   :  { %4365 = vmatmul.msk.bf16.vlgmr.msra.gmra.mxu2 %vm131_vm4, %v980_v47  ;;  %4366 = vmatmul.msk.bf16.vlgmr.msra.gmra.mxu3 %vm131_vm4, %v980_v47 }
 0x27f   :  { %4363 = vmatmul.msk.bf16.vlgmr.msra.gmra.mxu0 %vm131_vm4, %v980_v47  ;;  %4364 = vmatmul.msk.bf16.vlgmr.msra.gmra.mxu1 %vm131_vm4, %v980_v47 }
 0x28b   :  { %v1060_v48 = vpop.f32.mrf.mxu1  ;;  %v1047_v11 = vpop.f32.mrf.mxu0 }
 0x28d   :  { %4369 = vmatmul.msk.bf16.vlgmr.msrb.gmra.mxu2 %vm131_vm4, %v981_v57  ;;  %4370 = vmatmul.msk.bf16.vlgmr.msrb.gmra.mxu3 %vm131_vm4, %v981_v57 }
 0x28f   :  { %4367 = vmatmul.msk.bf16.vlgmr.msrb.gmra.mxu0 %vm131_vm4, %v981_v57  ;;  %4368 = vmatmul.msk.bf16.vlgmr.msrb.gmra.mxu1 %vm131_vm4, %v981_v57 }
 0x290   :  { %v1073_v1 = vpop.f32.mrf.mxu2  ;;  %v1086_v2 = vpop.f32.mrf.mxu3 }
 0x293   :  { %v1062_v13 = vpop.f32.mrf.mxu1  ;;  %v1049_v32 = vpop.f32.mrf.mxu0 }
 0x298   :  { %v1075_v36 = vpop.f32.mrf.mxu2  ;;  %v1088_v49 = vpop.f32.mrf.mxu3 }
 0x29b   :  { %v1114_v44 = vpop.f32.mrf.mxu0 }
 0x29c   :  { %v1127_v43 = vpop.f32.mrf.mxu1  ;;  %v1115_v59 = vadd.f32 %v1114_v44, %v1047_v11 }
 0x29d   :  { %v1128_v54 = vadd.f32 %v1127_v43, %v1060_v48 }
 0x2a0   :  { %v1140_v50 = vpop.f32.mrf.mxu2  ;;  %v1153_v60 = vpop.f32.mrf.mxu3 }
 0x2a1   :  { %v1141_v38 = vadd.f32 %v1140_v50, %v1073_v1  ;;  %v1154_v5 = vadd.f32 %v1153_v60, %v1086_v2 }
 0x2a3   :  { %v1116_v30 = vpop.f32.mrf.mxu0 }
 0x2a4   :  { %v1129_v58 = vpop.f32.mrf.mxu1 }
 0x2a8   :  { %v1142_v26 = vpop.f32.mrf.mxu2  ;;  %v1155_v37 = vpop.f32.mrf.mxu3 }
 0x2ac   :  { %v1201_v16 = vpop.f32.mrf.mxu0  ;;  %v1214_v39 = vpop.f32.mrf.mxu1 }
 0x2ad   :  { %v1244_v10 = vadd.f32 %v1201_v16, %v1115_v59  ;;  %v1245_v63 = vadd.f32 %v1214_v39, %v1128_v54 }
 0x2b0   :  { %v1227_v4 = vpop.f32.mrf.mxu2  ;;  %v1240_v22 = vpop.f32.mrf.mxu3 }
 0x2b1   :  { %v1246_v0 = vadd.f32 %v1227_v4, %v1141_v38  ;;  %v1247_v27 = vadd.f32 %v1240_v22, %v1154_v5 }
 0x2b4   :  { %v1203_v34 = vpop.f32.mrf.mxu0  ;;  %v1216_v47 = vpop.f32.mrf.mxu1 }
 0x2b8   :  { %v1229_v57 = vpop.f32.mrf.mxu2  ;;  %v1242_v48 = vpop.f32.mrf.mxu3 }
 0x2bc   :  { %v1292_v11 = vpop.f32.mrf.mxu0  ;;  %v1305_v13 = vpop.f32.mrf.mxu1 }
 0x2bd   :  { %v1335_v1 = vadd.f32 %v1292_v11, %v1244_v10  ;;  %v1336_v2 = vadd.f32 %v1305_v13, %v1245_v63 }
 0x2c0   :  { %v1318_v32 = vpop.f32.mrf.mxu2  ;;  %v1331_v36 = vpop.f32.mrf.mxu3 }
 0x2c1   :  { %v1337_v49 = vadd.f32 %v1318_v32, %v1246_v0  ;;  %v1338_v43 = vadd.f32 %v1331_v36, %v1247_v27 }
 0x2c4   :  { %v1294_v44 = vpop.f32.mrf.mxu0  ;;  %v1307_v50 = vpop.f32.mrf.mxu1 }
 0x2c8   :  { %v1320_v59 = vpop.f32.mrf.mxu2  ;;  %v1333_v54 = vpop.f32.mrf.mxu3 }
 0x2cc   :  { %v1367_v60 = vpop.f32.mrf.mxu0  ;;  %v1380_v58 = vpop.f32.mrf.mxu1 }
 0x2cd   :  { %v1411_v7 = vadd.f32 %v1380_v58, %v1336_v2 }
 0x2d0   :  { %v1393_v38 = vpop.f32.mrf.mxu2  ;;  %v1406_v5 = vpop.f32.mrf.mxu3 }
 0x2d1   :  { %v1412_v17 = vadd.f32 %v1393_v38, %v1337_v49  ;;  %v1413_v3 = vadd.f32 %v1406_v5, %v1338_v43  ;;  %v1781_v43 = vpop.permute.xlu2 %1780 }
 0x2d4   :  { %v1369_v30 = vpop.f32.mrf.mxu0  ;;  %v1382_v26 = vpop.f32.mrf.mxu1 }
 0x2d8   :  { %v1395_v37 = vpop.f32.mrf.mxu2  ;;  %v1408_v16 = vpop.f32.mrf.mxu3 }
 0x2d9   :  { %v1410_v16 = vadd.f32 %v1367_v60, %v1335_v1 }
 0x2dc   :  { %v1458_v39 = vpop.f32.mrf.mxu0  ;;  %v1471_v4 = vpop.f32.mrf.mxu1 }
 0x2e0   :  { %v1484_v10 = vpop.f32.mrf.mxu2  ;;  %v1497_v63 = vpop.f32.mrf.mxu3 }
 0x2e1   :  { %v1503_v1 = vadd.f32 %v1484_v10, %v1412_v17  ;;  %v1504_v2 = vadd.f32 %v1497_v63, %v1413_v3 }
 0x2e4   :  { %v1460_v22 = vpop.f32.mrf.mxu0  ;;  %v1473_v34 = vpop.f32.mrf.mxu1 }
 0x2e5   :  { %v1501_v22 = vadd.f32 %v1458_v39, %v1410_v16  ;;  %v1502_v34 = vadd.f32 %v1471_v4, %v1411_v7 }
 0x2e8   :  { %v1486_v0 = vpop.f32.mrf.mxu2  ;;  %v1499_v27 = vpop.f32.mrf.mxu3 }
 0x2ec   :  { %v1549_v47 = vpop.f32.mrf.mxu0  ;;  %v1562_v57 = vpop.f32.mrf.mxu1 }
 0x2ed   :  { %v1592_v53 = vadd.f32 %v1549_v47, %v1501_v22  ;;  %v1593_v29 = vadd.f32 %v1562_v57, %v1502_v34 }
 0x2f0   :  { %v1575_v48 = vpop.f32.mrf.mxu2  ;;  %v1588_v11 = vpop.f32.mrf.mxu3 }
 0x2f1   :  { %v1594_v38 = vadd.f32 %v1575_v48, %v1503_v1  ;;  %v1595_v5 = vadd.f32 %v1588_v11, %v1504_v2 }
 0x2f4   :  { %v1551_v13 = vpop.f32.mrf.mxu0  ;;  %v1564_v32 = vpop.f32.mrf.mxu1 }
 0x2f5   :  { %v1791_v13 = vld [vmem:[%s6146_s2] ss:$2 sm:$0xf]  ;;  %v4372_v32 = vld [vmem:[%s6146_s2 + $0x1] ss:$2 sm:$0xf] }
 0x2f6   :  { %v5369_v39 = vperm.slane %v1791_v13, 0  ;;  %v5371_v4 = vperm.slane %v4372_v32, 0  ;;  %v5373_v47 = vperm.slane %v1791_v13, 1  ;;  %v5375_v57 = vperm.slane %v4372_v32, 1 }
 0x2f7   :  { %v5385_v48 = vperm.slane %v4372_v32, 2  ;;  %v5387_v11 = vperm.slane %v1791_v13, 2 }
 0x2f8   :  { %v1577_v36 = vpop.f32.mrf.mxu2  ;;  %v1590_v44 = vpop.f32.mrf.mxu3  ;;  %6219 = vst [vmem:[#allocation13_spill] sm:$0xff] %v5369_v39 }
 0x2f9   :  { %6220 = vst [vmem:[#allocation14_spill] sm:$0xff] %v5371_v4 }
 0x2fa   :  { %6221 = vst [vmem:[#allocation15_spill] sm:$0xff] %v5373_v47 }
 0x2fb   :  { %6222 = vst [vmem:[#allocation16_spill] sm:$0xff] %v5375_v57 }
 0x2fc   :  { %v1640_v50 = vpop.f32.mrf.mxu0  ;;  %v1653_v59 = vpop.f32.mrf.mxu1  ;;  %6223 = vst [vmem:[#allocation17_spill] sm:$0xff] %v5385_v48 }
 0x2fd   :  { %v1683_v36 = vadd.f32 %v1640_v50, %v1592_v53  ;;  %v1684_v44 = vadd.f32 %v1653_v59, %v1593_v29  ;;  %6224 = vst [vmem:[#allocation18_spill] sm:$0xff] %v5387_v11 }
 0x300   :  { %v1666_v54 = vpop.f32.mrf.mxu2  ;;  %v1679_v30 = vpop.f32.mrf.mxu3 }
 0x301   :  { %v1685_v3 = vadd.f32 %v1666_v54, %v1594_v38  ;;  %v1686_v17 = vadd.f32 %v1679_v30, %v1595_v5 }
 0x304   :  { %v1642_v26 = vpop.f32.mrf.mxu0  ;;  %v1655_v37 = vpop.f32.mrf.mxu1 }
 0x308   :  { %v1668_v0 = vpop.f32.mrf.mxu2  ;;  %v1681_v27 = vpop.f32.mrf.mxu3 }
 0x309   :  { %v5397_v27 = vperm.slane %v4372_v32, 3 }
 0x30b   :  { %6225 = vst [vmem:[#allocation19_spill] sm:$0xff] %v5397_v27 }
 0x30c   :  { %v1731_v60 = vpop.f32.mrf.mxu0  ;;  %v1744_v7 = vpop.f32.mrf.mxu1 }
 0x30d   :  { %v1774_v58 = vadd.f32 %v1731_v60, %v1683_v36  ;;  %v1775_v49 = vadd.f32 %v1744_v7, %v1684_v44  ;;  %v5399_v36 = vperm.slane %v1791_v13, 3 }
 0x30f   :  { %v5377_v26 = vadd.f32 %v1781_v43, %v1774_v58  ;;  %v5379_v29 = vadd.f32 %v1781_v43, %v1775_v49  ;;  %6226 = vst [vmem:[#allocation20_spill] sm:$0xff] %v5399_v36 }
 0x310   :  { %v1757_v53 = vpop.f32.mrf.mxu2  ;;  %v1770_v10 = vpop.f32.mrf.mxu3 }
 0x311   :  { %v1801_v63 = vmul.f32 %v5369_v39, %v5377_v26  ;;  %v1871_v50 = vmul.f32 %v5371_v4, %v5377_v26  ;;  %v1802_v59 = vmul.f32 %v5373_v47, %v5379_v29  ;;  %v1872_v37 = vmul.f32 %v5375_v57, %v5379_v29 }
 0x312   :  { %v1776_v54 = vadd.f32 %v1757_v53, %v1685_v3  ;;  %v1777_v30 = vadd.f32 %v1770_v10, %v1686_v17  ;;  %v1787_v3 = vld [vmem:[%s6151_s7] sm:$0xff] }
 0x313   :  { %v1875_v1 = vadd.f32 %v1872_v37, %v1871_v50  ;;  %v1805_v60 = vadd.f32 %v1802_v59, %v1801_v63 }
 0x314   :  { %v5393_v16 = vadd.f32 %v1781_v43, %v1776_v54  ;;  %v5395_v22 = vadd.f32 %v1781_v43, %v1777_v30  ;;  %v1733_v34 = vpop.f32.mrf.mxu0  ;;  %v1746_v0 = vpop.f32.mrf.mxu1 }
 0x316   :  { %v1873_v44 = vmul.f32 %v5385_v48, %v5393_v16  ;;  %v1803_v2 = vmul.f32 %v5387_v11, %v5393_v16  ;;  %v1874_v49 = vmul.f32 %v5397_v27, %v5395_v22  ;;  %v1804_v32 = vmul.f32 %v5399_v36, %v5395_v22 }
 0x318   :  { %v1759_v7 = vpop.f32.mrf.mxu2  ;;  %v1772_v58 = vpop.f32.mrf.mxu3  ;;  %v1876_v43 = vadd.f32 %v1875_v1, %v1873_v44  ;;  %v1806_v38 = vadd.f32 %v1805_v60, %v1803_v2 }
 0x31a   :  { %v1877_v13 = vadd.f32 %v1876_v43, %v1874_v49  ;;  %v1807_v5 = vadd.f32 %v1806_v38, %v1804_v32  ;;  %v1788_v43 = vld [vmem:[%s6152_s8] sm:$0x1] }
 0x31c   :  { %1878 = vadd.xlane.f32.xlu1 %v1877_v13  ;;  %1808 = vadd.xlane.f32.xlu0 %v1807_v5 }
 0x38f   :  { %v1879_v17 = vpop.xlane.xlu1 %1878  ;;  %v1809_v53 = vpop.xlane.xlu0 %1808 }
 0x390   :  { %v1880_v10 = vmul.f32 0.00390625, %v1879_v17  ;;  %v1810_v63 = vmul.f32 0.00390625, %v1809_v53  ;;  %v1789_v17 = vld [vmem:[%s6153_s9] sm:$0xff] }
 0x392   :  { %v1881_v50 = vmul.f32 %v1880_v10, %v1787_v3  ;;  %v1811_v59 = vmul.f32 %v1810_v63, %v1787_v3 }
 0x394   :  { %v1882_v37 = vsel %vm1812_vm10, %v1881_v50, 0.0  ;;  %v1813_v54 = vsel %vm1812_vm10, %v1811_v59, 0.0 }
 0x395   :  { %v1883_v30 = vrot.slane %v1882_v37, 4  ;;  %v1814_v34 = vrot.slane %v1813_v54, 4 }
 0x397   :  { %v1884_v0 = vadd.f32 %v1883_v30, %v1882_v37  ;;  %v1815_v44 = vadd.f32 %v1814_v34, %v1813_v54  ;;  %v1934_v30 = vld [vmem:[%s6156_s12] sm:$0x3] }
 0x398   :  { %v1790_v34 = vld [vmem:[%s6154_s10] sm:$0xff] }
 0x399   :  { %v1885_v1 = vrot.slane %v1884_v0, 2  ;;  %v1816_v2 = vrot.slane %v1815_v44, 2 }
 0x39b   :  { %v1886_v60 = vadd.f32 %v1885_v1, %v1884_v0  ;;  %v1817_v7 = vadd.f32 %v1816_v2, %v1815_v44 }
 0x39d   :  { %v1818_v58 = vrot.slane %v1817_v7, 1  ;;  %v1887_v49 = vrot.slane %v1886_v60, 1 }
 0x39f   :  { %v1819_v32 = vadd.f32 %v1818_v58, %v1817_v7  ;;  %v1888_v38 = vadd.f32 %v1887_v49, %v1886_v60 }
 0x3a1   :  { %v1820_v13 = vadd.f32 %v1819_v32, %v1788_v43  ;;  %v1889_v5 = vadd.f32 %v1888_v38, %v1788_v43 }
 0x3a3   :  { %v1821_v3 = vmax.f32 %v1820_v13, 0.0  ;;  %v1890_v10 = vmax.f32 %v1889_v5, 0.0 }
 0x3a5   :  { %v1822_v53 = vperm.slane %v1821_v3, 0  ;;  %v1891_v59 = vperm.slane %v1890_v10, 0 }
 0x3a7   :  { %v1823_v63 = vmul.f32 %v1822_v53, %v1789_v17  ;;  %v1892_v37 = vmul.f32 %v1891_v59, %v1789_v17 }
 0x3a9   :  { %v1824_v50 = vsel %vm1812_vm10, %v1823_v63, 0.0  ;;  %v1893_v54 = vsel %vm1812_vm10, %v1892_v37, 0.0 }
 0x3aa   :  { %1825 = vadd.xlane.f32.xlu2 %v1824_v50 }
 0x3b2   :  { %1894 = vadd.xlane.f32.xlu2 %v1893_v54 }
 0x3ca   :  { %1937 = vperm.xlu2 %4518, %v1934_v30  }
 0x41d   :  { %v1826_v0 = vpop.xlane.xlu2 %1825 }
 0x41e   :  { %v1827_v44 = vadd.f32 %v1826_v0, %v1790_v34 }
 0x420   :  { %v4371_v1 = vmul.f32 -1.442695, %v1827_v44 }
 0x422   :  { %4521 = vpow2.f32 %v4371_v1 }
 0x425   :  { %v1895_v2 = vpop.xlane.xlu2 %1894 }
 0x426   :  { %v1896_v60 = vadd.f32 %v1895_v2, %v1790_v34 }
 0x428   :  { %v4522_v7 = vpop.eup %4521  ;;  %v4373_v58 = vmul.f32 -1.442695, %v1896_v60 }
 0x429   :  { %v1831_v49 = vadd.f32 1.0, %v4522_v7 }
 0x42a   :  { %4523 = vpow2.f32 %v4373_v58  ;;  %v2028_v58 = vld [vmem:[%s6158_s14] sm:$0x1] }
 0x42b   :  { %4525 = vrcp.f32 %v1831_v49  ;;  %v1843_v3 = vand.u32 2147483648, %v1831_v49  ;;  %v1841_v53 = vand.u32 2147483647, %v1831_v49  ;;  %vm1837_vm12 = vweird.f32 %v1831_v49 }
 0x42d   :  { %v1844_v50 = vor.u32 1.1754944e-38, %v1843_v3  ;;  %vm1842_vm14 = vcmp.eq.f32.partialorder %v1841_v53, 8.507059e+37 }
 0x430   :  { %v4524_v43 = vpop.eup %4523 }
 0x431   :  { %v4526_v32 = vpop.eup %4525  ;;  %v1900_v38 = vadd.f32 1.0, %v4524_v43 }
 0x432   :  { %v1833_v13 = vmul.f32 %v4526_v32, %v1831_v49  ;;  %vm1838_vm11 = vweird.f32 %v4526_v32 }
 0x433   :  { %4527 = vrcp.f32 %v1900_v38  ;;  %vm1839_vm13 = vmor %vm1837_vm12, %vm1838_vm11  ;;  %v1912_v34 = vand.u32 2147483648, %v1900_v38  ;;  %v1910_v44 = vand.u32 2147483647, %v1900_v38  ;;  %vm1906_vm9 = vweird.f32 %v1900_v38 }
 0x434   :  { %v1834_v5 = vsub.f32 1.0, %v1833_v13 }
 0x435   :  { %v1913_v2 = vor.u32 1.1754944e-38, %v1912_v34  ;;  %vm1911_vm7 = vcmp.eq.f32.partialorder %v1910_v44, 8.507059e+37  ;;  %v1933_v44 = vld [vmem:[%s6155_s11] sm:$0x3] }
 0x436   :  { %v1835_v17 = vmul.f32 %v4526_v32, %v1834_v5 }
 0x438   :  { %v1836_v10 = vadd.f32 %v4526_v32, %v1835_v17 }
 0x439   :  { %v4528_v63 = vpop.eup %4527 }
 0x43a   :  { %v1840_v59 = vsel %vm1839_vm13, %v4526_v32, %v1836_v10  ;;  %v1902_v37 = vmul.f32 %v4528_v63, %v1900_v38  ;;  %vm1907_vm15 = vweird.f32 %v4528_v63 }
 0x43b   :  { %v1845_v54 = vsel %vm1842_vm14, %v1844_v50, %v1840_v59  ;;  %vm1908_vm8 = vmor %vm1906_vm9, %vm1907_vm15 }
 0x43c   :  { %1849 = vperm.xlu0 %4519, %v1845_v54   ;;  %v1903_v30 = vsub.f32 1.0, %v1902_v37 }
 0x43e   :  { %v1904_v0 = vmul.f32 %v4528_v63, %v1903_v30 }
 0x440   :  { %v1905_v1 = vadd.f32 %v4528_v63, %v1904_v0 }
 0x442   :  { %v1909_v60 = vsel %vm1908_vm8, %v4528_v63, %v1905_v1 }
 0x443   :  { %v1914_v7 = vsel %vm1911_vm7, %v1913_v2, %v1909_v60  ;;  %vm6179_vm7 = vcmask 1041408  }
 0x444   :  { %1918 = vperm.xlu1 %4520, %v1914_v7   ;;  %v2027_v7 = vld [vmem:[%s6157_s13] sm:$0x1] }
 0x44c   :  { %2031 = vperm.xlu1 %4520, %v2028_v58  }
 0x4ae   :  { %v1850_v49 = vpop.permute.xlu0 %1849 }
 0x4af   :  { %v1852_v43 = vmul.f32 %v1850_v49, %v5369_v39  ;;  %v1853_v32 = vmul.f32 %v1850_v49, %v5373_v47  ;;  %v1854_v13 = vmul.f32 %v1850_v49, %v5387_v11  ;;  %v1855_v38 = vmul.f32 %v1850_v49, %v5399_v36 }
 0x4b6   :  { %v1919_v5 = vpop.permute.xlu1 %1918 }
 0x4b7   :  { %v1921_v3 = vmul.f32 %v1919_v5, %v5371_v4  ;;  %v1922_v17 = vmul.f32 %v1919_v5, %v5375_v57  ;;  %v1923_v53 = vmul.f32 %v1919_v5, %v5385_v48  ;;  %v1924_v10 = vmul.f32 %v1919_v5, %v5397_v27 }
 0x4b9   :  { %v1925_v63 = vadd.f32 %v1921_v3, %v1852_v43  ;;  %v1926_v50 = vadd.f32 %v1922_v17, %v1853_v32  ;;  %v1927_v59 = vadd.f32 %v1923_v53, %v1854_v13  ;;  %v1928_v37 = vadd.f32 %v1924_v10, %v1855_v38 }
 0x4bb   :  { %v5440_v54 = vmul.f32 %v1925_v63, %v5377_v26  ;;  %v5443_v30 = vmul.f32 %v1926_v50, %v5379_v29  ;;  %v5446_v34 = vmul.f32 %v1927_v59, %v5393_v16  ;;  %v5449_v0 = vmul.f32 %v1928_v37, %v5395_v22  ;;  %v1938_v26 = vpop.permute.xlu2 %1937 }
 0x4bd   :  { %1958 = vmatpush.msra.mxu0 %v5440_v54  ;;  %1978 = vmatpush.msra.mxu1 %v5443_v30 }
 0x4be   :  { %1998 = vmatpush.msra.mxu2 %v5446_v34  ;;  %2018 = vmatpush.msra.mxu3 %v5449_v0  ;;  %v2032_v5 = vpop.permute.xlu1 %2031 }
 0x4bf   :  { %4374 = vmatmul.msk.f32.vlgmr.msra.gmra.mxu0 %vm131_vm4, %v1933_v44  ;;  %4375 = vmatmul.msk.f32.vlgmr.msra.gmra.mxu1 %vm131_vm4, %v1933_v44  ;;  %v2034_v3 = vperm.slane %v2032_v5, 0 }
 0x4c0   :  { %4376 = vmatmul.msk.f32.vlgmr.msra.gmra.mxu2 %vm131_vm4, %v1933_v44  ;;  %4377 = vmatmul.msk.f32.vlgmr.msra.gmra.mxu3 %vm131_vm4, %v1933_v44 }
 0x53c   :  { %v1960_v29 = vpop.f32.mrf.mxu0  ;;  %v1980_v16 = vpop.f32.mrf.mxu1 }
 0x53d   :  { %v1961_v22 = vadd.f32 %v1960_v29, %v1938_v26  ;;  %v1981_v1 = vadd.f32 %v1980_v16, %v1938_v26 }
 0x53f   :  { %v2023_v2 = vmax.f32 %v1961_v22, 0.0  ;;  %v2024_v60 = vmax.f32 %v1981_v1, 0.0 }
 0x541   :  { %4378 = vmatpush.msk.msrb.mxu0 %vm6179_vm7, %v2023_v2  ;;  %4380 = vmatpush.msk.msrb.mxu1 %vm6179_vm7, %v2024_v60 }
 0x542   :  { %4379 = vmatmul.msk.f32.vlgmr.msrb.gmra.mxu0 %vm1812_vm10, %v2027_v7  ;;  %4381 = vmatmul.msk.f32.vlgmr.msrb.gmra.mxu1 %vm1812_vm10, %v2027_v7 }
 0x543   :  { %v2000_v58 = vpop.f32.mrf.mxu2  ;;  %v2020_v49 = vpop.f32.mrf.mxu3 }
 0x544   :  { %v2001_v43 = vadd.f32 %v2000_v58, %v1938_v26  ;;  %v2021_v32 = vadd.f32 %v2020_v49, %v1938_v26 }
 0x546   :  { %v2025_v13 = vmax.f32 %v2001_v43, 0.0  ;;  %v2026_v38 = vmax.f32 %v2021_v32, 0.0 }
 0x548   :  { %4382 = vmatpush.msk.msrb.mxu2 %vm6179_vm7, %v2025_v13  ;;  %4384 = vmatpush.msk.msrb.mxu3 %vm6179_vm7, %v2026_v38 }
 0x549   :  { %4383 = vmatmul.msk.f32.vlgmr.msrb.gmra.mxu2 %vm1812_vm10, %v2027_v7  ;;  %4385 = vmatmul.msk.f32.vlgmr.msrb.gmra.mxu3 %vm1812_vm10, %v2027_v7 }
 0x5bf   :  { %v2068_v17 = vpop.f32.mrf.mxu0  ;;  %v2088_v53 = vpop.f32.mrf.mxu1 }
 0x5c0   :  { %v2069_v10 = vadd.f32 %v2068_v17, %v2034_v3  ;;  %v2089_v63 = vadd.f32 %v2088_v53, %v2034_v3 }
 0x5c2   :  { %v4386_v50 = vmul.f32 -1.442695, %v2069_v10  ;;  %v4387_v59 = vmul.f32 -1.442695, %v2089_v63 }
 0x5c4   :  { %4529 = vpow2.f32 %v4386_v50 }
 0x5c5   :  { %4531 = vpow2.f32 %v4387_v59 }
 0x5ca   :  { %v4530_v37 = vpop.eup %4529 }
 0x5cb   :  { %v4532_v44 = vpop.eup %4531  ;;  %v2143_v26 = vadd.f32 1.0, %v4530_v37 }
 0x5cc   :  { %v2144_v29 = vadd.f32 1.0, %v4532_v44  ;;  %v2108_v16 = vpop.f32.mrf.mxu2  ;;  %v2128_v22 = vpop.f32.mrf.mxu3 }
 0x5cd   :  { %4533 = vrcp.f32 %v2143_v26  ;;  %v2109_v1 = vadd.f32 %v2108_v16, %v2034_v3  ;;  %v2129_v2 = vadd.f32 %v2128_v22, %v2034_v3  ;;  %v2158_v38 = vand.u32 2147483648, %v2143_v26 }
 0x5ce   :  { %4535 = vrcp.f32 %v2144_v29  ;;  %v2156_v53 = vand.u32 2147483647, %v2143_v26  ;;  %v2173_v10 = vand.u32 2147483648, %v2144_v29  ;;  %v2171_v59 = vand.u32 2147483647, %v2144_v29 }
 0x5cf   :  { %v4388_v60 = vmul.f32 -1.442695, %v2109_v1  ;;  %v4389_v7 = vmul.f32 -1.442695, %v2129_v2  ;;  %vm2152_vm11 = vweird.f32 %v2143_v26  ;;  %v2159_v16 = vor.u32 1.1754944e-38, %v2158_v38 }
 0x5d0   :  { %vm2167_vm13 = vweird.f32 %v2144_v29  ;;  %vm2157_vm14 = vcmp.eq.f32.partialorder %v2156_v53, 8.507059e+37  ;;  %vm2172_vm7 = vcmp.eq.f32.partialorder %v2171_v59, 8.507059e+37 }
 0x5d1   :  { %4537 = vpow2.f32 %v4388_v60  ;;  %v2174_v60 = vor.u32 1.1754944e-38, %v2173_v10 }
 0x5d2   :  { %4539 = vpow2.f32 %v4389_v7 }
 0x5d3   :  { %v4534_v58 = vpop.eup %4533 }
 0x5d4   :  { %v4536_v49 = vpop.eup %4535  ;;  %v2148_v43 = vmul.f32 %v4534_v58, %v2143_v26  ;;  %vm2153_vm8 = vweird.f32 %v4534_v58 }
 0x5d5   :  { %v2163_v32 = vmul.f32 %v4536_v49, %v2144_v29  ;;  %vm2168_vm9 = vweird.f32 %v4536_v49  ;;  %vm2154_vm12 = vmor %vm2152_vm11, %vm2153_vm8  ;;  %v4569_v29 = vld [vmem:[%s6144_s0] sm:$0xff] }
 0x5d6   :  { %v2149_v13 = vsub.f32 1.0, %v2148_v43  ;;  %vm2169_vm15 = vmor %vm2167_vm13, %vm2168_vm9 }
 0x5d7   :  { %v2164_v5 = vsub.f32 1.0, %v2163_v32  ;;  %v4538_v63 = vpop.eup %4537 }
 0x5d8   :  { %v2150_v17 = vmul.f32 %v4534_v58, %v2149_v13  ;;  %v4540_v3 = vpop.eup %4539  ;;  %v2145_v44 = vadd.f32 1.0, %v4538_v63 }
 0x5d9   :  { %v2165_v50 = vmul.f32 %v4536_v49, %v2164_v5  ;;  %v2146_v1 = vadd.f32 1.0, %v4540_v3 }
 0x5da   :  { %v2151_v37 = vadd.f32 %v4534_v58, %v2150_v17  ;;  %4541 = vrcp.f32 %v2145_v44  ;;  %vm2182_vm9 = vweird.f32 %v2145_v44 }
 0x5db   :  { %v2166_v22 = vadd.f32 %v4536_v49, %v2165_v50  ;;  %4543 = vrcp.f32 %v2146_v1 }
 0x5dc   :  { %v2155_v2 = vsel %vm2154_vm12, %v4534_v58, %v2151_v37  ;;  %v2186_v37 = vand.u32 2147483647, %v2145_v44  ;;  %vm2197_vm12 = vweird.f32 %v2146_v1 }
 0x5dd   :  { %v2160_v7 = vsel %vm2157_vm14, %v2159_v16, %v2155_v2  ;;  %v2170_v43 = vsel %vm2169_vm15, %v4536_v49, %v2166_v22  ;;  %v4570_v49 = vld [vmem:[%s6144_s0 + $0x8] sm:$0xff]  ;;  %v2203_v16 = vand.u32 2147483648, %v2146_v1  ;;  %v2201_v2 = vand.u32 2147483647, %v2146_v1 }
 0x5de   :  { %v2207_v32 = vperm.slane %v2160_v7, 0  ;;  %v2175_v13 = vsel %vm2172_vm7, %v2174_v60, %v2170_v43  ;;  %vm2187_vm13 = vcmp.eq.f32.partialorder %v2186_v37, 8.507059e+37 }
 0x5df   :  { %v2208_v5 = vperm.slane %v2175_v13, 0  ;;  %v2204_v13 = vor.u32 1.1754944e-38, %v2203_v16  ;;  %vm2202_vm15 = vcmp.eq.f32.partialorder %v2201_v2, 8.507059e+37 }
 0x5e0   :  { %v2211_v26 = vmul.f32 %v2207_v32, %v5440_v54  ;;  %v4542_v38 = vpop.eup %4541 }
 0x5e1   :  { %v2212_v17 = vmul.f32 %v2208_v5, %v5443_v30  ;;  %v4544_v53 = vpop.eup %4543  ;;  %v2178_v63 = vmul.f32 %v4542_v38, %v2145_v44  ;;  %v2188_v30 = vand.u32 2147483648, %v2145_v44  ;;  %vm2183_vm7 = vweird.f32 %v4542_v38  ;;  %v4571_v44 = vld [vmem:[%s6144_s0 + $0x10] sm:$0xff] }
 0x5e2   :  { %v5478_v58 = vadd.f32 %v4569_v29, %v2211_v26  ;;  %v2193_v50 = vmul.f32 %v4544_v53, %v2146_v1  ;;  %vm2198_vm8 = vweird.f32 %v4544_v53  ;;  %vm2184_vm11 = vmor %vm2182_vm9, %vm2183_vm7  ;;  %v4572_v1 = vld [vmem:[%s6144_s0 + $0x18] sm:$0xff]  ;;  %vm6231_vm7 = vcmp.lt.s32.totalorder %v4775_v8, 113 }
 0x5e3   :  { %v5483_v10 = vadd.f32 %v4570_v49, %v2212_v17  ;;  %v2179_v54 = vsub.f32 1.0, %v2178_v63  ;;  %v2189_v7 = vor.u32 1.1754944e-38, %v2188_v30  ;;  %vm2199_vm14 = vmor %vm2197_vm12, %vm2198_vm8  ;;  %vm6235_vm12 = vcmp.lt.s32.totalorder %v4775_v8, 112 }
 0x5e4   :  { %6227 = vst [vmem:[#allocation21_spill] sm:$0xff] %v5478_v58  ;;  %2251 = vrot.lane.b32.xlu0 %v5478_v58, %s4599_s22  ;;  %v2194_v59 = vsub.f32 1.0, %v2193_v50  ;;  %vm6232_vm8 = vmmov %vm6231_vm7 }
 0x5e5   :  { %6228 = vst [vmem:[#allocation22_spill] sm:$0xff] %v5483_v10  ;;  %2253 = vrot.lane.b32.xlu2 %v5483_v10, %s4599_s22  ;;  %v2180_v3 = vmul.f32 %v4542_v38, %v2179_v54  ;;  %vm6233_vm9 = vmmov %vm6231_vm7 }
 0x5e6   :  { %v2195_v22 = vmul.f32 %v4544_v53, %v2194_v59 }
 0x5e7   :  { %v2181_v60 = vadd.f32 %v4542_v38, %v2180_v3 }
 0x5e8   :  { %v2196_v43 = vadd.f32 %v4544_v53, %v2195_v22 }
 0x5e9   :  { %v2185_v32 = vsel %vm2184_vm11, %v4542_v38, %v2181_v60  ;;  %vm6234_vm11 = vmmov %vm6231_vm7 }
 0x5ea   :  { %v2190_v5 = vsel %vm2187_vm13, %v2189_v7, %v2185_v32  ;;  %v2200_v26 = vsel %vm2199_vm14, %v4544_v53, %v2196_v43  ;;  %v4391_v32 = vld [vmem:[%s6147_s3 + $0x28] sm:$0xf]  ;;  %vm6236_vm13 = vmmov %vm6235_vm12 }
 0x5eb   :  { %v2209_v17 = vperm.slane %v2190_v5, 0  ;;  %v2205_v29 = vsel %vm2202_vm15, %v2204_v13, %v2200_v26  ;;  %vm6237_vm14 = vmmov %vm6235_vm12 }
 0x5ec   :  { %v2210_v49 = vperm.slane %v2205_v29, 0  ;;  %vm6238_vm15 = vmmov %vm6235_vm12 }
 0x5ed   :  { %v2213_v63 = vmul.f32 %v2209_v17, %v5446_v34  ;;  %v4399_v34 = vld [vmem:[%s6148_s4 + $0x8] sm:$0xff] }
 0x5ee   :  { %v2214_v50 = vmul.f32 %v2210_v49, %v5449_v0 }
 0x5ef   :  { %v5494_v54 = vadd.f32 %v4571_v44, %v2213_v63 }
 0x5f0   :  { %v5499_v38 = vadd.f32 %v4572_v1, %v2214_v50 }
 0x5f1   :  { %6229 = vst [vmem:[#allocation23_spill] sm:$0xff] %v5494_v54  ;;  %2255 = vrot.lane.b32.xlu1 %v5494_v54, %s4599_s22 }
 0x5f2   :  { %6230 = vst [vmem:[#allocation24_spill] sm:$0xff] %v5499_v38  ;;  %2257 = vrot.lane.b32.xlu2 %v5499_v38, %s4599_s22  ;;  %2237 = vrot.lane.b32.xlu0 %v5499_v38, %s4600_s23 }
 0x5f9   :  { %2233 = vrot.lane.b32.xlu1 %v5483_v10, %s4600_s23 }
 0x5fa   :  { %2235 = vrot.lane.b32.xlu2 %v5494_v54, %s4600_s23  ;;  %2409 = vrot.lane.b32.xlu0 %v5494_v54, %s4601_s28 }
 0x601   :  { %2231 = vrot.lane.b32.xlu1 %v5478_v58, %s4600_s23 }
 0x602   :  { %2407 = vrot.lane.b32.xlu2 %v5483_v10, %s4601_s28  ;;  %2498 = vrot.lane.b32.xlu0 %v5483_v10, %s4602_s29 }
 0x609   :  { %2411 = vrot.lane.b32.xlu1 %v5499_v38, %s4601_s28 }
 0x60a   :  { %2405 = vrot.lane.b32.xlu2 %v5478_v58, %s4601_s28  ;;  %2496 = vrot.lane.b32.xlu0 %v5478_v58, %s4602_s29 }
 0x611   :  { %2500 = vrot.lane.b32.xlu1 %v5494_v54, %s4602_s29 }
 0x612   :  { %2502 = vrot.lane.b32.xlu2 %v5499_v38, %s4602_s29  ;;  %2662 = vrot.lane.b32.xlu0 %v5478_v58, %s4603_s30 }
 0x619   :  { %2666 = vrot.lane.b32.xlu1 %v5494_v54, %s4603_s30 }
 0x61a   :  { %2668 = vrot.lane.b32.xlu2 %v5499_v38, %s4603_s30  ;;  %2759 = vrot.lane.b32.xlu0 %v5499_v38, %s4604_s16 }
 0x621   :  { %2664 = vrot.lane.b32.xlu1 %v5483_v10, %s4603_s30 }
 0x622   :  { %2757 = vrot.lane.b32.xlu2 %v5494_v54, %s4604_s16  ;;  %2848 = vrot.lane.b32.xlu0 %v5494_v54, %s4605_s17 }
 0x629   :  { %2753 = vrot.lane.b32.xlu1 %v5478_v58, %s4604_s16 }
 0x62a   :  { %2755 = vrot.lane.b32.xlu2 %v5483_v10, %s4604_s16  ;;  %2846 = vrot.lane.b32.xlu0 %v5483_v10, %s4605_s17 }
 0x631   :  { %2850 = vrot.lane.b32.xlu1 %v5499_v38, %s4605_s17 }
 0x632   :  { %2844 = vrot.lane.b32.xlu2 %v5478_v58, %s4605_s17  ;;  %2935 = vrot.lane.b32.xlu0 %v5478_v58, %s4606_s18 }
 0x639   :  { %2939 = vrot.lane.b32.xlu1 %v5494_v54, %s4606_s18 }
 0x63a   :  { %2941 = vrot.lane.b32.xlu2 %v5499_v38, %s4606_s18 }
 0x63f   :  { %v2254_v0 = vpop.permute.xlu2 %2253 }
 0x641   :  { %2937 = vrot.lane.b32.xlu1 %v5483_v10, %s4606_s18 }
 0x642   :  { %3028 = vperm.xlu2 %4518, %v4399_v34  }
 0x64c   :  { %v2258_v53 = vpop.permute.xlu2 %2257 }
 0x654   :  { %v2236_v22 = vpop.permute.xlu2 %2235 }
 0x656   :  { %v2252_v30 = vpop.permute.xlu0 %2251 }
 0x657   :  { %v2261_v59 = vsel %vm107_vm1, %v2252_v30, %v2254_v0  ;;  %v2262_v3 = vsel %vm107_vm1, %v2258_v53, %v2252_v30 }
 0x658   :  { %v2263_v37 = vmul.f32 %v2262_v3, %v4796_v18  ;;  %v2264_v16 = vmul.f32 %v2261_v59, %v4798_v19 }
 0x65a   :  { %v2267_v2 = vpack.c.bf16 %v2263_v37, %v2263_v37  ;;  %v2268_v60 = vpack.c.bf16 %v2264_v16, %v2264_v16 }
 0x65c   :  { %v2275_v7 = vsel %vm135_vm3, %v2267_v2, 0  ;;  %v2278_v43 = vsel %vm135_vm3, %v2268_v60, 0  ;;  %v2408_v13 = vpop.permute.xlu2 %2407 }
 0x65d   :  { %2293 = vmatpush.bf16.msra.mxu0 %v2275_v7  ;;  %2306 = vmatpush.bf16.msra.mxu1 %v2278_v43 }
 0x660   :  { %4401 = vmatmul.msk.bf16.vlgmr.msra.gmra.mxu1 %vm131_vm4, %v4391_v32  ;;  %4400 = vmatmul.msk.bf16.vlgmr.msra.gmra.mxu0 %vm131_vm4, %v4391_v32 }
 0x663   :  { %v2256_v5 = vpop.permute.xlu1 %2255 }
 0x664   :  { %v2259_v26 = vsel %vm107_vm1, %v2256_v5, %v2258_v53  ;;  %v2260_v17 = vsel %vm107_vm1, %v2254_v0, %v2256_v5  ;;  %v2238_v29 = vpop.permute.xlu0 %2237  ;;  %v2406_v37 = vpop.permute.xlu2 %2405 }
 0x665   :  { %v2265_v49 = vmul.f32 %v2260_v17, %v4800_v20  ;;  %v2266_v63 = vmul.f32 %v2259_v26, %v4802_v21  ;;  %v2239_v50 = vsel %vm76_vm0, %v2236_v22, %v2238_v29  ;;  %v2415_v5 = vsel %vm275_vm2, %v2406_v37, %v2408_v13 }
 0x666   :  { %v2246_v44 = vmul.f32 %v2239_v50, %v4827_v42 }
 0x667   :  { %v2269_v1 = vpack.c.bf16 %v2265_v49, %v2265_v49  ;;  %v2270_v34 = vpack.c.bf16 %v2266_v63, %v2266_v63 }
 0x668   :  { %v2250_v30 = vpack.c.bf16 %v2246_v44, %v2246_v44 }
 0x669   :  { %v2281_v59 = vsel %vm135_vm3, %v2269_v1, 0  ;;  %v2284_v53 = vsel %vm135_vm3, %v2270_v34, 0 }
 0x66a   :  { %2319 = vmatpush.bf16.msra.mxu2 %v2281_v59  ;;  %2332 = vmatpush.bf16.msra.mxu3 %v2284_v53  ;;  %v2351_v0 = vsel %vm135_vm3, %v2250_v30, 0 }
 0x66b   :  { %v2234_v3 = vpop.permute.xlu1 %2233 }
 0x66c   :  { %v2240_v16 = vsel %vm76_vm0, %v2234_v3, %v2236_v22  ;;  %v2410_v2 = vpop.permute.xlu0 %2409  ;;  %v2418_v22 = vmul.f32 %v2415_v5, %v4804_v25 }
 0x66d   :  { %v2245_v60 = vmul.f32 %v2240_v16, %v4781_v12  ;;  %v2414_v7 = vsel %vm275_vm2, %v2408_v13, %v2410_v2  ;;  %4402 = vmatmul.msk.bf16.vlgmr.msra.gmra.mxu2 %vm131_vm4, %v4391_v32  ;;  %4403 = vmatmul.msk.bf16.vlgmr.msra.gmra.mxu3 %vm131_vm4, %v4391_v32 }
 0x66e   :  { %2399 = vmatpush.bf16.msrb.mxu3 %v2351_v0  ;;  %v2419_v43 = vmul.f32 %v2414_v7, %v4850_v61  ;;  %v2422_v30 = vpack.c.bf16 %v2418_v22, %v2418_v22  ;;  %v2503_v7 = vpop.permute.xlu2 %2502 }
 0x66f   :  { %v2249_v26 = vpack.c.bf16 %v2245_v60, %v2245_v60 }
 0x670   :  { %v2423_v17 = vpack.c.bf16 %v2419_v43, %v2419_v43  ;;  %v2432_v60 = vsel %vm135_vm3, %v2422_v30, 0 }
 0x671   :  { %v2348_v49 = vsel %vm135_vm3, %v2249_v26, 0 }
 0x672   :  { %2386 = vmatpush.bf16.msrb.mxu2 %v2348_v49  ;;  %v2435_v63 = vsel %vm135_vm3, %v2423_v17, 0 }
 0x673   :  { %v2232_v50 = vpop.permute.xlu1 %2231 }
 0x674   :  { %v2241_v44 = vsel %vm76_vm0, %v2232_v50, %v2234_v3  ;;  %v2242_v32 = vsel %vm76_vm0, %v2238_v29, %v2232_v50  ;;  %v2499_v1 = vpop.permute.xlu0 %2498  ;;  %v4390_v29 = vld [vmem:[%s6147_s3 + $0x24] sm:$0xf] }
 0x675   :  { %v2243_v13 = vmul.f32 %v2242_v32, %v4825_v41  ;;  %v2244_v34 = vmul.f32 %v2241_v44, %v4822_v35 }
 0x676   :  { %2473 = vmatpush.bf16.msra.mxu2 %v2435_v63 }
 0x677   :  { %v2247_v59 = vpack.c.bf16 %v2243_v13, %v2243_v13  ;;  %v2248_v53 = vpack.c.bf16 %v2244_v34, %v2244_v34 }
 0x679   :  { %v2342_v0 = vsel %vm135_vm3, %v2247_v59, 0  ;;  %v2345_v16 = vsel %vm135_vm3, %v2248_v53, 0 }
 0x67a   :  { %2360 = vmatpush.bf16.msrb.mxu0 %v2342_v0  ;;  %2373 = vmatpush.bf16.msrb.mxu1 %v2345_v16 }
 0x67b   :  { %v2412_v3 = vpop.permute.xlu1 %2411 }
 0x67c   :  { %v2413_v43 = vsel %vm275_vm2, %v2410_v2, %v2412_v3  ;;  %v2416_v5 = vsel %vm275_vm2, %v2412_v3, %v2406_v37  ;;  %v2497_v26 = vpop.permute.xlu0 %2496 }
 0x67d   :  { %v2417_v17 = vmul.f32 %v2416_v5, %v4852_v62  ;;  %v2420_v49 = vmul.f32 %v2413_v43, %v4858_v9  ;;  %v2506_v22 = vsel %vm378_vm5, %v2497_v26, %v2499_v1  ;;  %v2507_v63 = vsel %vm378_vm5, %v2503_v7, %v2497_v26  ;;  %4404 = vmatmul.msk.bf16.vlgmr.msrb.gmra.mxu0 %vm131_vm4, %v4390_v29 }
 0x67e   :  { %2460 = vmatpush.bf16.msra.mxu1 %v2432_v60  ;;  %v2508_v50 = vmul.f32 %v2507_v63, %v4897_v46  ;;  %v2509_v2 = vmul.f32 %v2506_v22, %v4895_v45  ;;  %4406 = vmatmul.msk.bf16.vlgmr.msrb.gmra.mxu2 %vm131_vm4, %v4390_v29  ;;  %v2588_v22 = vpack.c.bf16 %v5483_v10, %v5483_v10 }
 0x67f   :  { %4405 = vmatmul.msk.bf16.vlgmr.msrb.gmra.mxu1 %vm131_vm4, %v4390_v29  ;;  %v2421_v37 = vpack.c.bf16 %v2417_v17, %v2417_v17  ;;  %v2424_v44 = vpack.c.bf16 %v2420_v49, %v2420_v49  ;;  %4407 = vmatmul.msk.bf16.vlgmr.msrb.gmra.mxu3 %vm131_vm4, %v4390_v29  ;;  %v4392_v49 = vld [vmem:[%s6147_s3 + $0x2c] sm:$0xf]  ;;  %v2589_v63 = vpack.c.bf16 %v5494_v54, %v5494_v54 }
 0x680   :  { %v2512_v32 = vpack.c.bf16 %v2508_v50, %v2508_v50  ;;  %v2513_v13 = vpack.c.bf16 %v2509_v2, %v2509_v2  ;;  %v2590_v50 = vpack.c.bf16 %v5499_v38, %v5499_v38  ;;  %v2669_v2 = vpop.permute.xlu2 %2668 }
 0x681   :  { %v2429_v34 = vsel %vm135_vm3, %v2421_v37, 0  ;;  %v2438_v30 = vsel %vm135_vm3, %v2424_v44, 0  ;;  %v2598_v44 = vsel %vm135_vm3, %v2588_v22, 0 }
 0x682   :  { %2447 = vmatpush.bf16.msra.mxu0 %v2429_v34  ;;  %2486 = vmatpush.bf16.msra.mxu3 %v2438_v30  ;;  %v2523_v59 = vsel %vm135_vm3, %v2513_v13, 0  ;;  %v2520_v53 = vsel %vm135_vm3, %v2512_v32, 0  ;;  %v2601_v32 = vsel %vm135_vm3, %v2589_v63, 0  ;;  %v2604_v13 = vsel %vm135_vm3, %v2590_v50, 0 }
 0x683   :  { %2551 = vmatpush.bf16.msrb.mxu1 %v2523_v59  ;;  %v2501_v0 = vpop.permute.xlu1 %2500 }
 0x684   :  { %v2504_v16 = vsel %vm378_vm5, %v2501_v0, %v2503_v7  ;;  %v2505_v60 = vsel %vm378_vm5, %v2499_v1, %v2501_v0  ;;  %v2587_v7 = vpack.c.bf16 %v5478_v58, %v5478_v58  ;;  %v2663_v34 = vpop.permute.xlu0 %2662 }
 0x685   :  { %v2510_v29 = vmul.f32 %v2505_v60, %v4875_v28  ;;  %v2511_v3 = vmul.f32 %v2504_v16, %v4880_v31  ;;  %v2673_v16 = vsel %vm556_vm6, %v2669_v2, %v2663_v34 }
 0x686   :  { %2538 = vmatpush.bf16.msrb.mxu0 %v2520_v53  ;;  %v2595_v37 = vsel %vm135_vm3, %v2587_v7, 0 }
 0x687   :  { %v2514_v43 = vpack.c.bf16 %v2510_v29, %v2510_v29  ;;  %v2515_v5 = vpack.c.bf16 %v2511_v3, %v2511_v3 }
 0x688   :  { %v2758_v29 = vpop.permute.xlu2 %2757 }
 0x689   :  { %v2526_v26 = vsel %vm135_vm3, %v2514_v43, 0  ;;  %v2529_v17 = vsel %vm135_vm3, %v2515_v5, 0  ;;  %v2677_v5 = vmul.f32 %v2673_v16, %v4942_v24 }
 0x68a   :  { %2564 = vmatpush.bf16.msrb.mxu2 %v2526_v26  ;;  %2577 = vmatpush.bf16.msrb.mxu3 %v2529_v17  ;;  %v4393_v17 = vld [vmem:[%s6147_s3 + $0x30] sm:$0xf] }
 0x68b   :  { %v2667_v1 = vpop.permute.xlu1 %2666 }
 0x68c   :  { %v2670_v59 = vsel %vm556_vm6, %v2667_v1, %v2669_v2  ;;  %v2760_v22 = vpop.permute.xlu0 %2759 }
 0x68d   :  { %4408 = vmatmul.msk.bf16.vlgmr.msra.gmra.mxu0 %vm131_vm4, %v4392_v49  ;;  %v2676_v3 = vmul.f32 %v2670_v59, %v4932_v14 }
 0x68e   :  { %4410 = vmatmul.msk.bf16.vlgmr.msra.gmra.mxu2 %vm131_vm4, %v4392_v49  ;;  %2613 = vmatpush.bf16.msra.mxu0 %v2595_v37 }
 0x68f   :  { %4409 = vmatmul.msk.bf16.vlgmr.msra.gmra.mxu1 %vm131_vm4, %v4392_v49  ;;  %4411 = vmatmul.msk.bf16.vlgmr.msra.gmra.mxu3 %vm131_vm4, %v4392_v49  ;;  %v2680_v49 = vpack.c.bf16 %v2676_v3, %v2676_v3 }
 0x690   :  { %2626 = vmatpush.bf16.msra.mxu1 %v2598_v44  ;;  %2639 = vmatpush.bf16.msra.mxu2 %v2601_v32  ;;  %v2756_v32 = vpop.permute.xlu2 %2755 }
 0x691   :  { %2652 = vmatpush.bf16.msra.mxu3 %v2604_v13  ;;  %v2692_v2 = vsel %vm135_vm3, %v2680_v49, 0 }
 0x693   :  { %v2665_v30 = vpop.permute.xlu1 %2664 }
 0x694   :  { %v2671_v53 = vsel %vm556_vm6, %v2665_v30, %v2667_v1  ;;  %v2672_v0 = vsel %vm556_vm6, %v2663_v34, %v2665_v30  ;;  %v2681_v1 = vpack.c.bf16 %v2677_v5, %v2677_v5  ;;  %v2762_v34 = vsel %vm6232_vm8, %v2756_v32, %v2758_v29  ;;  %v4394_v5 = vld [vmem:[%s6147_s3 + $0x34] sm:$0xf] }
 0x695   :  { %v2674_v60 = vmul.f32 %v2672_v0, %v4940_v23  ;;  %v2675_v43 = vmul.f32 %v2671_v53, %v4934_v15  ;;  %v2761_v30 = vsel %vm6233_vm9, %v2758_v29, %v2760_v22  ;;  %v2849_v53 = vpop.permute.xlu0 %2848  ;;  %v2766_v16 = vmul.f32 %v2762_v34, %v4969_v52 }
 0x696   :  { %v2695_v44 = vsel %vm135_vm3, %v2681_v1, 0 }
 0x697   :  { %v2678_v26 = vpack.c.bf16 %v2674_v60, %v2674_v60  ;;  %v2679_v7 = vpack.c.bf16 %v2675_v43, %v2675_v43  ;;  %v2767_v60 = vmul.f32 %v2761_v30, %v4967_v51 }
 0x699   :  { %v2686_v63 = vsel %vm135_vm3, %v2678_v26, 0  ;;  %v2689_v50 = vsel %vm135_vm3, %v2679_v7, 0  ;;  %v2770_v26 = vpack.c.bf16 %v2766_v16, %v2766_v16  ;;  %v6239_v16 = vld [vmem:[#allocation8_spill] sm:$0xff] }
 0x69b   :  { %v2754_v37 = vpop.permute.xlu1 %2753  ;;  %v2780_v1 = vsel %vm135_vm3, %v2770_v26, 0 }
 0x69c   :  { %v2763_v13 = vsel %vm6231_vm7, %v2754_v37, %v2756_v32  ;;  %v2764_v59 = vsel %vm6234_vm11, %v2760_v22, %v2754_v37  ;;  %vm6240_vm7 = vcmp.lt.s32.totalorder %v4775_v8, 111 }
 0x69d   :  { %4412 = vmatmul.msk.bf16.vlgmr.msrb.gmra.mxu0 %vm131_vm4, %v4393_v17  ;;  %v2765_v0 = vmul.f32 %v2763_v13, %v4975_v55  ;;  %v2768_v3 = vmul.f32 %v2764_v59, %v4977_v56  ;;  %vm6241_vm8 = vmmov %vm6240_vm7 }
 0x69e   :  { %4414 = vmatmul.msk.bf16.vlgmr.msrb.gmra.mxu2 %vm131_vm4, %v4393_v17  ;;  %2704 = vmatpush.bf16.msrb.mxu0 %v2686_v63  ;;  %v2847_v63 = vpop.permute.xlu0 %2846  ;;  %vm6242_vm9 = vmmov %vm6240_vm7 }
 0x69f   :  { %4413 = vmatmul.msk.bf16.vlgmr.msrb.gmra.mxu1 %vm131_vm4, %v4393_v17  ;;  %4415 = vmatmul.msk.bf16.vlgmr.msrb.gmra.mxu3 %vm131_vm4, %v4393_v17  ;;  %v2769_v43 = vpack.c.bf16 %v2765_v0, %v2765_v0  ;;  %v2771_v17 = vpack.c.bf16 %v2767_v60, %v2767_v60  ;;  %v2772_v29 = vpack.c.bf16 %v2768_v3, %v2768_v3  ;;  %vm6243_vm11 = vmmov %vm6240_vm7 }
 0x6a0   :  { %2717 = vmatpush.bf16.msrb.mxu1 %v2689_v50  ;;  %2730 = vmatpush.bf16.msrb.mxu2 %v2692_v2  ;;  %v2845_v2 = vpop.permute.xlu2 %2844 }
 0x6a1   :  { %2743 = vmatpush.bf16.msrb.mxu3 %v2695_v44  ;;  %v2777_v7 = vsel %vm135_vm3, %v2769_v43, 0  ;;  %v2783_v22 = vsel %vm135_vm3, %v2771_v17, 0  ;;  %v2786_v50 = vsel %vm135_vm3, %v2772_v29, 0  ;;  %v2854_v37 = vsel %vm6235_vm12, %v2845_v2, %v2847_v63  ;;  %v4395_v43 = vld [vmem:[%s6147_s3 + $0x38] sm:$0xf] }
 0x6a2   :  { %v2853_v44 = vsel %vm6236_vm13, %v2847_v63, %v2849_v53  ;;  %v2856_v34 = vmul.f32 %v2854_v37, %v6213_v33 }
 0x6a3   :  { %v2851_v49 = vpop.permute.xlu1 %2850  ;;  %v2857_v59 = vmul.f32 %v2853_v44, %v6214_v40 }
 0x6a4   :  { %v2852_v32 = vsel %vm6237_vm14, %v2849_v53, %v2851_v49  ;;  %v2855_v13 = vsel %vm6238_vm15, %v2851_v49, %v2845_v2  ;;  %v2860_v3 = vpack.c.bf16 %v2856_v34, %v2856_v34  ;;  %v6245_v34 = vld [vmem:[#allocation9_spill] sm:$0xff]  ;;  %vm6260_vm15 = vmmov %vm6240_vm7 }
 0x6a5   :  { %v2858_v0 = vmul.f32 %v2852_v32, %v6211_v6  ;;  %v2859_v60 = vmul.f32 %v2855_v13, %v6239_v16  ;;  %v6244_v32 = vld [vmem:[#allocation11_spill] sm:$0xff] }
 0x6a6   :  { %v2868_v17 = vsel %vm135_vm3, %v2860_v3, 0  ;;  %v6247_v3 = vld [vmem:[#allocation12_spill] sm:$0xff] }
 0x6a7   :  { %v2862_v26 = vpack.c.bf16 %v2858_v0, %v2858_v0  ;;  %v2863_v53 = vpack.c.bf16 %v2859_v60, %v2859_v60  ;;  %v6246_v0 = vld [vmem:[#allocation10_spill] sm:$0xff] }
 0x6a8   :  { %v2942_v63 = vpop.permute.xlu2 %2941 }
 0x6a9   :  { %v2874_v49 = vsel %vm135_vm3, %v2862_v26, 0  ;;  %v4396_v26 = vld [vmem:[%s6147_s3 + $0x3c] sm:$0xf] }
 0x6ab   :  { %v2940_v30 = vpop.permute.xlu1 %2939 }
 0x6ac   :  { %v2943_v2 = vsel %vm6241_vm8, %v2940_v30, %v2942_v63  ;;  %vm6261_vm8 = vmmov %vm6240_vm7 }
 0x6ad   :  { %4416 = vmatmul.msk.bf16.vlgmr.msra.gmra.mxu0 %vm131_vm4, %v4394_v5 }
 0x6ae   :  { %4418 = vmatmul.msk.bf16.vlgmr.msra.gmra.mxu2 %vm131_vm4, %v4394_v5  ;;  %2795 = vmatpush.bf16.msra.mxu0 %v2777_v7 }
 0x6af   :  { %4417 = vmatmul.msk.bf16.vlgmr.msra.gmra.mxu1 %vm131_vm4, %v4394_v5  ;;  %4419 = vmatmul.msk.bf16.vlgmr.msra.gmra.mxu3 %vm131_vm4, %v4394_v5  ;;  %v2861_v5 = vpack.c.bf16 %v2857_v59, %v2857_v59  ;;  %v2949_v59 = vmul.f32 %v2943_v2, %v6245_v34 }
 0x6b0   :  { %2808 = vmatpush.bf16.msra.mxu1 %v2780_v1  ;;  %2821 = vmatpush.bf16.msra.mxu2 %v2783_v22  ;;  %v2877_v1 = vsel %vm135_vm3, %v2863_v53, 0  ;;  %v2936_v22 = vpop.permute.xlu0 %2935  ;;  %v3029_v40 = vpop.permute.xlu2 %3028 }
 0x6b1   :  { %2834 = vmatpush.bf16.msra.mxu3 %v2786_v50  ;;  %v2871_v29 = vsel %vm135_vm3, %v2861_v5, 0  ;;  %v2946_v44 = vsel %vm6243_vm11, %v2942_v63, %v2936_v22  ;;  %v2953_v53 = vpack.c.bf16 %v2949_v59, %v2949_v59 }
 0x6b3   :  { %v2938_v7 = vpop.permute.xlu1 %2937 }
 0x6b4   :  { %v2945_v50 = vsel %vm6240_vm7, %v2936_v22, %v2938_v7  ;;  %v2944_v37 = vsel %vm6242_vm9, %v2938_v7, %v2940_v30  ;;  %v2965_v7 = vsel %vm135_vm3, %v2953_v53, 0  ;;  %v4397_v22 = vld [vmem:[%s6147_s3 + $0x40] sm:$0xf]  ;;  %vm6262_vm9 = vmmov %vm6240_vm7 }
 0x6b5   :  { %v2947_v13 = vmul.f32 %v2945_v50, %v6244_v32  ;;  %v2948_v60 = vmul.f32 %v2944_v37, %v6246_v0 }
 0x6b7   :  { %v2951_v5 = vpack.c.bf16 %v2947_v13, %v2947_v13 }
 0x6b9   :  { %v2959_v30 = vsel %vm135_vm3, %v2951_v5, 0 }
 0x6bd   :  { %4420 = vmatmul.msk.bf16.vlgmr.msrb.gmra.mxu0 %vm131_vm4, %v4395_v43 }
 0x6be   :  { %4422 = vmatmul.msk.bf16.vlgmr.msrb.gmra.mxu2 %vm131_vm4, %v4395_v43  ;;  %2886 = vmatpush.bf16.msrb.mxu0 %v2868_v17  ;;  %v2952_v17 = vpack.c.bf16 %v2948_v60, %v2948_v60 }
 0x6bf   :  { %4421 = vmatmul.msk.bf16.vlgmr.msrb.gmra.mxu1 %vm131_vm4, %v4395_v43  ;;  %4423 = vmatmul.msk.bf16.vlgmr.msrb.gmra.mxu3 %vm131_vm4, %v4395_v43  ;;  %v2950_v43 = vmul.f32 %v2946_v44, %v6247_v3  ;;  %v4398_v44 = vld [vmem:[%s6147_s3 + $0x44] sm:$0xf] }
 0x6c0   :  { %2899 = vmatpush.bf16.msrb.mxu1 %v2871_v29  ;;  %2912 = vmatpush.bf16.msrb.mxu2 %v2874_v49  ;;  %v2962_v49 = vsel %vm135_vm3, %v2952_v17, 0 }
 0x6c1   :  { %2925 = vmatpush.bf16.msrb.mxu3 %v2877_v1  ;;  %v2954_v29 = vpack.c.bf16 %v2950_v43, %v2950_v43 }
 0x6c3   :  { %v2968_v1 = vsel %vm135_vm3, %v2954_v29, 0 }
 0x6cd   :  { %4424 = vmatmul.msk.bf16.vlgmr.msra.gmra.mxu0 %vm131_vm4, %v4396_v26 }
 0x6ce   :  { %4426 = vmatmul.msk.bf16.vlgmr.msra.gmra.mxu2 %vm131_vm4, %v4396_v26  ;;  %2977 = vmatpush.bf16.msra.mxu0 %v2959_v30 }
 0x6cf   :  { %4425 = vmatmul.msk.bf16.vlgmr.msra.gmra.mxu1 %vm131_vm4, %v4396_v26  ;;  %4427 = vmatmul.msk.bf16.vlgmr.msra.gmra.mxu3 %vm131_vm4, %v4396_v26 }
 0x6d0   :  { %2990 = vmatpush.bf16.msra.mxu1 %v2962_v49  ;;  %3003 = vmatpush.bf16.msra.mxu2 %v2965_v7 }
 0x6d1   :  { %3016 = vmatpush.bf16.msra.mxu3 %v2968_v1 }
 0x6dd   :  { %v2308_v63 = vpop.f32.mrf.mxu1  ;;  %v2295_v50 = vpop.f32.mrf.mxu0  ;;  %4428 = vmatmul.msk.bf16.vlgmr.msrb.gmra.mxu0 %vm131_vm4, %v4397_v22 }
 0x6de   :  { %4430 = vmatmul.msk.bf16.vlgmr.msrb.gmra.mxu2 %vm131_vm4, %v4397_v22 }
 0x6df   :  { %4429 = vmatmul.msk.bf16.vlgmr.msrb.gmra.mxu1 %vm131_vm4, %v4397_v22  ;;  %4431 = vmatmul.msk.bf16.vlgmr.msrb.gmra.mxu3 %vm131_vm4, %v4397_v22 }
 0x6e5   :  { %v2310_v2 = vpop.f32.mrf.mxu1  ;;  %v2297_v37 = vpop.f32.mrf.mxu0 }
 0x6ed   :  { %4432 = vmatmul.msk.bf16.vlgmr.msra.gmra.mxu0 %vm131_vm4, %v4398_v44 }
 0x6ee   :  { %4434 = vmatmul.msk.bf16.vlgmr.msra.gmra.mxu2 %vm131_vm4, %v4398_v44 }
 0x6ef   :  { %4433 = vmatmul.msk.bf16.vlgmr.msra.gmra.mxu1 %vm131_vm4, %v4398_v44  ;;  %4435 = vmatmul.msk.bf16.vlgmr.msra.gmra.mxu3 %vm131_vm4, %v4398_v44 }
 0x6f0   :  { %v2321_v13 = vpop.f32.mrf.mxu2  ;;  %v2334_v59 = vpop.f32.mrf.mxu3 }
 0x6f8   :  { %v2323_v60 = vpop.f32.mrf.mxu2  ;;  %v2336_v43 = vpop.f32.mrf.mxu3 }
 0x6fa   :  { %v2362_v5 = vpop.f32.mrf.mxu0 }
 0x6fb   :  { %v2363_v26 = vadd.f32 %v2362_v5, %v2295_v50 }
 0x6fc   :  { %v2375_v53 = vpop.f32.mrf.mxu1 }
 0x6fd   :  { %v2376_v17 = vadd.f32 %v2375_v53, %v2308_v63 }
 0x701   :  { %v2388_v29 = vpop.f32.mrf.mxu2 }
 0x702   :  { %v2389_v30 = vadd.f32 %v2388_v29, %v2321_v13  ;;  %v2401_v49 = vpop.f32.mrf.mxu3  ;;  %v2364_v7 = vpop.f32.mrf.mxu0 }
 0x703   :  { %v2402_v1 = vadd.f32 %v2401_v49, %v2334_v59 }
 0x704   :  { %v2377_v22 = vpop.f32.mrf.mxu1 }
 0x709   :  { %v2390_v2 = vpop.f32.mrf.mxu2 }
 0x70a   :  { %v2403_v37 = vpop.f32.mrf.mxu3  ;;  %v2449_v38 = vpop.f32.mrf.mxu0 }
 0x70b   :  { %v2492_v54 = vadd.f32 %v2449_v38, %v2363_v26 }
 0x70c   :  { %v2462_v10 = vpop.f32.mrf.mxu1 }
 0x70d   :  { %v2493_v44 = vadd.f32 %v2462_v10, %v2376_v17 }
 0x711   :  { %v2475_v58 = vpop.f32.mrf.mxu2 }
 0x712   :  { %v2494_v36 = vadd.f32 %v2475_v58, %v2389_v30  ;;  %v2488_v60 = vpop.f32.mrf.mxu3  ;;  %v2451_v43 = vpop.f32.mrf.mxu0 }
 0x713   :  { %v2495_v27 = vadd.f32 %v2488_v60, %v2402_v1 }
 0x714   :  { %v2464_v50 = vpop.f32.mrf.mxu1 }
 0x719   :  { %v2477_v5 = vpop.f32.mrf.mxu2 }
 0x71a   :  { %v2490_v63 = vpop.f32.mrf.mxu3  ;;  %v2540_v53 = vpop.f32.mrf.mxu0 }
 0x71b   :  { %v2583_v13 = vadd.f32 %v2540_v53, %v2492_v54 }
 0x71c   :  { %v2553_v29 = vpop.f32.mrf.mxu1 }
 0x71d   :  { %v2584_v7 = vadd.f32 %v2553_v29, %v2493_v44 }
 0x721   :  { %v2566_v59 = vpop.f32.mrf.mxu2 }
 0x722   :  { %v2585_v49 = vadd.f32 %v2566_v59, %v2494_v36  ;;  %v2579_v22 = vpop.f32.mrf.mxu3  ;;  %v2542_v2 = vpop.f32.mrf.mxu0 }
 0x723   :  { %v2586_v37 = vadd.f32 %v2579_v22, %v2495_v27 }
 0x724   :  { %v2555_v38 = vpop.f32.mrf.mxu1 }
 0x729   :  { %v2568_v26 = vpop.f32.mrf.mxu2 }
 0x72a   :  { %v2581_v10 = vpop.f32.mrf.mxu3  ;;  %v2615_v17 = vpop.f32.mrf.mxu0 }
 0x72b   :  { %v2658_v58 = vadd.f32 %v2615_v17, %v2583_v13 }
 0x72c   :  { %v2628_v30 = vpop.f32.mrf.mxu1 }
 0x72d   :  { %v2659_v4 = vadd.f32 %v2628_v30, %v2584_v7 }
 0x731   :  { %v2641_v43 = vpop.f32.mrf.mxu2 }
 0x732   :  { %v2654_v1 = vpop.f32.mrf.mxu3  ;;  %v2617_v60 = vpop.f32.mrf.mxu0 }
 0x733   :  { %v2661_v34 = vadd.f32 %v2654_v1, %v2586_v37 }
 0x734   :  { %v2630_v50 = vpop.f32.mrf.mxu1 }
 0x739   :  { %v2643_v5 = vpop.f32.mrf.mxu2 }
 0x73a   :  { %v2656_v63 = vpop.f32.mrf.mxu3  ;;  %v2706_v54 = vpop.f32.mrf.mxu0 }
 0x73c   :  { %v2719_v53 = vpop.f32.mrf.mxu1 }
 0x73d   :  { %v2750_v39 = vadd.f32 %v2719_v53, %v2659_v4 }
 0x741   :  { %v2732_v44 = vpop.f32.mrf.mxu2 }
 0x742   :  { %v2745_v29 = vpop.f32.mrf.mxu3  ;;  %v2708_v36 = vpop.f32.mrf.mxu0 }
 0x743   :  { %v2752_v33 = vadd.f32 %v2745_v29, %v2661_v34 }
 0x744   :  { %v2721_v59 = vpop.f32.mrf.mxu1 }
 0x749   :  { %v2734_v2 = vpop.f32.mrf.mxu2 }
 0x74a   :  { %v2747_v27 = vpop.f32.mrf.mxu3  ;;  %v2797_v22 = vpop.f32.mrf.mxu0  ;;  %v2660_v2 = vadd.f32 %v2641_v43, %v2585_v49 }
 0x74b   :  { %v2749_v27 = vadd.f32 %v2706_v54, %v2658_v58 }
 0x74c   :  { %v2810_v38 = vpop.f32.mrf.mxu1 }
 0x74d   :  { %v2841_v36 = vadd.f32 %v2810_v38, %v2750_v39 }
 0x751   :  { %v2823_v26 = vpop.f32.mrf.mxu2 }
 0x752   :  { %v2836_v10 = vpop.f32.mrf.mxu3  ;;  %v2799_v13 = vpop.f32.mrf.mxu0 }
 0x754   :  { %v2812_v17 = vpop.f32.mrf.mxu1 }
 0x755   :  { %v2751_v17 = vadd.f32 %v2732_v44, %v2660_v2 }
 0x757   :  { %v2842_v16 = vadd.f32 %v2823_v26, %v2751_v17 }
 0x759   :  { %v2825_v11 = vpop.f32.mrf.mxu2 }
 0x75a   :  { %v2838_v48 = vpop.f32.mrf.mxu3  ;;  %v2888_v60 = vpop.f32.mrf.mxu0  ;;  %v2840_v11 = vadd.f32 %v2797_v22, %v2749_v27 }
 0x75c   :  { %v2901_v50 = vpop.f32.mrf.mxu1  ;;  %v2931_v6 = vadd.f32 %v2888_v60, %v2840_v11 }
 0x75d   :  { %v2932_v0 = vadd.f32 %v2901_v50, %v2841_v36 }
 0x761   :  { %v2914_v5 = vpop.f32.mrf.mxu2 }
 0x762   :  { %v2927_v63 = vpop.f32.mrf.mxu3  ;;  %v2890_v57 = vpop.f32.mrf.mxu0  ;;  %v2933_v7 = vadd.f32 %v2914_v5, %v2842_v16 }
 0x764   :  { %v2903_v47 = vpop.f32.mrf.mxu1 }
 0x765   :  { %v2843_v47 = vadd.f32 %v2836_v10, %v2752_v33 }
 0x767   :  { %v2934_v49 = vadd.f32 %v2927_v63, %v2843_v47 }
 0x769   :  { %v2916_v59 = vpop.f32.mrf.mxu2 }
 0x76a   :  { %v2929_v32 = vpop.f32.mrf.mxu3  ;;  %v2979_v3 = vpop.f32.mrf.mxu0 }
 0x76b   :  { %v3022_v4 = vadd.f32 %v2979_v3, %v2931_v6 }
 0x76c   :  { %v2992_v13 = vpop.f32.mrf.mxu1 }
 0x76d   :  { %v3023_v48 = vadd.f32 %v2992_v13, %v2932_v0  ;;  %v3031_v1 = vadd.f32 %v3029_v40, %v3022_v4 }
 0x76f   :  { %v3032_v57 = vadd.f32 %v3029_v40, %v3023_v48  ;;  %v5775_v6 = vmax.f32 %v3031_v1, 0.0 }
 0x771   :  { %v5767_v39 = vmax.f32 %v3032_v57, 0.0  ;;  %v3005_v58 = vpop.f32.mrf.mxu2 }
 0x772   :  { %v3024_v30 = vadd.f32 %v3005_v58, %v2933_v7  ;;  %v3018_v32 = vpop.f32.mrf.mxu3  ;;  %v2981_v37 = vpop.f32.mrf.mxu0 }
 0x773   :  { %3073 = vrot.lane.b32.xlu0 %v5767_v39, %s4599_s22  ;;  %v3025_v43 = vadd.f32 %v3018_v32, %v2934_v49 }
 0x774   :  { %v2994_v0 = vpop.f32.mrf.mxu1  ;;  %v3033_v34 = vadd.f32 %v3029_v40, %v3024_v30 }
 0x775   :  { %v3034_v54 = vadd.f32 %v3029_v40, %v3025_v43  ;;  %v4445_v40 = vld [vmem:[%s6150_s6 + $0x8] sm:$0xff] }
 0x776   :  { %v5771_v53 = vmax.f32 %v3033_v34, 0.0 }
 0x777   :  { %v5773_v33 = vmax.f32 %v3034_v54, 0.0 }
 0x778   :  { %3075 = vrot.lane.b32.xlu1 %v5771_v53, %s4599_s22 }
 0x779   :  { %3077 = vrot.lane.b32.xlu2 %v5773_v33, %s4599_s22  ;;  %v3007_v16 = vpop.f32.mrf.mxu2 }
 0x77a   :  { %v3020_v3 = vpop.f32.mrf.mxu3 }
 0x77b   :  { %3071 = vrot.lane.b32.xlu0 %v5775_v6, %s4599_s22 }
 0x780   :  { %3053 = vrot.lane.b32.xlu1 %v5767_v39, %s4600_s23 }
 0x781   :  { %3055 = vrot.lane.b32.xlu2 %v5771_v53, %s4600_s23 }
 0x783   :  { %3057 = vrot.lane.b32.xlu0 %v5773_v33, %s4600_s23 }
 0x788   :  { %3051 = vrot.lane.b32.xlu1 %v5775_v6, %s4600_s23 }
 0x789   :  { %3227 = vrot.lane.b32.xlu2 %v5767_v39, %s4601_s28 }
 0x78b   :  { %3229 = vrot.lane.b32.xlu0 %v5771_v53, %s4601_s28 }
 0x790   :  { %3231 = vrot.lane.b32.xlu1 %v5773_v33, %s4601_s28 }
 0x791   :  { %3225 = vrot.lane.b32.xlu2 %v5775_v6, %s4601_s28 }
 0x793   :  { %3318 = vrot.lane.b32.xlu0 %v5767_v39, %s4602_s29 }
 0x798   :  { %3320 = vrot.lane.b32.xlu1 %v5771_v53, %s4602_s29 }
 0x799   :  { %3322 = vrot.lane.b32.xlu2 %v5773_v33, %s4602_s29 }
 0x79b   :  { %3316 = vrot.lane.b32.xlu0 %v5775_v6, %s4602_s29 }
 0x7a0   :  { %3486 = vrot.lane.b32.xlu1 %v5771_v53, %s4603_s30 }
 0x7a1   :  { %3488 = vrot.lane.b32.xlu2 %v5773_v33, %s4603_s30 }
 0x7a3   :  { %3482 = vrot.lane.b32.xlu0 %v5775_v6, %s4603_s30 }
 0x7a8   :  { %3484 = vrot.lane.b32.xlu1 %v5767_v39, %s4603_s30 }
 0x7a9   :  { %3577 = vrot.lane.b32.xlu2 %v5771_v53, %s4604_s16 }
 0x7ab   :  { %3579 = vrot.lane.b32.xlu0 %v5773_v33, %s4604_s16 }
 0x7b0   :  { %3573 = vrot.lane.b32.xlu1 %v5775_v6, %s4604_s16 }
 0x7b1   :  { %3575 = vrot.lane.b32.xlu2 %v5767_v39, %s4604_s16 }
 0x7b3   :  { %3668 = vrot.lane.b32.xlu0 %v5771_v53, %s4605_s17 }
 0x7b8   :  { %3670 = vrot.lane.b32.xlu1 %v5773_v33, %s4605_s17 }
 0x7b9   :  { %3664 = vrot.lane.b32.xlu2 %v5775_v6, %s4605_s17 }
 0x7bb   :  { %3666 = vrot.lane.b32.xlu0 %v5767_v39, %s4605_s17 }
 0x7c0   :  { %3759 = vrot.lane.b32.xlu1 %v5771_v53, %s4606_s18 }
 0x7c1   :  { %3761 = vrot.lane.b32.xlu2 %v5773_v33, %s4606_s18 }
 0x7c3   :  { %3755 = vrot.lane.b32.xlu0 %v5775_v6, %s4606_s18 }
 0x7c8   :  { %3757 = vrot.lane.b32.xlu1 %v5767_v39, %s4606_s18 }
 0x7c9   :  { %3848 = vperm.xlu2 %4518, %v4445_v40  }
 0x7d3   :  { %v3078_v44 = vpop.permute.xlu2 %3077 }
 0x7db   :  { %v3056_v29 = vpop.permute.xlu2 %3055 }
 0x7e3   :  { %v3228_v38 = vpop.permute.xlu2 %3227 }
 0x7e5   :  { %v3074_v22 = vpop.permute.xlu0 %3073 }
 0x7ea   :  { %v3076_v26 = vpop.permute.xlu1 %3075 }
 0x7eb   :  { %v3079_v10 = vsel %vm107_vm1, %v3076_v26, %v3078_v44  ;;  %v3080_v60 = vsel %vm107_vm1, %v3074_v22, %v3076_v26 }
 0x7ec   :  { %v3085_v50 = vmul.f32 %v3080_v60, %v4800_v20  ;;  %v3086_v5 = vmul.f32 %v3079_v10, %v4802_v21  ;;  %v4437_v21 = vld [vmem:[%s6149_s5 + $0x28] sm:$0xf] }
 0x7ed   :  { %v3072_v63 = vpop.permute.xlu0 %3071 }
 0x7ee   :  { %v3081_v36 = vsel %vm107_vm1, %v3072_v63, %v3074_v22  ;;  %v3082_v59 = vsel %vm107_vm1, %v3078_v44, %v3072_v63  ;;  %v3089_v2 = vpack.c.bf16 %v3085_v50, %v3085_v50  ;;  %v3090_v27 = vpack.c.bf16 %v3086_v5, %v3086_v5 }
 0x7ef   :  { %v3083_v13 = vmul.f32 %v3082_v59, %v4796_v18  ;;  %v3084_v17 = vmul.f32 %v3081_v36, %v4798_v19  ;;  %v3226_v18 = vpop.permute.xlu2 %3225 }
 0x7f0   :  { %v3101_v57 = vsel %vm135_vm3, %v3089_v2, 0  ;;  %v3104_v20 = vsel %vm135_vm3, %v3090_v27, 0  ;;  %v3235_v32 = vsel %vm275_vm2, %v3226_v18, %v3228_v38 }
 0x7f1   :  { %v3087_v11 = vpack.c.bf16 %v3083_v13, %v3083_v13  ;;  %v3088_v48 = vpack.c.bf16 %v3084_v17, %v3084_v17  ;;  %3139 = vmatpush.bf16.msrb.mxu2 %v3101_v57  ;;  %3152 = vmatpush.bf16.msrb.mxu3 %v3104_v20  ;;  %v3238_v1 = vmul.f32 %v3235_v32, %v4804_v25 }
 0x7f2   :  { %v3054_v47 = vpop.permute.xlu1 %3053  ;;  %v3409_v32 = vpack.c.bf16 %v5771_v53, %v5771_v53 }
 0x7f3   :  { %v3095_v7 = vsel %vm135_vm3, %v3087_v11, 0  ;;  %v3098_v4 = vsel %vm135_vm3, %v3088_v48, 0  ;;  %v3060_v19 = vsel %vm76_vm0, %v3054_v47, %v3056_v29 }
 0x7f4   :  { %3113 = vmatpush.bf16.msrb.mxu0 %v3095_v7  ;;  %3126 = vmatpush.bf16.msrb.mxu1 %v3098_v4  ;;  %v3065_v49 = vmul.f32 %v3060_v19, %v4781_v12 }
 0x7f5   :  { %4448 = vmatmul.msk.bf16.vlgmr.msrb.gmra.mxu2 %vm131_vm4, %v4437_v21  ;;  %4449 = vmatmul.msk.bf16.vlgmr.msrb.gmra.mxu3 %vm131_vm4, %v4437_v21  ;;  %v3058_v58 = vpop.permute.xlu0 %3057 }
 0x7f6   :  { %v3059_v30 = vsel %vm76_vm0, %v3056_v29, %v3058_v58  ;;  %v3069_v37 = vpack.c.bf16 %v3065_v49, %v3065_v49  ;;  %v3242_v29 = vpack.c.bf16 %v3238_v1, %v3238_v1  ;;  %v3408_v1 = vpack.c.bf16 %v5767_v39, %v5767_v39 }
 0x7f7   :  { %v3066_v43 = vmul.f32 %v3059_v30, %v4827_v42  ;;  %4446 = vmatmul.msk.bf16.vlgmr.msrb.gmra.mxu0 %vm131_vm4, %v4437_v21  ;;  %4447 = vmatmul.msk.bf16.vlgmr.msrb.gmra.mxu1 %vm131_vm4, %v4437_v21 }
 0x7f8   :  { %v3168_v12 = vsel %vm135_vm3, %v3069_v37, 0 }
 0x7f9   :  { %v3070_v0 = vpack.c.bf16 %v3066_v43, %v3066_v43  ;;  %3206 = vmatpush.bf16.msra.mxu2 %v3168_v12 }
 0x7fa   :  { %v3052_v34 = vpop.permute.xlu1 %3051 }
 0x7fb   :  { %v3171_v54 = vsel %vm135_vm3, %v3070_v0, 0  ;;  %v3061_v16 = vsel %vm76_vm0, %v3052_v34, %v3054_v47  ;;  %v3062_v3 = vsel %vm76_vm0, %v3058_v58, %v3052_v34  ;;  %vm6248_vm0 = vcmp.lt.s32.totalorder %v4775_v8, 113 }
 0x7fc   :  { %3219 = vmatpush.bf16.msra.mxu3 %v3171_v54  ;;  %v3063_v42 = vmul.f32 %v3062_v3, %v4825_v41  ;;  %v3064_v40 = vmul.f32 %v3061_v16, %v4822_v35  ;;  %v3252_v41 = vsel %vm135_vm3, %v3242_v29, 0  ;;  %v4436_v35 = vld [vmem:[%s6149_s5 + $0x24] sm:$0xf]  ;;  %v3421_v54 = vsel %vm135_vm3, %v3409_v32, 0  ;;  %vm6249_vm1 = vmmov %vm6248_vm0 }
 0x7fd   :  { %v3230_v44 = vpop.permute.xlu0 %3229 }
 0x7fe   :  { %v3234_v25 = vsel %vm275_vm2, %v3228_v38, %v3230_v44  ;;  %v3067_v22 = vpack.c.bf16 %v3063_v42, %v3063_v42  ;;  %v3068_v26 = vpack.c.bf16 %v3064_v40, %v3064_v40 }
 0x7ff   :  { %v3239_v10 = vmul.f32 %v3234_v25, %v4850_v61 }
 0x800   :  { %v3162_v50 = vsel %vm135_vm3, %v3067_v22, 0  ;;  %v3165_v5 = vsel %vm135_vm3, %v3068_v26, 0 }
 0x801   :  { %v3243_v60 = vpack.c.bf16 %v3239_v10, %v3239_v10  ;;  %3180 = vmatpush.bf16.msra.mxu0 %v3162_v50  ;;  %3193 = vmatpush.bf16.msra.mxu1 %v3165_v5 }
 0x802   :  { %v3232_v63 = vpop.permute.xlu1 %3231 }
 0x803   :  { %v3255_v38 = vsel %vm135_vm3, %v3243_v60, 0  ;;  %v3233_v61 = vsel %vm275_vm2, %v3230_v44, %v3232_v63  ;;  %v3236_v36 = vsel %vm275_vm2, %v3232_v63, %v3226_v18  ;;  %vm6250_vm2 = vmmov %vm6248_vm0 }
 0x804   :  { %3293 = vmatpush.bf16.msrb.mxu2 %v3255_v38  ;;  %v3237_v59 = vmul.f32 %v3236_v36, %v4852_v62  ;;  %v3240_v2 = vmul.f32 %v3233_v61, %v4858_v9  ;;  %v3323_v62 = vpop.permute.xlu2 %3322 }
 0x805   :  { %3280 = vmatpush.bf16.msrb.mxu1 %v3252_v41  ;;  %4452 = vmatmul.msk.bf16.vlgmr.msra.gmra.mxu2 %vm131_vm4, %v4436_v35  ;;  %v3319_v27 = vpop.permute.xlu0 %3318 }
 0x806   :  { %4453 = vmatmul.msk.bf16.vlgmr.msra.gmra.mxu3 %vm131_vm4, %v4436_v35  ;;  %v3241_v13 = vpack.c.bf16 %v3237_v59, %v3237_v59  ;;  %v3244_v17 = vpack.c.bf16 %v3240_v2, %v3240_v2 }
 0x807   :  { %4450 = vmatmul.msk.bf16.vlgmr.msra.gmra.mxu0 %vm131_vm4, %v4436_v35  ;;  %4451 = vmatmul.msk.bf16.vlgmr.msra.gmra.mxu1 %vm131_vm4, %v4436_v35  ;;  %v4439_v35 = vld [vmem:[%s6149_s5 + $0x30] sm:$0xf] }
 0x808   :  { %v3249_v11 = vsel %vm135_vm3, %v3241_v13, 0  ;;  %v3258_v48 = vsel %vm135_vm3, %v3244_v17, 0 }
 0x809   :  { %3267 = vmatpush.bf16.msrb.mxu0 %v3249_v11  ;;  %3306 = vmatpush.bf16.msrb.mxu3 %v3258_v48 }
 0x80a   :  { %v3321_v57 = vpop.permute.xlu1 %3320 }
 0x80b   :  { %v3324_v9 = vsel %vm378_vm5, %v3321_v57, %v3323_v62  ;;  %v3325_v20 = vsel %vm378_vm5, %v3319_v27, %v3321_v57 }
 0x80c   :  { %v3330_v21 = vmul.f32 %v3325_v20, %v4875_v28  ;;  %v3331_v47 = vmul.f32 %v3324_v9, %v4880_v31  ;;  %v3410_v28 = vpack.c.bf16 %v5773_v33, %v5773_v33  ;;  %v3407_v33 = vpack.c.bf16 %v5775_v6, %v5775_v6  ;;  %v3489_v34 = vpop.permute.xlu2 %3488 }
 0x80d   :  { %v3317_v7 = vpop.permute.xlu0 %3316  ;;  %v3418_v6 = vsel %vm135_vm3, %v3408_v1, 0 }
 0x80e   :  { %v3326_v4 = vsel %vm378_vm5, %v3317_v7, %v3319_v27  ;;  %v3327_v18 = vsel %vm378_vm5, %v3323_v62, %v3317_v7  ;;  %v3334_v19 = vpack.c.bf16 %v3330_v21, %v3330_v21  ;;  %v3335_v49 = vpack.c.bf16 %v3331_v47, %v3331_v47  ;;  %vm6251_vm5 = vmmov %vm6248_vm0  ;;  %v4440_v47 = vld [vmem:[%s6149_s5 + $0x34] sm:$0xf] }
 0x80f   :  { %v3328_v58 = vmul.f32 %v3327_v18, %v4897_v46  ;;  %v3329_v30 = vmul.f32 %v3326_v4, %v4895_v45  ;;  %v4438_v46 = vld [vmem:[%s6149_s5 + $0x2c] sm:$0xf]  ;;  %v3424_v16 = vsel %vm135_vm3, %v3410_v28, 0  ;;  %v3415_v39 = vsel %vm135_vm3, %v3407_v33, 0 }
 0x810   :  { %v3346_v43 = vsel %vm135_vm3, %v3334_v19, 0  ;;  %v3349_v0 = vsel %vm135_vm3, %v3335_v49, 0 }
 0x811   :  { %v3332_v31 = vpack.c.bf16 %v3328_v58, %v3328_v58  ;;  %v3333_v37 = vpack.c.bf16 %v3329_v30, %v3329_v30  ;;  %3384 = vmatpush.bf16.msra.mxu2 %v3346_v43  ;;  %3397 = vmatpush.bf16.msra.mxu3 %v3349_v0  ;;  %v6257_v43 = vld [vmem:[#allocation8_spill] sm:$0xff] }
 0x812   :  { %v3487_v12 = vpop.permute.xlu1 %3486 }
 0x813   :  { %v3340_v45 = vsel %vm135_vm3, %v3332_v31, 0  ;;  %v3343_v53 = vsel %vm135_vm3, %v3333_v37, 0  ;;  %v3490_v42 = vsel %vm556_vm6, %v3487_v12, %v3489_v34  ;;  %v6256_v31 = vld [vmem:[#allocation6_spill] sm:$0xff] }
 0x814   :  { %3358 = vmatpush.bf16.msra.mxu0 %v3340_v45  ;;  %3371 = vmatpush.bf16.msra.mxu1 %v3343_v53  ;;  %v3496_v22 = vmul.f32 %v3490_v42, %v4932_v14  ;;  %v3578_v10 = vpop.permute.xlu2 %3577  ;;  %v6259_v45 = vld [vmem:[#allocation5_spill] sm:$0xff] }
 0x815   :  { %4456 = vmatmul.msk.bf16.vlgmr.msrb.gmra.mxu2 %vm131_vm4, %v4438_v46  ;;  %v3483_v3 = vpop.permute.xlu0 %3482 }
 0x816   :  { %4457 = vmatmul.msk.bf16.vlgmr.msrb.gmra.mxu3 %vm131_vm4, %v4438_v46  ;;  %3459 = vmatpush.bf16.msrb.mxu2 %v3421_v54  ;;  %v3493_v40 = vsel %vm556_vm6, %v3489_v34, %v3483_v3  ;;  %v3500_v5 = vpack.c.bf16 %v3496_v22, %v3496_v22  ;;  %v4441_v54 = vld [vmem:[%s6149_s5 + $0x38] sm:$0xf] }
 0x817   :  { %3472 = vmatpush.bf16.msrb.mxu3 %v3424_v16  ;;  %4454 = vmatmul.msk.bf16.vlgmr.msrb.gmra.mxu0 %vm131_vm4, %v4438_v46  ;;  %v3497_v26 = vmul.f32 %v3493_v40, %v4942_v24 }
 0x818   :  { %4455 = vmatmul.msk.bf16.vlgmr.msrb.gmra.mxu1 %vm131_vm4, %v4438_v46  ;;  %3433 = vmatpush.bf16.msrb.mxu0 %v3415_v39  ;;  %v3512_v14 = vsel %vm135_vm3, %v3500_v5, 0  ;;  %v6258_v46 = vld [vmem:[#allocation7_spill] sm:$0xff] }
 0x819   :  { %3446 = vmatpush.bf16.msrb.mxu1 %v3418_v6  ;;  %v3501_v41 = vpack.c.bf16 %v3497_v26, %v3497_v26 }
 0x81a   :  { %v3485_v44 = vpop.permute.xlu1 %3484 }
 0x81b   :  { %v3491_v29 = vsel %vm556_vm6, %v3485_v44, %v3487_v12  ;;  %v3492_v25 = vsel %vm556_vm6, %v3483_v3, %v3485_v44  ;;  %v3515_v24 = vsel %vm135_vm3, %v3501_v41, 0  ;;  %vm6252_vm6 = vmmov %vm6235_vm12  ;;  %v6264_v41 = vld [vmem:[#allocation12_spill] sm:$0xff] }
 0x81c   :  { %v3494_v60 = vmul.f32 %v3492_v25, %v4940_v23  ;;  %v3495_v50 = vmul.f32 %v3491_v29, %v4934_v15  ;;  %v3576_v59 = vpop.permute.xlu2 %3575  ;;  %vm6253_vm12 = vmmov %vm6252_vm6 }
 0x81d   :  { %v3580_v61 = vpop.permute.xlu0 %3579  ;;  %v3582_v13 = vsel %vm6250_vm2, %v3576_v59, %v3578_v10  ;;  %vm6254_vm13 = vmmov %vm6252_vm6 }
 0x81e   :  { %v3498_v63 = vpack.c.bf16 %v3494_v60, %v3494_v60  ;;  %v3499_v38 = vpack.c.bf16 %v3495_v50, %v3495_v50  ;;  %v3581_v2 = vsel %vm6248_vm0, %v3578_v10, %v3580_v61  ;;  %v3586_v62 = vmul.f32 %v3582_v13, %v4969_v52  ;;  %vm6255_vm14 = vmmov %vm6252_vm6  ;;  %v6263_v50 = vld [vmem:[#allocation9_spill] sm:$0xff] }
 0x81f   :  { %v3587_v11 = vmul.f32 %v3581_v2, %v4967_v51 }
 0x820   :  { %v3506_v23 = vsel %vm135_vm3, %v3498_v63, 0  ;;  %v3509_v36 = vsel %vm135_vm3, %v3499_v38, 0  ;;  %v3590_v7 = vpack.c.bf16 %v3586_v62, %v3586_v62  ;;  %v6265_v63 = vld [vmem:[#allocation11_spill] sm:$0xff] }
 0x821   :  { %v3591_v20 = vpack.c.bf16 %v3587_v11, %v3587_v11  ;;  %v4444_v11 = vld [vmem:[%s6149_s5 + $0x44] sm:$0xf] }
 0x822   :  { %v3574_v15 = vpop.permute.xlu1 %3573 }
 0x823   :  { %v3584_v27 = vsel %vm6249_vm1, %v3580_v61, %v3574_v15  ;;  %v3583_v17 = vsel %vm6251_vm5, %v3574_v15, %v3576_v59  ;;  %v3603_v51 = vsel %vm135_vm3, %v3591_v20, 0  ;;  %v6266_v61 = vld [vmem:[#allocation10_spill] sm:$0xff] }
 0x824   :  { %v3588_v48 = vmul.f32 %v3584_v27, %v4977_v56  ;;  %v3585_v57 = vmul.f32 %v3583_v17, %v4975_v55  ;;  %v3600_v56 = vsel %vm135_vm3, %v3590_v7, 0  ;;  %v3665_v19 = vpop.permute.xlu2 %3664  ;;  %v4443_v17 = vld [vmem:[%s6149_s5 + $0x40] sm:$0xf] }
 0x825   :  { %4460 = vmatmul.msk.bf16.vlgmr.msra.gmra.mxu2 %vm131_vm4, %v4439_v35  ;;  %v3669_v9 = vpop.permute.xlu0 %3668 }
 0x826   :  { %4461 = vmatmul.msk.bf16.vlgmr.msra.gmra.mxu3 %vm131_vm4, %v4439_v35  ;;  %3550 = vmatpush.bf16.msra.mxu2 %v3512_v14  ;;  %v3592_v21 = vpack.c.bf16 %v3588_v48, %v3588_v48  ;;  %v3589_v4 = vpack.c.bf16 %v3585_v57, %v3585_v57 }
 0x827   :  { %3563 = vmatpush.bf16.msra.mxu3 %v3515_v24  ;;  %4458 = vmatmul.msk.bf16.vlgmr.msra.gmra.mxu0 %vm131_vm4, %v4439_v35 }
 0x828   :  { %4459 = vmatmul.msk.bf16.vlgmr.msra.gmra.mxu1 %vm131_vm4, %v4439_v35  ;;  %3524 = vmatpush.bf16.msra.mxu0 %v3506_v23  ;;  %v3606_v52 = vsel %vm135_vm3, %v3592_v21, 0  ;;  %v3597_v55 = vsel %vm135_vm3, %v3589_v4, 0  ;;  %v4442_v23 = vld [vmem:[%s6149_s5 + $0x3c] sm:$0xf] }
 0x829   :  { %3537 = vmatpush.bf16.msra.mxu1 %v3509_v36 }
 0x82a   :  { %v3671_v18 = vpop.permute.xlu1 %3670 }
 0x82b   :  { %v3672_v58 = vsel %vm6252_vm6, %v3669_v9, %v3671_v18  ;;  %v3675_v30 = vsel %vm6253_vm12, %v3671_v18, %v3665_v19 }
 0x82c   :  { %v3678_v37 = vmul.f32 %v3672_v58, %v6256_v31  ;;  %v3679_v0 = vmul.f32 %v3675_v30, %v6257_v43  ;;  %v3762_v29 = vpop.permute.xlu2 %3761 }
 0x82d   :  { %v3667_v49 = vpop.permute.xlu0 %3666 }
 0x82e   :  { %v3673_v32 = vsel %vm6254_vm13, %v3667_v49, %v3669_v9  ;;  %v3674_v28 = vsel %vm6255_vm14, %v3665_v19, %v3667_v49  ;;  %v3682_v1 = vpack.c.bf16 %v3678_v37, %v3678_v37  ;;  %v3683_v34 = vpack.c.bf16 %v3679_v0, %v3679_v0 }
 0x82f   :  { %v3676_v12 = vmul.f32 %v3674_v28, %v6258_v46  ;;  %v3677_v53 = vmul.f32 %v3673_v32, %v6259_v45  ;;  %vm6275_vm13 = vcmask 1041408  }
 0x830   :  { %v3694_v39 = vsel %vm135_vm3, %v3682_v1, 0  ;;  %v3697_v6 = vsel %vm135_vm3, %v3683_v34, 0  ;;  %vm6276_vm14 = vmmov %vm6275_vm13 }
 0x831   :  { %v3680_v16 = vpack.c.bf16 %v3676_v12, %v3676_v12  ;;  %v3681_v3 = vpack.c.bf16 %v3677_v53, %v3677_v53 }
 0x832   :  { %v3760_v33 = vpop.permute.xlu1 %3759 }
 0x833   :  { %v3688_v40 = vsel %vm135_vm3, %v3680_v16, 0  ;;  %v3691_v44 = vsel %vm135_vm3, %v3681_v3, 0  ;;  %v3763_v22 = vsel %vm6260_vm15, %v3760_v33, %v3762_v29 }
 0x834   :  { %v3769_v5 = vmul.f32 %v3763_v22, %v6263_v50 }
 0x835   :  { %4464 = vmatmul.msk.bf16.vlgmr.msrb.gmra.mxu2 %vm131_vm4, %v4440_v47  ;;  %v3756_v42 = vpop.permute.xlu0 %3755 }
 0x836   :  { %4465 = vmatmul.msk.bf16.vlgmr.msrb.gmra.mxu3 %vm131_vm4, %v4440_v47  ;;  %3641 = vmatpush.bf16.msrb.mxu2 %v3603_v51  ;;  %v3766_v26 = vsel %vm6240_vm7, %v3762_v29, %v3756_v42  ;;  %v3773_v24 = vpack.c.bf16 %v3769_v5, %v3769_v5 }
 0x837   :  { %3654 = vmatpush.bf16.msrb.mxu3 %v3606_v52  ;;  %4462 = vmatmul.msk.bf16.vlgmr.msrb.gmra.mxu0 %vm131_vm4, %v4440_v47  ;;  %v3770_v35 = vmul.f32 %v3766_v26, %v6264_v41 }
 0x838   :  { %4463 = vmatmul.msk.bf16.vlgmr.msrb.gmra.mxu1 %vm131_vm4, %v4440_v47  ;;  %3615 = vmatpush.bf16.msrb.mxu0 %v3597_v55  ;;  %v3785_v8 = vsel %vm135_vm3, %v3773_v24, 0 }
 0x839   :  { %3628 = vmatpush.bf16.msrb.mxu1 %v3600_v56  ;;  %v3774_v15 = vpack.c.bf16 %v3770_v35, %v3770_v35 }
 0x83a   :  { %v3758_v25 = vpop.permute.xlu1 %3757 }
 0x83b   :  { %v3764_v10 = vsel %vm6261_vm8, %v3758_v25, %v3760_v33  ;;  %v3765_v60 = vsel %vm6262_vm9, %v3756_v42, %v3758_v25  ;;  %v3788_v2 = vsel %vm135_vm3, %v3774_v15, 0 }
 0x83c   :  { %v3767_v38 = vmul.f32 %v3765_v60, %v6265_v63  ;;  %v3768_v14 = vmul.f32 %v3764_v10, %v6266_v61 }
 0x83e   :  { %v3771_v36 = vpack.c.bf16 %v3767_v38, %v3767_v38  ;;  %v3772_v59 = vpack.c.bf16 %v3768_v14, %v3768_v14 }
 0x840   :  { %v3779_v27 = vsel %vm135_vm3, %v3771_v36, 0  ;;  %v3782_v13 = vsel %vm135_vm3, %v3772_v59, 0 }
 0x845   :  { %4468 = vmatmul.msk.bf16.vlgmr.msra.gmra.mxu2 %vm131_vm4, %v4441_v54 }
 0x846   :  { %4469 = vmatmul.msk.bf16.vlgmr.msra.gmra.mxu3 %vm131_vm4, %v4441_v54  ;;  %3732 = vmatpush.bf16.msra.mxu2 %v3694_v39 }
 0x847   :  { %3745 = vmatpush.bf16.msra.mxu3 %v3697_v6  ;;  %4466 = vmatmul.msk.bf16.vlgmr.msra.gmra.mxu0 %vm131_vm4, %v4441_v54 }
 0x848   :  { %4467 = vmatmul.msk.bf16.vlgmr.msra.gmra.mxu1 %vm131_vm4, %v4441_v54  ;;  %3706 = vmatpush.bf16.msra.mxu0 %v3688_v40 }
 0x849   :  { %3719 = vmatpush.bf16.msra.mxu1 %v3691_v44 }
 0x855   :  { %4472 = vmatmul.msk.bf16.vlgmr.msrb.gmra.mxu2 %vm131_vm4, %v4442_v23 }
 0x856   :  { %4473 = vmatmul.msk.bf16.vlgmr.msrb.gmra.mxu3 %vm131_vm4, %v4442_v23  ;;  %3823 = vmatpush.bf16.msrb.mxu2 %v3785_v8 }
 0x857   :  { %3836 = vmatpush.bf16.msrb.mxu3 %v3788_v2  ;;  %4470 = vmatmul.msk.bf16.vlgmr.msrb.gmra.mxu0 %vm131_vm4, %v4442_v23 }
 0x858   :  { %4471 = vmatmul.msk.bf16.vlgmr.msrb.gmra.mxu1 %vm131_vm4, %v4442_v23  ;;  %3797 = vmatpush.bf16.msrb.mxu0 %v3779_v27 }
 0x859   :  { %3810 = vmatpush.bf16.msrb.mxu1 %v3782_v13 }
 0x865   :  { %4476 = vmatmul.msk.bf16.vlgmr.msra.gmra.mxu2 %vm131_vm4, %v4443_v17 }
 0x866   :  { %4477 = vmatmul.msk.bf16.vlgmr.msra.gmra.mxu3 %vm131_vm4, %v4443_v17 }
 0x867   :  { %4474 = vmatmul.msk.bf16.vlgmr.msra.gmra.mxu0 %vm131_vm4, %v4443_v17 }
 0x868   :  { %4475 = vmatmul.msk.bf16.vlgmr.msra.gmra.mxu1 %vm131_vm4, %v4443_v17 }
 0x874   :  { %v3115_v48 = vpop.f32.mrf.mxu0  ;;  %v3128_v62 = vpop.f32.mrf.mxu1 }
 0x875   :  { %4480 = vmatmul.msk.bf16.vlgmr.msrb.gmra.mxu2 %vm131_vm4, %v4444_v11 }
 0x876   :  { %4481 = vmatmul.msk.bf16.vlgmr.msrb.gmra.mxu3 %vm131_vm4, %v4444_v11 }
 0x877   :  { %4478 = vmatmul.msk.bf16.vlgmr.msrb.gmra.mxu0 %vm131_vm4, %v4444_v11 }
 0x878   :  { %4479 = vmatmul.msk.bf16.vlgmr.msrb.gmra.mxu1 %vm131_vm4, %v4444_v11  ;;  %v3141_v57 = vpop.f32.mrf.mxu2  ;;  %v3154_v9 = vpop.f32.mrf.mxu3 }
 0x87c   :  { %v3117_v20 = vpop.f32.mrf.mxu0  ;;  %v3130_v21 = vpop.f32.mrf.mxu1 }
 0x880   :  { %v3143_v47 = vpop.f32.mrf.mxu2  ;;  %v3156_v7 = vpop.f32.mrf.mxu3 }
 0x884   :  { %v3182_v4 = vpop.f32.mrf.mxu0  ;;  %v3195_v18 = vpop.f32.mrf.mxu1 }
 0x885   :  { %v3183_v51 = vadd.f32 %v3182_v4, %v3115_v48  ;;  %v3196_v52 = vadd.f32 %v3195_v18, %v3128_v62 }
 0x888   :  { %v3208_v55 = vpop.f32.mrf.mxu2 }
 0x889   :  { %v3221_v56 = vpop.f32.mrf.mxu3  ;;  %v3209_v19 = vadd.f32 %v3208_v55, %v3141_v57 }
 0x88a   :  { %v3222_v49 = vadd.f32 %v3221_v56, %v3154_v9 }
 0x88c   :  { %v3184_v58 = vpop.f32.mrf.mxu0  ;;  %v3197_v30 = vpop.f32.mrf.mxu1 }
 0x890   :  { %v3210_v32 = vpop.f32.mrf.mxu2 }
 0x891   :  { %v3223_v28 = vpop.f32.mrf.mxu3 }
 0x894   :  { %v3269_v31 = vpop.f32.mrf.mxu0 }
 0x895   :  { %v3282_v37 = vpop.f32.mrf.mxu1  ;;  %v3312_v43 = vadd.f32 %v3269_v31, %v3183_v51 }
 0x896   :  { %v3313_v0 = vadd.f32 %v3282_v37, %v3196_v52 }
 0x898   :  { %v3295_v46 = vpop.f32.mrf.mxu2 }
 0x899   :  { %v3308_v12 = vpop.f32.mrf.mxu3  ;;  %v3314_v45 = vadd.f32 %v3295_v46, %v3209_v19 }
 0x89a   :  { %v3315_v53 = vadd.f32 %v3308_v12, %v3222_v49 }
 0x89c   :  { %v3271_v33 = vpop.f32.mrf.mxu0 }
 0x89d   :  { %v3284_v1 = vpop.f32.mrf.mxu1  ;;  %v3849_v33 = vpop.permute.xlu2 %3848 }
 0x8a0   :  { %v3297_v34 = vpop.f32.mrf.mxu2 }
 0x8a1   :  { %v3310_v54 = vpop.f32.mrf.mxu3 }
 0x8a4   :  { %v3360_v16 = vpop.f32.mrf.mxu0 }
 0x8a5   :  { %v3373_v3 = vpop.f32.mrf.mxu1  ;;  %v3403_v39 = vadd.f32 %v3360_v16, %v3312_v43 }
 0x8a6   :  { %v3404_v6 = vadd.f32 %v3373_v3, %v3313_v0 }
 0x8a8   :  { %v3386_v42 = vpop.f32.mrf.mxu2 }
 0x8a9   :  { %v3399_v40 = vpop.f32.mrf.mxu3  ;;  %v3405_v44 = vadd.f32 %v3386_v42, %v3314_v45 }
 0x8aa   :  { %v3406_v29 = vadd.f32 %v3399_v40, %v3315_v53  ;;  %v6267_v40 = vld [vmem:[#allocation13_spill] sm:$0xff] }
 0x8ac   :  { %v3362_v25 = vpop.f32.mrf.mxu0 }
 0x8ad   :  { %v3375_v22 = vpop.f32.mrf.mxu1 }
 0x8ae   :  { %v6269_v22 = vld [vmem:[#allocation15_spill] sm:$0xff] }
 0x8b0   :  { %v3388_v26 = vpop.f32.mrf.mxu2 }
 0x8b1   :  { %v3401_v10 = vpop.f32.mrf.mxu3 }
 0x8b2   :  { %v6270_v10 = vld [vmem:[#allocation16_spill] sm:$0xff] }
 0x8b4   :  { %v3435_v60 = vpop.f32.mrf.mxu0 }
 0x8b5   :  { %v3448_v50 = vpop.f32.mrf.mxu1  ;;  %v3478_v51 = vadd.f32 %v3435_v60, %v3403_v39 }
 0x8b6   :  { %v3479_v52 = vadd.f32 %v3448_v50, %v3404_v6 }
 0x8b8   :  { %v3461_v5 = vpop.f32.mrf.mxu2 }
 0x8b9   :  { %v3474_v41 = vpop.f32.mrf.mxu3  ;;  %v3480_v32 = vadd.f32 %v3461_v5, %v3405_v44 }
 0x8ba   :  { %v3481_v28 = vadd.f32 %v3474_v41, %v3406_v29  ;;  %v6268_v29 = vld [vmem:[#allocation14_spill] sm:$0xff] }
 0x8bc   :  { %v3437_v35 = vpop.f32.mrf.mxu0 }
 0x8bd   :  { %v3450_v63 = vpop.f32.mrf.mxu1 }
 0x8c0   :  { %v3463_v38 = vpop.f32.mrf.mxu2 }
 0x8c1   :  { %v3476_v61 = vpop.f32.mrf.mxu3 }
 0x8c2   :  { %v6271_v61 = vld [vmem:[#allocation17_spill] sm:$0xff] }
 0x8c4   :  { %v3526_v14 = vpop.f32.mrf.mxu0 }
 0x8c5   :  { %v3539_v24 = vpop.f32.mrf.mxu1  ;;  %v3569_v55 = vadd.f32 %v3526_v14, %v3478_v51 }
 0x8c6   :  { %v3570_v56 = vadd.f32 %v3539_v24, %v3479_v52 }
 0x8c8   :  { %v3552_v15 = vpop.f32.mrf.mxu2 }
 0x8c9   :  { %v3565_v23 = vpop.f32.mrf.mxu3  ;;  %v3571_v43 = vadd.f32 %v3552_v15, %v3480_v32  ;;  %v6272_v15 = vld [vmem:[#allocation18_spill] sm:$0xff] }
 0x8ca   :  { %v3572_v0 = vadd.f32 %v3565_v23, %v3481_v28 }
 0x8cc   :  { %v3528_v36 = vpop.f32.mrf.mxu0 }
 0x8cd   :  { %v3541_v59 = vpop.f32.mrf.mxu1 }
 0x8d0   :  { %v3554_v8 = vpop.f32.mrf.mxu2 }
 0x8d1   :  { %v3567_v2 = vpop.f32.mrf.mxu3 }
 0x8d2   :  { %v6273_v2 = vld [vmem:[#allocation19_spill] sm:$0xff] }
 0x8d4   :  { %v3617_v27 = vpop.f32.mrf.mxu0 }
 0x8d5   :  { %v3630_v13 = vpop.f32.mrf.mxu1  ;;  %v3660_v58 = vadd.f32 %v3617_v27, %v3569_v55 }
 0x8d6   :  { %v3661_v30 = vadd.f32 %v3630_v13, %v3570_v56 }
 0x8d8   :  { %v3643_v17 = vpop.f32.mrf.mxu2 }
 0x8d9   :  { %v3656_v11 = vpop.f32.mrf.mxu3  ;;  %v3662_v1 = vadd.f32 %v3643_v17, %v3571_v43  ;;  %v6274_v17 = vld [vmem:[#allocation20_spill] sm:$0xff]  ;;  %v4483_v43 = vld [vmem:[%s6152_s8 + $0x1] sm:$0x1] }
 0x8da   :  { %v3663_v34 = vadd.f32 %v3656_v11, %v3572_v0 }
 0x8dc   :  { %v3619_v48 = vpop.f32.mrf.mxu0 }
 0x8dd   :  { %v3632_v62 = vpop.f32.mrf.mxu1 }
 0x8e0   :  { %v3645_v57 = vpop.f32.mrf.mxu2 }
 0x8e1   :  { %v3658_v9 = vpop.f32.mrf.mxu3 }
 0x8e2   :  { %v4482_v9 = vld [vmem:[%s6151_s7 + $0x8] sm:$0xff] }
 0x8e4   :  { %v3708_v20 = vpop.f32.mrf.mxu0 }
 0x8e5   :  { %v3721_v21 = vpop.f32.mrf.mxu1  ;;  %v3751_v31 = vadd.f32 %v3708_v20, %v3660_v58 }
 0x8e6   :  { %v3752_v37 = vadd.f32 %v3721_v21, %v3661_v30 }
 0x8e8   :  { %v3734_v47 = vpop.f32.mrf.mxu2 }
 0x8e9   :  { %v3747_v7 = vpop.f32.mrf.mxu3  ;;  %v3753_v3 = vadd.f32 %v3734_v47, %v3662_v1  ;;  %v4484_v1 = vld [vmem:[%s6153_s9 + $0x8] sm:$0xff] }
 0x8ea   :  { %v3754_v39 = vadd.f32 %v3747_v7, %v3663_v34 }
 0x8ec   :  { %v3710_v4 = vpop.f32.mrf.mxu0 }
 0x8ed   :  { %v3723_v18 = vpop.f32.mrf.mxu1 }
 0x8f0   :  { %v3736_v19 = vpop.f32.mrf.mxu2 }
 0x8f1   :  { %v3749_v49 = vpop.f32.mrf.mxu3 }
 0x8f4   :  { %v3799_v46 = vpop.f32.mrf.mxu0 }
 0x8f5   :  { %v3812_v12 = vpop.f32.mrf.mxu1  ;;  %v3842_v45 = vadd.f32 %v3799_v46, %v3751_v31 }
 0x8f6   :  { %v3843_v53 = vadd.f32 %v3812_v12, %v3752_v37 }
 0x8f7   :  { %v6045_v54 = vadd.f32 %v3849_v33, %v3842_v45 }
 0x8f8   :  { %v6047_v16 = vadd.f32 %v3849_v33, %v3843_v53  ;;  %v3825_v6 = vpop.f32.mrf.mxu2 }
 0x8f9   :  { %v3838_v42 = vpop.f32.mrf.mxu3  ;;  %v3863_v44 = vmul.f32 %v6045_v54, %v6267_v40  ;;  %v3921_v25 = vmul.f32 %v6045_v54, %v6268_v29  ;;  %v3844_v50 = vadd.f32 %v3825_v6, %v3753_v3 }
 0x8fa   :  { %v3864_v26 = vmul.f32 %v6047_v16, %v6269_v22  ;;  %v3922_v60 = vmul.f32 %v6047_v16, %v6270_v10  ;;  %v3845_v5 = vadd.f32 %v3838_v42, %v3754_v39 }
 0x8fb   :  { %v6057_v41 = vadd.f32 %v3849_v33, %v3844_v50 }
 0x8fc   :  { %v6059_v35 = vadd.f32 %v3849_v33, %v3845_v5  ;;  %v3801_v63 = vpop.f32.mrf.mxu0  ;;  %v3925_v24 = vadd.f32 %v3922_v60, %v3921_v25  ;;  %v3867_v36 = vadd.f32 %v3864_v26, %v3863_v44  ;;  %v4489_v25 = vld [vmem:[%s6156_s12 + $0x2] sm:$0x3]  ;;  %v4485_v26 = vld [vmem:[%s6154_s10 + $0x8] sm:$0xff] }
 0x8fd   :  { %v3814_v38 = vpop.f32.mrf.mxu1  ;;  %v3923_v14 = vmul.f32 %v6057_v41, %v6271_v61  ;;  %v3865_v23 = vmul.f32 %v6057_v41, %v6272_v15 }
 0x8fe   :  { %v3924_v27 = vmul.f32 %v6059_v35, %v6273_v2  ;;  %v3866_v11 = vmul.f32 %v6059_v35, %v6274_v17 }
 0x8ff   :  { %v3926_v13 = vadd.f32 %v3925_v24, %v3923_v14  ;;  %v3868_v48 = vadd.f32 %v3867_v36, %v3865_v23 }
 0x900   :  { %v3827_v59 = vpop.f32.mrf.mxu2 }
 0x901   :  { %v3840_v8 = vpop.f32.mrf.mxu3  ;;  %v3927_v62 = vadd.f32 %v3926_v13, %v3924_v27  ;;  %v3869_v57 = vadd.f32 %v3868_v48, %v3866_v11 }
 0x903   :  { %3928 = vadd.xlane.f32.xlu1 %v3927_v62  ;;  %3870 = vadd.xlane.f32.xlu0 %v3869_v57 }
 0x976   :  { %v3929_v20 = vpop.xlane.xlu1 %3928  ;;  %v3871_v21 = vpop.xlane.xlu0 %3870 }
 0x977   :  { %v3930_v47 = vmul.f32 0.00390625, %v3929_v20  ;;  %v3872_v7 = vmul.f32 0.00390625, %v3871_v21 }
 0x979   :  { %v3931_v4 = vmul.f32 %v4482_v9, %v3930_v47  ;;  %v3873_v18 = vmul.f32 %v4482_v9, %v3872_v7 }
 0x97b   :  { %v3932_v51 = vsel %vm1812_vm10, %v3931_v4, 0.0  ;;  %v3874_v52 = vsel %vm1812_vm10, %v3873_v18, 0.0 }
 0x97c   :  { %v3933_v55 = vrot.slane %v3932_v51, 4  ;;  %v3875_v56 = vrot.slane %v3874_v52, 4 }
 0x97e   :  { %v3934_v19 = vadd.f32 %v3933_v55, %v3932_v51  ;;  %v3876_v49 = vadd.f32 %v3875_v56, %v3874_v52 }
 0x980   :  { %v3935_v58 = vrot.slane %v3934_v19, 2  ;;  %v3877_v30 = vrot.slane %v3876_v49, 2 }
 0x982   :  { %v3936_v32 = vadd.f32 %v3935_v58, %v3934_v19  ;;  %v3878_v28 = vadd.f32 %v3877_v30, %v3876_v49  ;;  %v4495_v58 = vld [vmem:[%s6158_s14 + $0x1] sm:$0x1] }
 0x984   :  { %v3937_v31 = vrot.slane %v3936_v32, 1  ;;  %v3879_v37 = vrot.slane %v3878_v28, 1 }
 0x986   :  { %v3938_v0 = vadd.f32 %v3937_v31, %v3936_v32  ;;  %v3880_v46 = vadd.f32 %v3879_v37, %v3878_v28 }
 0x988   :  { %v3939_v12 = vadd.f32 %v4483_v43, %v3938_v0  ;;  %v3881_v45 = vadd.f32 %v4483_v43, %v3880_v46 }
 0x98a   :  { %v3940_v53 = vmax.f32 %v3939_v12, 0.0  ;;  %v3882_v33 = vmax.f32 %v3881_v45, 0.0 }
 0x98c   :  { %v3941_v34 = vperm.slane %v3940_v53, 0  ;;  %v3883_v3 = vperm.slane %v3882_v33, 0 }
 0x98e   :  { %v3942_v39 = vmul.f32 %v4484_v1, %v3941_v34  ;;  %v3884_v6 = vmul.f32 %v4484_v1, %v3883_v3  ;;  %v4494_v3 = vld [vmem:[%s6157_s13 + $0x1] sm:$0x1]  ;;  %s4608_s13 = smov [#allocation2]  }
 0x98f   :  { %s4281_s16 = sshll.u32 %s4608_s13, 4  ;;  %s4282_s16 = int_to_ptr.vmem [resolvable:$true] %s4281_s16 }
 0x990   :  { %v3943_v42 = vsel %vm1812_vm10, %v3942_v39, 0.0  ;;  %v3885_v44 = vsel %vm1812_vm10, %v3884_v6, 0.0 }
 0x991   :  { %3944 = vadd.xlane.f32.xlu0 %v3943_v42  ;;  %3886 = vadd.xlane.f32.xlu2 %v3885_v44 }
 0x9a5   :  { %3989 = vperm.xlu0 %4519, %v4489_v25  }
 0xa04   :  { %v3887_v60 = vpop.xlane.xlu2 %3886  ;;  %v3945_v50 = vpop.xlane.xlu0 %3944 }
 0xa05   :  { %v3888_v5 = vadd.f32 %v4485_v26, %v3887_v60  ;;  %v3946_v63 = vadd.f32 %v4485_v26, %v3945_v50 }
 0xa07   :  { %v4486_v38 = vmul.f32 -1.442695, %v3888_v5  ;;  %v4487_v14 = vmul.f32 -1.442695, %v3946_v63 }
 0xa09   :  { %4545 = vpow2.f32 %v4486_v38 }
 0xa0a   :  { %4547 = vpow2.f32 %v4487_v14 }
 0xa0f   :  { %v4546_v24 = vpop.eup %4545 }
 0xa10   :  { %v4548_v23 = vpop.eup %4547  ;;  %v3892_v36 = vadd.f32 1.0, %v4546_v24 }
 0xa11   :  { %v3950_v59 = vadd.f32 1.0, %v4548_v23 }
 0xa12   :  { %4549 = vrcp.f32 %v3892_v36  ;;  %v3904_v62 = vand.u32 2147483648, %v3892_v36  ;;  %v3902_v20 = vand.u32 2147483647, %v3892_v36  ;;  %vm3898_vm0 = vweird.f32 %v3892_v36 }
 0xa13   :  { %4551 = vrcp.f32 %v3950_v59  ;;  %v3962_v21 = vand.u32 2147483648, %v3950_v59  ;;  %v3960_v7 = vand.u32 2147483647, %v3950_v59  ;;  %vm3956_vm2 = vweird.f32 %v3950_v59 }
 0xa14   :  { %v3905_v18 = vor.u32 1.1754944e-38, %v3904_v62  ;;  %vm3903_vm5 = vcmp.eq.f32.partialorder %v3902_v20, 8.507059e+37 }
 0xa15   :  { %v3963_v55 = vor.u32 1.1754944e-38, %v3962_v21  ;;  %vm3961_vm12 = vcmp.eq.f32.partialorder %v3960_v7, 8.507059e+37 }
 0xa18   :  { %v4550_v8 = vpop.eup %4549 }
 0xa19   :  { %v4552_v27 = vpop.eup %4551  ;;  %v3894_v13 = vmul.f32 %v4550_v8, %v3892_v36  ;;  %vm3899_vm3 = vweird.f32 %v4550_v8 }
 0xa1a   :  { %v3952_v11 = vmul.f32 %v4552_v27, %v3950_v59  ;;  %vm3957_vm11 = vweird.f32 %v4552_v27  ;;  %vm3900_vm1 = vmor %vm3898_vm0, %vm3899_vm3 }
 0xa1b   :  { %v3895_v48 = vsub.f32 1.0, %v3894_v13  ;;  %vm3958_vm6 = vmor %vm3956_vm2, %vm3957_vm11 }
 0xa1c   :  { %v3953_v57 = vsub.f32 1.0, %v3952_v11 }
 0xa1d   :  { %v3896_v9 = vmul.f32 %v4550_v8, %v3895_v48 }
 0xa1e   :  { %v3954_v47 = vmul.f32 %v4552_v27, %v3953_v57 }
 0xa1f   :  { %v3897_v4 = vadd.f32 %v4550_v8, %v3896_v9 }
 0xa20   :  { %v3955_v51 = vadd.f32 %v4552_v27, %v3954_v47 }
 0xa21   :  { %v3901_v52 = vsel %vm3900_vm1, %v4550_v8, %v3897_v4 }
 0xa22   :  { %v3906_v56 = vsel %vm3903_vm5, %v3905_v18, %v3901_v52  ;;  %v3959_v19 = vsel %vm3958_vm6, %v4552_v27, %v3955_v51 }
 0xa23   :  { %3910 = vperm.xlu1 %4520, %v3906_v56   ;;  %v3964_v49 = vsel %vm3961_vm12, %v3963_v55, %v3959_v19 }
 0xa24   :  { %3968 = vperm.xlu2 %4518, %v3964_v49  }
 0xa2b   :  { %4085 = vperm.xlu1 %4520, %v4495_v58  }
 0xa7e   :  { %v3969_v30 = vpop.permute.xlu2 %3968 }
 0xa7f   :  { %v3971_v32 = vmul.f32 %v3969_v30, %v6268_v29  ;;  %v3972_v28 = vmul.f32 %v3969_v30, %v6270_v10  ;;  %v3973_v31 = vmul.f32 %v3969_v30, %v6271_v61  ;;  %v3974_v37 = vmul.f32 %v3969_v30, %v6273_v2 }
 0xa95   :  { %v3911_v43 = vpop.permute.xlu1 %3910 }
 0xa96   :  { %v3913_v0 = vmul.f32 %v3911_v43, %v6267_v40  ;;  %v3914_v46 = vmul.f32 %v3911_v43, %v6269_v22  ;;  %v3915_v12 = vmul.f32 %v3911_v43, %v6272_v15  ;;  %v3916_v45 = vmul.f32 %v3911_v43, %v6274_v17  ;;  %v4488_v22 = vld [vmem:[%s6155_s11 + $0x2] sm:$0x3] }
 0xa98   :  { %v3975_v53 = vadd.f32 %v3971_v32, %v3913_v0  ;;  %v3976_v33 = vadd.f32 %v3972_v28, %v3914_v46  ;;  %v3977_v1 = vadd.f32 %v3973_v31, %v3915_v12  ;;  %v3978_v34 = vadd.f32 %v3974_v37, %v3916_v45 }
 0xa9a   :  { %v6100_v29 = vmul.f32 %v3975_v53, %v6045_v54  ;;  %v6103_v10 = vmul.f32 %v3976_v33, %v6047_v16  ;;  %v6106_v61 = vmul.f32 %v3977_v1, %v6057_v41  ;;  %v6109_v40 = vmul.f32 %v3978_v34, %v6059_v35  ;;  %v3990_v54 = vpop.permute.xlu0 %3989 }
 0xa9c   :  { %4010 = vmatpush.msra.mxu0 %v6100_v29  ;;  %4030 = vmatpush.msra.mxu1 %v6103_v10 }
 0xa9d   :  { %4050 = vmatpush.msra.mxu2 %v6106_v61  ;;  %4070 = vmatpush.msra.mxu3 %v6109_v40  ;;  %v4086_v60 = vpop.permute.xlu1 %4085 }
 0xa9e   :  { %4490 = vmatmul.msk.f32.vlgmr.msra.gmra.mxu0 %vm131_vm4, %v4488_v22  ;;  %4491 = vmatmul.msk.f32.vlgmr.msra.gmra.mxu1 %vm131_vm4, %v4488_v22  ;;  %v4088_v50 = vperm.slane %v4086_v60, 0 }
 0xa9f   :  { %4492 = vmatmul.msk.f32.vlgmr.msra.gmra.mxu2 %vm131_vm4, %v4488_v22  ;;  %4493 = vmatmul.msk.f32.vlgmr.msra.gmra.mxu3 %vm131_vm4, %v4488_v22  ;;  %vm6277_vm4 = vmmov %vm6275_vm13 }
 0xaa0   :  { %vm6278_vm15 = vmmov %vm6277_vm4 }
 0xb1b   :  { %v4012_v16 = vpop.f32.mrf.mxu0  ;;  %v4032_v41 = vpop.f32.mrf.mxu1 }
 0xb1c   :  { %v4013_v35 = vadd.f32 %v4012_v16, %v3990_v54  ;;  %v4033_v15 = vadd.f32 %v4032_v41, %v3990_v54 }
 0xb1e   :  { %v4075_v2 = vmax.f32 %v4013_v35, 0.0  ;;  %v4076_v17 = vmax.f32 %v4033_v15, 0.0  ;;  %v6279_v15 = vld [vmem:[#allocation21_spill] sm:$0xff] }
 0xb20   :  { %4496 = vmatpush.msk.msrb.mxu0 %vm6275_vm13, %v4075_v2  ;;  %4498 = vmatpush.msk.msrb.mxu1 %vm6276_vm14, %v4076_v17  ;;  %v6280_v17 = vld [vmem:[#allocation22_spill] sm:$0xff] }
 0xb21   :  { %4497 = vmatmul.msk.f32.vlgmr.msrb.gmra.mxu0 %vm1812_vm10, %v4494_v3  ;;  %4499 = vmatmul.msk.f32.vlgmr.msrb.gmra.mxu1 %vm1812_vm10, %v4494_v3 }
 0xb22   :  { %v4052_v39 = vpop.f32.mrf.mxu2  ;;  %v4072_v6 = vpop.f32.mrf.mxu3 }
 0xb23   :  { %v4053_v42 = vadd.f32 %v4052_v39, %v3990_v54  ;;  %v4073_v44 = vadd.f32 %v4072_v6, %v3990_v54 }
 0xb25   :  { %v4077_v25 = vmax.f32 %v4053_v42, 0.0  ;;  %v4078_v26 = vmax.f32 %v4073_v44, 0.0 }
 0xb27   :  { %4500 = vmatpush.msk.msrb.mxu2 %vm6277_vm4, %v4077_v25  ;;  %4502 = vmatpush.msk.msrb.mxu3 %vm6278_vm15, %v4078_v26 }
 0xb28   :  { %4501 = vmatmul.msk.f32.vlgmr.msrb.gmra.mxu2 %vm1812_vm10, %v4494_v3  ;;  %4503 = vmatmul.msk.f32.vlgmr.msrb.gmra.mxu3 %vm1812_vm10, %v4494_v3 }
 0xb9e   :  { %v4121_v5 = vpop.f32.mrf.mxu0  ;;  %v4141_v63 = vpop.f32.mrf.mxu1 }
 0xb9f   :  { %v4122_v38 = vadd.f32 %v4121_v5, %v4088_v50  ;;  %v4142_v14 = vadd.f32 %v4141_v63, %v4088_v50 }
 0xba1   :  { %v4504_v24 = vmul.f32 -1.442695, %v4122_v38  ;;  %v4505_v23 = vmul.f32 -1.442695, %v4142_v14 }
 0xba3   :  { %4553 = vpow2.f32 %v4504_v24 }
 0xba4   :  { %4555 = vpow2.f32 %v4505_v23 }
 0xba9   :  { %v4554_v36 = vpop.eup %4553 }
 0xbaa   :  { %v4556_v59 = vpop.eup %4555  ;;  %v4196_v8 = vadd.f32 1.0, %v4554_v36 }
 0xbab   :  { %v4197_v27 = vadd.f32 1.0, %v4556_v59  ;;  %v4161_v13 = vpop.f32.mrf.mxu2  ;;  %v4181_v11 = vpop.f32.mrf.mxu3 }
 0xbac   :  { %4557 = vrcp.f32 %v4196_v8  ;;  %v4162_v48 = vadd.f32 %v4161_v13, %v4088_v50  ;;  %v4182_v62 = vadd.f32 %v4181_v11, %v4088_v50  ;;  %v4209_v52 = vand.u32 2147483647, %v4196_v8  ;;  %v6281_v13 = vld [vmem:[#allocation23_spill] sm:$0xff] }
 0xbad   :  { %4559 = vrcp.f32 %v4197_v27  ;;  %v4211_v56 = vand.u32 2147483648, %v4196_v8  ;;  %v4226_v49 = vand.u32 2147483648, %v4197_v27  ;;  %v4224_v32 = vand.u32 2147483647, %v4197_v27 }
 0xbae   :  { %v4506_v57 = vmul.f32 -1.442695, %v4162_v48  ;;  %v4507_v9 = vmul.f32 -1.442695, %v4182_v62  ;;  %vm4205_vm8 = vweird.f32 %v4196_v8  ;;  %vm4220_vm3 = vweird.f32 %v4197_v27  ;;  %v6282_v48 = vld [vmem:[#allocation24_spill] sm:$0xff] }
 0xbaf   :  { %v4212_v43 = vor.u32 1.1754944e-38, %v4211_v56  ;;  %v4227_v0 = vor.u32 1.1754944e-38, %v4226_v49  ;;  %vm4210_vm0 = vcmp.eq.f32.partialorder %v4209_v52, 8.507059e+37  ;;  %vm4225_vm1 = vcmp.eq.f32.partialorder %v4224_v32, 8.507059e+37 }
 0xbb0   :  { %4561 = vpow2.f32 %v4506_v57 }
 0xbb1   :  { %4563 = vpow2.f32 %v4507_v9 }
 0xbb2   :  { %v4558_v20 = vpop.eup %4557 }
 0xbb3   :  { %v4560_v21 = vpop.eup %4559  ;;  %v4201_v47 = vmul.f32 %v4558_v20, %v4196_v8  ;;  %vm4206_vm10 = vweird.f32 %v4558_v20 }
 0xbb4   :  { %v4216_v7 = vmul.f32 %v4560_v21, %v4197_v27  ;;  %vm4221_vm7 = vweird.f32 %v4560_v21  ;;  %vm4207_vm9 = vmor %vm4205_vm8, %vm4206_vm10 }
 0xbb5   :  { %v4202_v4 = vsub.f32 1.0, %v4201_v47  ;;  %vm4222_vm11 = vmor %vm4220_vm3, %vm4221_vm7 }
 0xbb6   :  { %v4217_v18 = vsub.f32 1.0, %v4216_v7  ;;  %v4562_v55 = vpop.eup %4561 }
 0xbb7   :  { %v4203_v51 = vmul.f32 %v4558_v20, %v4202_v4  ;;  %v4564_v58 = vpop.eup %4563  ;;  %v4198_v28 = vadd.f32 1.0, %v4562_v55 }
 0xbb8   :  { %v4218_v19 = vmul.f32 %v4560_v21, %v4217_v18  ;;  %v4199_v37 = vadd.f32 1.0, %v4564_v58 }
 0xbb9   :  { %v4204_v30 = vadd.f32 %v4558_v20, %v4203_v51  ;;  %4565 = vrcp.f32 %v4198_v28  ;;  %v4241_v6 = vand.u32 2147483648, %v4198_v28  ;;  %v4239_v25 = vand.u32 2147483647, %v4198_v28 }
 0xbba   :  { %v4219_v31 = vadd.f32 %v4560_v21, %v4218_v19  ;;  %4567 = vrcp.f32 %v4199_v37  ;;  %v4256_v26 = vand.u32 2147483648, %v4199_v37  ;;  %vm4235_vm6 = vweird.f32 %v4198_v28 }
 0xbbb   :  { %v4208_v46 = vsel %vm4207_vm9, %v4558_v20, %v4204_v30  ;;  %v4242_v50 = vor.u32 1.1754944e-38, %v4241_v6  ;;  %vm4250_vm13 = vweird.f32 %v4199_v37  ;;  %vm4240_vm14 = vcmp.eq.f32.partialorder %v4239_v25, 8.507059e+37 }
 0xbbc   :  { %v4223_v12 = vsel %vm4222_vm11, %v4560_v21, %v4219_v31  ;;  %v4213_v45 = vsel %vm4210_vm0, %v4212_v43, %v4208_v46  ;;  %v4257_v63 = vor.u32 1.1754944e-38, %v4256_v26 }
 0xbbd   :  { %v4228_v53 = vsel %vm4225_vm1, %v4227_v0, %v4223_v12  ;;  %v4260_v33 = vperm.slane %v4213_v45, 0 }
 0xbbe   :  { %v4261_v1 = vperm.slane %v4228_v53, 0 }
 0xbbf   :  { %v4566_v34 = vpop.eup %4565  ;;  %v4264_v22 = vmul.f32 %v4260_v33, %v6100_v29  ;;  %v4254_v29 = vand.u32 2147483647, %v4199_v37 }
 0xbc0   :  { %v4265_v54 = vmul.f32 %v4261_v1, %v6103_v10  ;;  %v4568_v16 = vpop.eup %4567  ;;  %v4231_v41 = vmul.f32 %v4566_v34, %v4198_v28  ;;  %vm4236_vm2 = vweird.f32 %v4566_v34 }
 0xbc1   :  { %v4246_v35 = vmul.f32 %v4568_v16, %v4199_v37  ;;  %v4268_v2 = vadd.f32 %v4264_v22, %v6279_v15  ;;  %vm4251_vm5 = vweird.f32 %v4568_v16  ;;  %vm4237_vm12 = vmor %vm4235_vm6, %vm4236_vm2  ;;  %vm4255_vm15 = vcmp.eq.f32.partialorder %v4254_v29, 8.507059e+37 }
 0xbc2   :  { %v4269_v3 = vadd.f32 %v4265_v54, %v6280_v17  ;;  %v4232_v39 = vsub.f32 1.0, %v4231_v41  ;;  %vm4252_vm4 = vmor %vm4250_vm13, %vm4251_vm5 }
 0xbc3   :  { %v4247_v42 = vsub.f32 1.0, %v4246_v35  ;;  %4272 = vst [vmem:[#allocation2] sm:$0xff] %v4268_v2 }
 0xbc4   :  { %v4233_v44 = vmul.f32 %v4566_v34, %v4232_v39  ;;  %4273 = vst [vmem:[#allocation2 + $0x8] sm:$0xff] %v4269_v3 }
 0xbc5   :  { %v4248_v60 = vmul.f32 %v4568_v16, %v4247_v42 }
 0xbc6   :  { %v4234_v10 = vadd.f32 %v4566_v34, %v4233_v44 }
 0xbc7   :  { %v4249_v5 = vadd.f32 %v4568_v16, %v4248_v60 }
 0xbc8   :  { %v4238_v38 = vsel %vm4237_vm12, %v4566_v34, %v4234_v10 }
 0xbc9   :  { %v4243_v14 = vsel %vm4240_vm14, %v4242_v50, %v4238_v38  ;;  %v4253_v24 = vsel %vm4252_vm4, %v4568_v16, %v4249_v5 }
 0xbca   :  { %v4258_v23 = vsel %vm4255_vm15, %v4257_v63, %v4253_v24  ;;  %v4262_v36 = vperm.slane %v4243_v14, 0 }
 0xbcb   :  { %v4263_v59 = vperm.slane %v4258_v23, 0 }
 0xbcc   :  { %v4266_v8 = vmul.f32 %v4262_v36, %v6106_v61 }
 0xbcd   :  { %v4267_v27 = vmul.f32 %v4263_v59, %v6109_v40 }
 0xbce   :  { %v4270_v11 = vadd.f32 %v4266_v8, %v6281_v13 }
 0xbcf   :  { %v4271_v62 = vadd.f32 %v4267_v27, %v6282_v48 }
 0xbd0   :  { %4274 = vst [vmem:[#allocation2 + $0x10] sm:$0xff] %v4270_v11 }
 0xbd1   :  { %4275 = vst [vmem:[#allocation2 + $0x18] sm:$0xff] %v4271_v62 }
 0xbd2   :  { %4286 = dma.vmem_to_hbm [thread:$0]  %s4282_s16, 512, %s4284_s21, [#allocation3]  }
 0xbd3   :  { %4597 = dma.done.wait [#allocation3], 512  }
 0xbd4   :  { %4598 = vsyncadd [#allocation3], 4294966784 }
 0xbd5   :  { %4291 = vsyncpa [#allocation3], 1 }

</bundles_post_ra>
